<compile_context>
chip_gen: v7x
topology: tpu7x:2x2x1
jax: 0.10.0
libtpu: 0.0.40
codegen_flags: <defaults>
</compile_context>

<pallas_src>
import numpy as np
import jax
import jax.numpy as jnp
from jax import lax
from jax.experimental import pallas as pl
from jax.experimental.pallas import tpu as pltpu

EPS = float(np.finfo(np.float32).eps)
BN_EPS = 1e-5

# ----------------------------- synthetic hparams -----------------------------
NUM_FEATURE = 32          # num_feature
STEM_CH = 64              # stem conv output channels
DISPLACE_PLANES = 32      # IND_TRANSFORMER.NUM_OFFSET[0]
PROBE_NUM_OFFSETS = 16    # perfect square (grid-init offsets, unused: displace disabled)
NUM_SCALES = 5
SCALE_MIN, SCALE_MAX = 0.5, 2.0
NUM_ANGLES = 9
ANGLE_MIN = -30.0 / 180.0 * np.pi
ANGLE_MAX = 30.0 / 180.0 * np.pi

MAX_ROW_TILE = 512                 # per-step VMEM stays tiny even at this size
VMEM_LIMIT = 32 * 1024 * 1024      # explicit scoped-VMEM limit (safe on v5e/v6e/v7x)


# ----------------------------- helpers ---------------------------------------
def _round_up(x, m):
    return (x + m - 1) // m * m


def _pick_row_tile(m):
    """Largest reasonable row tile, but keep >=2 grid steps when possible so
    both v7x TensorCores get work; tiles are multiples of 8 sublanes and rows
    are padded up to the tile instead of falling back to tm == m."""
    if m >= 2 * MAX_ROW_TILE:
        tm = MAX_ROW_TILE
    else:
        tm = max(8, _round_up(m, 16) // 2)
    tm = _round_up(tm, 8)
    return tm, _round_up(m, tm)


def _pad_rows(a, m_pad, axis=0):
    pad = [(0, 0)] * a.ndim
    pad[axis] = (0, m_pad - a.shape[axis])
    return jnp.pad(a, pad)


def _full_spec(a):
    nd = a.ndim
    return pl.BlockSpec(a.shape, lambda i, _nd=nd: (0,) * _nd)


# ----------------------------- Pallas kernels --------------------------------
def _stem_kernel(p_ref, w_ref, b_ref, o_ref):
    # bf16 GEMM, fp32 accumulate, bias + ReLU.
    y = jnp.dot(p_ref[...], w_ref[...], preferred_element_type=jnp.float32) + b_ref[...]
    o_ref[...] = jnp.maximum(y, 0.0)


def pallas_stem(patches, w, b):
    """(M, K) bf16 @ (K, N) bf16 + b, ReLU.  Rows padded to a multiple of the tile."""
    m, k = patches.shape
    n = w.shape[1]
    tm, m_pad = _pick_row_tile(m)
    patches = _pad_rows(patches, m_pad)
    out = pl.pallas_call(
        _stem_kernel,
        out_shape=jax.ShapeDtypeStruct((m_pad, n), jnp.float32),
        grid=(m_pad // tm,),
        in_specs=[pl.BlockSpec((tm, k), lambda i: (i, 0)),
                  _full_spec(w),
                  _full_spec(b)],
        out_specs=pl.BlockSpec((tm, n), lambda i: (i, 0)),
        compiler_params=pltpu.CompilerParams(
            dimension_semantics=("parallel",),
            vmem_limit_bytes=VMEM_LIMIT),
    )(patches, w, b)
    return out[:m]


def _fused_kernel(taps_ref, w1_ref, w2_ref, b2_ref, bns_ref, bnb_ref,
                  wh_ref, bh_ref, wsum_s_ref, wsum_a_ref, bsum_s_ref, bsum_a_ref,
                  pv_s_ref, pv_a_ref, o_ref):
    # ---- MaxPool2d(3, s2, p1): reduce the 9 window taps (fp32, VPU) ----
    g = jnp.max(taps_ref[...], axis=0)                                        # (tm, 64)

    # ---- OffsetBlock: pre_offset and downsample share the input -> one merged RHS.
    t = jnp.dot(g.astype(jnp.bfloat16), w1_ref[...],
                preferred_element_type=jnp.float32)                           # (tm, 64)
    # TODO(synk): DisplaceChannel source is not provided; with
    # MODEL.DETAIL.DISABLE_DISPLACE=True it is the identity, which is what lets
    # pre_offset -> displace -> post_offset (+downsample skip) fold into these
    # two GEMMs exactly.
    skip = jnp.dot(t.astype(jnp.bfloat16), w2_ref[...],
                   preferred_element_type=jnp.float32) + b2_ref[...]          # (tm, 32)
    feat = jnp.maximum(skip * bns_ref[...] + bnb_ref[...], 0.0)               # BN(eval)+ReLU

    # ---- TransformerHead: both Probe 1x1 convs in a single merged GEMM ----
    yb = jnp.dot(feat.astype(jnp.bfloat16), wh_ref[...],
                 preferred_element_type=jnp.float32) + bh_ref[...]            # (tm, 32)
    # Summarizers (1x1, 1 out-channel) via zero-padded weight rows -> no column slicing.
    logit_s = jnp.sum(yb * wsum_s_ref[...], axis=1, keepdims=True) + bsum_s_ref[...]
    logit_a = jnp.sum(yb * wsum_a_ref[...], axis=1, keepdims=True) + bsum_a_ref[...]

    def expected(logit, pv):
        # DisplaceChannel is disabled -> every probe slice holds identical logits.
        n_probe = pv.shape[1]
        l = jnp.broadcast_to(logit, (logit.shape[0], n_probe))
        l = l - jnp.max(l, axis=1, keepdims=True)
        e = jnp.exp(l)
        score = e / jnp.sum(e, axis=1, keepdims=True)        # softmax over probes
        return jnp.sum(score * pv, axis=1, keepdims=True)    # expected probe value

    scale = expected(logit_s, pv_s_ref[...])
    angle = expected(logit_a, pv_a_ref[...])
    c = jnp.clip(jnp.cos(angle), -1.0 + EPS, 1.0 - EPS) * scale               # (tm, 1)
    s = jnp.clip(jnp.sin(angle), -1.0 + EPS, 1.0 - EPS) * scale               # (tm, 1)

    # Pack cos|sin into one (tm, 2) slab: a single store per tile instead of two (tm,1) stores.
    col = lax.broadcasted_iota(jnp.int32, (c.shape[0], 2), 1)
    o_ref[...] = jnp.where(col == 0,
                           jnp.broadcast_to(c, (c.shape[0], 2)),
                           jnp.broadcast_to(s, (s.shape[0], 2)))


def pallas_pool_offset_head(taps, w1, w2, b2, bn_scale, bn_shift,
                            w_head, b_head, wsum_s, wsum_a, bsum_s, bsum_a,
                            pv_s, pv_a):
    k9, m, c_in = taps.shape
    tm, m_pad = _pick_row_tile(m)
    taps = _pad_rows(taps, m_pad, axis=1)
    args = (taps, w1, w2, b2, bn_scale, bn_shift, w_head, b_head,
            wsum_s, wsum_a, bsum_s, bsum_a, pv_s, pv_a)
    in_specs = [pl.BlockSpec((k9, tm, c_in), lambda i: (0, i, 0))] + \
               [_full_spec(a) for a in args[1:]]
    out = pl.pallas_call(
        _fused_kernel,
        out_shape=jax.ShapeDtypeStruct((m_pad, 2), jnp.float32),
        grid=(m_pad // tm,),
        in_specs=in_specs,
        out_specs=pl.BlockSpec((tm, 2), lambda i: (i, 0)),
        compiler_params=pltpu.CompilerParams(
            dimension_semantics=("parallel",),
            vmem_limit_bytes=VMEM_LIMIT),
    )(*args)
    return out[:m]


# ----------------------------- parameters ------------------------------------
def init_params(key):
    ks = jax.random.split(key, 20)

    def nrm(k, shape, s):
        return s * jax.random.normal(k, shape, dtype=jnp.float32)

    p = {}
    # stem: Conv2d(3, 64, 7, stride=2, padding=3), OIHW
    p['stem_w'] = nrm(ks[0], (STEM_CH, 3, 7, 7), 0.05)
    p['stem_b'] = nrm(ks[1], (STEM_CH,), 0.05)
    # OffsetBlock.pre_offset: Conv2d(64, DISPLACE_PLANES, 1)   (stored as (Cin, Cout))
    p['pre_w'] = nrm(ks[2], (STEM_CH, DISPLACE_PLANES), 0.1)
    p['pre_b'] = nrm(ks[3], (DISPLACE_PLANES,), 0.1)
    # OffsetBlock.post_offset: Conv2d(DISPLACE_PLANES, NUM_FEATURE, 1)
    p['post_w'] = nrm(ks[4], (DISPLACE_PLANES, NUM_FEATURE), 0.1)
    p['post_b'] = nrm(ks[5], (NUM_FEATURE,), 0.1)
    # OffsetBlock.downsample: Conv2d(64, NUM_FEATURE, 1, bias=False)
    p['down_w'] = nrm(ks[6], (STEM_CH, NUM_FEATURE), 0.1)
    # OffsetBlock.bn: BatchNorm2d(NUM_FEATURE), eval mode statistics
    p['bn_gamma'] = 1.0 + nrm(ks[7], (NUM_FEATURE,), 0.1)
    p['bn_beta'] = nrm(ks[8], (NUM_FEATURE,), 0.1)
    p['bn_mean'] = nrm(ks[9], (NUM_FEATURE,), 0.1)
    p['bn_var'] = 1.0 + jnp.abs(nrm(ks[10], (NUM_FEATURE,), 0.1))
    # scale Probe: conv Conv2d(NUM_FEATURE, PROBE_NUM_OFFSETS, 1) + summarizer Conv2d(PROBE_NUM_OFFSETS, 1, 1)
    p['sc_conv_w'] = nrm(ks[11], (NUM_FEATURE, PROBE_NUM_OFFSETS), 0.1)
    p['sc_conv_b'] = nrm(ks[12], (PROBE_NUM_OFFSETS,), 0.1)
    p['sc_sum_w'] = nrm(ks[13], (PROBE_NUM_OFFSETS,), 0.1)
    p['sc_sum_b'] = nrm(ks[14], (), 0.1)
    # angle Probe
    p['an_conv_w'] = nrm(ks[15], (NUM_FEATURE, PROBE_NUM_OFFSETS), 0.1)
    p['an_conv_b'] = nrm(ks[16], (PROBE_NUM_OFFSETS,), 0.1)
    p['an_sum_w'] = nrm(ks[17], (PROBE_NUM_OFFSETS,), 0.1)
    p['an_sum_b'] = nrm(ks[18], (), 0.1)
    # probe value buffers
    p['sc_probe_vals'] = jnp.linspace(SCALE_MIN, SCALE_MAX, NUM_SCALES, dtype=jnp.float32)
    p['an_probe_vals'] = jnp.linspace(ANGLE_MIN, ANGLE_MAX, NUM_ANGLES, dtype=jnp.float32)
    return p


# ----------------------------- forward ---------------------------------------
def forward(params, x_nchw):
    B, Cin, H, W = x_nchw.shape
    x = jnp.transpose(x_nchw, (0, 2, 3, 1)).astype(jnp.float32)       # NHWC
    bf = jnp.bfloat16

    # ---- TransformerFeature.pre: Conv2d(3,64,7,s2,p3) + ReLU
    # Single XLA patches op instead of 49 slice/concat glue ops; GEMM in Pallas.
    Ho = (H + 2 * 3 - 7) // 2 + 1
    Wo = (W + 2 * 3 - 7) // 2 + 1
    patches = lax.conv_general_dilated_patches(
        x, filter_shape=(7, 7), window_strides=(2, 2),
        padding=((3, 3), (3, 3)),
        dimension_numbers=("NHWC", "HWIO", "NHWC"))                   # (B,Ho,Wo,Cin*49)
    K = Cin * 7 * 7
    Kp = _round_up(K, 128)                                            # 147 -> 256: clean MXU K, unmasked vld
    patches = patches.reshape(B * Ho * Wo, K)
    patches = jnp.pad(patches, ((0, 0), (0, Kp - K))).astype(bf)
    # patch feature index = c*49 + kh*7 + kw  ->  weights laid out as (C, kh, kw, O)
    w_stem = jnp.transpose(params['stem_w'], (1, 2, 3, 0)).reshape(K, STEM_CH)
    w_stem = jnp.pad(w_stem, ((0, Kp - K), (0, 0))).astype(bf)
    y = pallas_stem(patches, w_stem, params['stem_b'].reshape(1, STEM_CH))
    y = y.reshape(B, Ho, Wo, STEM_CH)

    # ---- MaxPool2d(3, stride=2, padding=1): taps gathered here, reduced in the fused kernel.
    # TODO(synk): the 9-tap stack still round-trips ~9x the pooled activation through HBM;
    # avoiding it entirely needs in-kernel strided window loads from y.
    Hp = (Ho + 2 - 3) // 2 + 1
    Wp = (Wo + 2 - 3) // 2 + 1
    yp = jnp.pad(y, ((0, 0), (1, 1), (1, 1), (0, 0)), constant_values=-jnp.inf)
    taps = jnp.stack(
        [yp[:, di::2, dj::2, :][:, :Hp, :Wp, :] for di in range(3) for dj in range(3)],
        axis=0).reshape(9, B * Hp * Wp, STEM_CH)

    # ---- fold / merge weights for the fused kernel (exact algebra, fp32 folding) ----
    # OffsetBlock: [pre | down] share the input; [post ; I] re-injects the downsample skip.
    w1 = jnp.concatenate([params['pre_w'], params['down_w']], axis=1).astype(bf)          # (64, 64)
    w2 = jnp.concatenate([params['post_w'],
                          jnp.eye(NUM_FEATURE, dtype=jnp.float32)], axis=0).astype(bf)    # (64, 32)
    b2 = (params['pre_b'] @ params['post_w'] + params['post_b']).reshape(1, NUM_FEATURE)
    bn_scale = (params['bn_gamma'] / jnp.sqrt(params['bn_var'] + BN_EPS)).reshape(1, NUM_FEATURE)
    bn_shift = params['bn_beta'].reshape(1, -1) - params['bn_mean'].reshape(1, -1) * bn_scale
    # Head: both probe convs in one RHS; summarizer weights zero-padded so no column slicing.
    w_head = jnp.concatenate([params['sc_conv_w'], params['an_conv_w']], axis=1).astype(bf)  # (32, 32)
    b_head = jnp.concatenate([params['sc_conv_b'], params['an_conv_b']]).reshape(1, -1)
    zeros_o = jnp.zeros((PROBE_NUM_OFFSETS,), jnp.float32)
    wsum_s = jnp.concatenate([params['sc_sum_w'], zeros_o]).reshape(1, -1)
    wsum_a = jnp.concatenate([zeros_o, params['an_sum_w']]).reshape(1, -1)
    bsum_s = jnp.reshape(params['sc_sum_b'], (1, 1))
    bsum_a = jnp.reshape(params['an_sum_b'], (1, 1))
    pv_s = params['sc_probe_vals'].reshape(1, -1)
    pv_a = params['an_probe_vals'].reshape(1, -1)

    # ---- fused: maxpool-reduce -> OffsetBlock -> TransformerHead, one pallas_call ----
    packed = pallas_pool_offset_head(taps, w1, w2, b2, bn_scale, bn_shift,
                                     w_head, b_head, wsum_s, wsum_a, bsum_s, bsum_a,
                                     pv_s, pv_a)                                          # (M, 2)

    angle_cos_scale = packed[:, 0].reshape(B, 1, Hp, Wp)   # NCHW
    angle_sin_scale = packed[:, 1].reshape(B, 1, Hp, Wp)   # NCHW
    return angle_cos_scale, angle_sin_scale


# ----------------------------- main -------------------------------------------
if __name__ == "__main__":
    key = jax.random.PRNGKey(0)
    pkey, xkey = jax.random.split(key)
    params = init_params(pkey)
    x = jax.random.normal(xkey, (2, 3, 32, 32), dtype=jnp.float32)   # NCHW, like the torch module

    fwd = jax.jit(forward)
    cos_s, sin_s = fwd(params, x)
    jax.block_until_ready((cos_s, sin_s))

    assert cos_s.shape == (2, 1, 8, 8) and sin_s.shape == (2, 1, 8, 8)
    assert bool(jnp.all(jnp.isfinite(cos_s))) and bool(jnp.all(jnp.isfinite(sin_s)))
    print("KERNEL_OK")
</pallas_src>

<mosaic_0001>
module attributes {stable_mosaic.version = 11 : i64} {
  func.func @_stem_kernel(%arg0: i32, %arg1: memref<256x256xbf16, #tpu.memory_space<vmem>>, %arg2: memref<256x64xbf16, #tpu.memory_space<vmem>>, %arg3: memref<1x64xf32, #tpu.memory_space<vmem>>, %arg4: memref<256x64xf32, #tpu.memory_space<vmem>>) attributes {dimension_semantics = [#tpu.dimension_semantics<parallel>], iteration_bounds = array<i64: 2>, scalar_prefetch = 0 : i64, scratch_operands = 0 : i64, tpu.core_type = #tpu.core_type<tc>, window_params = [{transform_indices = @transform_0, window_bounds = array<i64: 256, 256>}, {pipeline_mode = #tpu.pipeline_mode<synchronous>, transform_indices = @transform_1, window_bounds = array<i64: 256, 64>}, {pipeline_mode = #tpu.pipeline_mode<synchronous>, transform_indices = @transform_2, window_bounds = array<i64: 1, 64>}, {transform_indices = @transform_3, window_bounds = array<i64: 256, 64>}]} {
    %c0 = arith.constant 0 : index
    %c0_0 = arith.constant 0 : index
    %0 = vector.load %arg1[%c0, %c0_0] : memref<256x256xbf16, #tpu.memory_space<vmem>>, vector<256x256xbf16>
    %c0_1 = arith.constant 0 : index
    %c0_2 = arith.constant 0 : index
    %1 = vector.load %arg2[%c0_1, %c0_2] : memref<256x64xbf16, #tpu.memory_space<vmem>>, vector<256x64xbf16>
    %cst = arith.constant dense<0.000000e+00> : vector<256x64xf32>
    %2 = tpu.matmul %0, %1, %cst {dimension_numbers = #tpu.dot_dimension_numbers<[1], [0], [0], [1], [0, 0, 1, 1], [], []>} : vector<256x256xbf16>, vector<256x64xbf16>, vector<256x64xf32> -> vector<256x64xf32>
    %c0_3 = arith.constant 0 : index
    %c0_4 = arith.constant 0 : index
    %3 = vector.load %arg3[%c0_3, %c0_4] : memref<1x64xf32, #tpu.memory_space<vmem>>, vector<1x64xf32>
    %4 = vector.broadcast %3 : vector<1x64xf32> to vector<256x64xf32>
    %5 = arith.addf %2, %4 : vector<256x64xf32>
    %cst_5 = arith.constant 0.000000e+00 : f32
    %6 = vector.broadcast %cst_5 : f32 to vector<256x64xf32>
    %7 = arith.maximumf %5, %6 : vector<256x64xf32>
    %c0_6 = arith.constant 0 : index
    %c0_7 = arith.constant 0 : index
    %8 = vector.load %arg4[%c0_6, %c0_7] : memref<256x64xf32, #tpu.memory_space<vmem>>, vector<256x64xf32>
    tpu.vector_store %arg4[%c0_6, %c0_7], %7 {strides = array<i32>} : memref<256x64xf32, #tpu.memory_space<vmem>>, vector<256x64xf32>,
    return
  }
  func.func @transform_0(%arg0: i32) -> (i32, i32) {
    %c0_i32 = arith.constant 0 : i32
    %c0_i32_0 = arith.constant 0 : i32
    return %arg0, %c0_i32 : i32, i32
  }
  func.func @transform_1(%arg0: i32) -> (i32, i32) {
    %c0_i32 = arith.constant 0 : i32
    %c0_i32_0 = arith.constant 0 : i32
    %c0_i32_1 = arith.constant 0 : i32
    return %c0_i32, %c0_i32_0 : i32, i32
  }
  func.func @transform_2(%arg0: i32) -> (i32, i32) {
    %c0_i32 = arith.constant 0 : i32
    %c0_i32_0 = arith.constant 0 : i32
    %c0_i32_1 = arith.constant 0 : i32
    return %c0_i32, %c0_i32_0 : i32, i32
  }
  func.func @transform_3(%arg0: i32) -> (i32, i32) {
    %c0_i32 = arith.constant 0 : i32
    %c0_i32_0 = arith.constant 0 : i32
    return %arg0, %c0_i32 : i32, i32
  }
}

module attributes {stable_mosaic.version = 11 : i64} {
  func.func @_fused_kernel(%arg0: i32, %arg1: memref<9x64x64xf32, #tpu.memory_space<vmem>>, %arg2: memref<64x64xbf16, #tpu.memory_space<vmem>>, %arg3: memref<64x32xbf16, #tpu.memory_space<vmem>>, %arg4: memref<1x32xf32, #tpu.memory_space<vmem>>, %arg5: memref<1x32xf32, #tpu.memory_space<vmem>>, %arg6: memref<1x32xf32, #tpu.memory_space<vmem>>, %arg7: memref<32x32xbf16, #tpu.memory_space<vmem>>, %arg8: memref<1x32xf32, #tpu.memory_space<vmem>>, %arg9: memref<1x32xf32, #tpu.memory_space<vmem>>, %arg10: memref<1x32xf32, #tpu.memory_space<vmem>>, %arg11: memref<1x1xf32, #tpu.memory_space<vmem>>, %arg12: memref<1x1xf32, #tpu.memory_space<vmem>>, %arg13: memref<1x5xf32, #tpu.memory_space<vmem>>, %arg14: memref<1x9xf32, #tpu.memory_space<vmem>>, %arg15: memref<64x2xf32, #tpu.memory_space<vmem>>) attributes {dimension_semantics = [#tpu.dimension_semantics<parallel>], iteration_bounds = array<i64: 2>, scalar_prefetch = 0 : i64, scratch_operands = 0 : i64, tpu.core_type = #tpu.core_type<tc>, window_params = [{transform_indices = @transform_0, window_bounds = array<i64: 9, 64, 64>}, {pipeline_mode = #tpu.pipeline_mode<synchronous>, transform_indices = @transform_1, window_bounds = array<i64: 64, 64>}, {pipeline_mode = #tpu.pipeline_mode<synchronous>, transform_indices = @transform_2, window_bounds = array<i64: 64, 32>}, {pipeline_mode = #tpu.pipeline_mode<synchronous>, transform_indices = @transform_3, window_bounds = array<i64: 1, 32>}, {pipeline_mode = #tpu.pipeline_mode<synchronous>, transform_indices = @transform_4, window_bounds = array<i64: 1, 32>}, {pipeline_mode = #tpu.pipeline_mode<synchronous>, transform_indices = @transform_5, window_bounds = array<i64: 1, 32>}, {pipeline_mode = #tpu.pipeline_mode<synchronous>, transform_indices = @transform_6, window_bounds = array<i64: 32, 32>}, {pipeline_mode = #tpu.pipeline_mode<synchronous>, transform_indices = @transform_7, window_bounds = array<i64: 1, 32>}, {pipeline_mode = #tpu.pipeline_mode<synchronous>, transform_indices = @transform_8, window_bounds = array<i64: 1, 32>}, {pipeline_mode = #tpu.pipeline_mode<synchronous>, transform_indices = @transform_9, window_bounds = array<i64: 1, 32>}, {pipeline_mode = #tpu.pipeline_mode<synchronous>, transform_indices = @transform_10, window_bounds = array<i64: 1, 1>}, {pipeline_mode = #tpu.pipeline_mode<synchronous>, transform_indices = @transform_11, window_bounds = array<i64: 1, 1>}, {pipeline_mode = #tpu.pipeline_mode<synchronous>, transform_indices = @transform_12, window_bounds = array<i64: 1, 5>}, {pipeline_mode = #tpu.pipeline_mode<synchronous>, transform_indices = @transform_13, window_bounds = array<i64: 1, 9>}, {transform_indices = @transform_14, window_bounds = array<i64: 64, 2>}]} {
    %c0 = arith.constant 0 : index
    %c0_0 = arith.constant 0 : index
    %c0_1 = arith.constant 0 : index
    %0 = vector.load %arg1[%c0, %c0_0, %c0_1] : memref<9x64x64xf32, #tpu.memory_space<vmem>>, vector<9x64x64xf32>
    %cst = arith.constant dense<0xFF800000> : vector<64x64xf32>
    %1 = vector.multi_reduction <maximumf>, %0, %cst [0] : vector<9x64x64xf32> to vector<64x64xf32>
    %2 = arith.truncf %1 : vector<64x64xf32> to vector<64x64xbf16>
    %c0_2 = arith.constant 0 : index
    %c0_3 = arith.constant 0 : index
    %3 = vector.load %arg2[%c0_2, %c0_3] : memref<64x64xbf16, #tpu.memory_space<vmem>>, vector<64x64xbf16>
    %cst_4 = arith.constant dense<0.000000e+00> : vector<64x64xf32>
    %4 = tpu.matmul %2, %3, %cst_4 {dimension_numbers = #tpu.dot_dimension_numbers<[1], [0], [0], [1], [0, 0, 1, 1], [], []>} : vector<64x64xbf16>, vector<64x64xbf16>, vector<64x64xf32> -> vector<64x64xf32>
    %5 = arith.truncf %4 : vector<64x64xf32> to vector<64x64xbf16>
    %c0_5 = arith.constant 0 : index
    %c0_6 = arith.constant 0 : index
    %6 = vector.load %arg3[%c0_5, %c0_6] : memref<64x32xbf16, #tpu.memory_space<vmem>>, vector<64x32xbf16>
    %cst_7 = arith.constant dense<0.000000e+00> : vector<64x32xf32>
    %7 = tpu.matmul %5, %6, %cst_7 {dimension_numbers = #tpu.dot_dimension_numbers<[1], [0], [0], [1], [0, 0, 1, 1], [], []>} : vector<64x64xbf16>, vector<64x32xbf16>, vector<64x32xf32> -> vector<64x32xf32>
    %c0_8 = arith.constant 0 : index
    %c0_9 = arith.constant 0 : index
    %8 = vector.load %arg4[%c0_8, %c0_9] : memref<1x32xf32, #tpu.memory_space<vmem>>, vector<1x32xf32>
    %9 = vector.broadcast %8 : vector<1x32xf32> to vector<64x32xf32>
    %10 = arith.addf %7, %9 : vector<64x32xf32>
    %c0_10 = arith.constant 0 : index
    %c0_11 = arith.constant 0 : index
    %11 = vector.load %arg5[%c0_10, %c0_11] : memref<1x32xf32, #tpu.memory_space<vmem>>, vector<1x32xf32>
    %12 = vector.broadcast %11 : vector<1x32xf32> to vector<64x32xf32>
    %13 = arith.mulf %10, %12 : vector<64x32xf32>
    %c0_12 = arith.constant 0 : index
    %c0_13 = arith.constant 0 : index
    %14 = vector.load %arg6[%c0_12, %c0_13] : memref<1x32xf32, #tpu.memory_space<vmem>>, vector<1x32xf32>
    %15 = vector.broadcast %14 : vector<1x32xf32> to vector<64x32xf32>
    %16 = arith.addf %13, %15 : vector<64x32xf32>
    %cst_14 = arith.constant 0.000000e+00 : f32
    %17 = vector.broadcast %cst_14 : f32 to vector<64x32xf32>
    %18 = arith.maximumf %16, %17 : vector<64x32xf32>
    %19 = arith.truncf %18 : vector<64x32xf32> to vector<64x32xbf16>
    %c0_15 = arith.constant 0 : index
    %c0_16 = arith.constant 0 : index
    %20 = vector.load %arg7[%c0_15, %c0_16] : memref<32x32xbf16, #tpu.memory_space<vmem>>, vector<32x32xbf16>
    %cst_17 = arith.constant dense<0.000000e+00> : vector<64x32xf32>
    %21 = tpu.matmul %19, %20, %cst_17 {dimension_numbers = #tpu.dot_dimension_numbers<[1], [0], [0], [1], [0, 0, 1, 1], [], []>} : vector<64x32xbf16>, vector<32x32xbf16>, vector<64x32xf32> -> vector<64x32xf32>
    %c0_18 = arith.constant 0 : index
    %c0_19 = arith.constant 0 : index
    %22 = vector.load %arg8[%c0_18, %c0_19] : memref<1x32xf32, #tpu.memory_space<vmem>>, vector<1x32xf32>
    %23 = vector.broadcast %22 : vector<1x32xf32> to vector<64x32xf32>
    %24 = arith.addf %21, %23 : vector<64x32xf32>
    %c0_20 = arith.constant 0 : index
    %c0_21 = arith.constant 0 : index
    %25 = vector.load %arg9[%c0_20, %c0_21] : memref<1x32xf32, #tpu.memory_space<vmem>>, vector<1x32xf32>
    %26 = vector.broadcast %25 : vector<1x32xf32> to vector<64x32xf32>
    %27 = arith.mulf %24, %26 : vector<64x32xf32>
    %cst_22 = arith.constant dense<0.000000e+00> : vector<64xf32>
    %28 = vector.multi_reduction <add>, %27, %cst_22 [1] : vector<64x32xf32> to vector<64xf32>
    %29 = vector.shape_cast %28 : vector<64xf32> to vector<64x1xf32>
    %c0_23 = arith.constant 0 : index
    %c0_24 = arith.constant 0 : index
    %30 = vector.load %arg11[%c0_23, %c0_24] : memref<1x1xf32, #tpu.memory_space<vmem>>, vector<1x1xf32>
    %31 = vector.broadcast %30 : vector<1x1xf32> to vector<64x1xf32>
    %32 = arith.addf %29, %31 : vector<64x1xf32>
    %c0_25 = arith.constant 0 : index
    %c0_26 = arith.constant 0 : index
    %33 = vector.load %arg10[%c0_25, %c0_26] : memref<1x32xf32, #tpu.memory_space<vmem>>, vector<1x32xf32>
    %34 = vector.broadcast %33 : vector<1x32xf32> to vector<64x32xf32>
    %35 = arith.mulf %24, %34 : vector<64x32xf32>
    %cst_27 = arith.constant dense<0.000000e+00> : vector<64xf32>
    %36 = vector.multi_reduction <add>, %35, %cst_27 [1] : vector<64x32xf32> to vector<64xf32>
    %37 = vector.shape_cast %36 : vector<64xf32> to vector<64x1xf32>
    %c0_28 = arith.constant 0 : index
    %c0_29 = arith.constant 0 : index
    %38 = vector.load %arg12[%c0_28, %c0_29] : memref<1x1xf32, #tpu.memory_space<vmem>>, vector<1x1xf32>
    %39 = vector.broadcast %38 : vector<1x1xf32> to vector<64x1xf32>
    %40 = arith.addf %37, %39 : vector<64x1xf32>
    %c0_30 = arith.constant 0 : index
    %c0_31 = arith.constant 0 : index
    %41 = vector.load %arg13[%c0_30, %c0_31] : memref<1x5xf32, #tpu.memory_space<vmem>>, vector<1x5xf32>
    %42 = vector.shape_cast %32 : vector<64x1xf32> to vector<64x1xf32>
    %43 = vector.broadcast %42 : vector<64x1xf32> to vector<64x5xf32>
    %cst_32 = arith.constant dense<0xFF800000> : vector<64xf32>
    %44 = vector.multi_reduction <maximumf>, %43, %cst_32 [1] : vector<64x5xf32> to vector<64xf32>
    %45 = vector.shape_cast %44 : vector<64xf32> to vector<64x1xf32>
    %46 = vector.broadcast %45 : vector<64x1xf32> to vector<64x5xf32>
    %47 = arith.subf %43, %46 : vector<64x5xf32>
    %48 = math.exp %47 : vector<64x5xf32>
    %cst_33 = arith.constant dense<0.000000e+00> : vector<64xf32>
    %49 = vector.multi_reduction <add>, %48, %cst_33 [1] : vector<64x5xf32> to vector<64xf32>
    %50 = vector.shape_cast %49 : vector<64xf32> to vector<64x1xf32>
    %51 = vector.broadcast %50 : vector<64x1xf32> to vector<64x5xf32>
    %52 = arith.divf %48, %51 : vector<64x5xf32>
    %53 = vector.broadcast %41 : vector<1x5xf32> to vector<64x5xf32>
    %54 = arith.mulf %52, %53 : vector<64x5xf32>
    %cst_34 = arith.constant dense<0.000000e+00> : vector<64xf32>
    %55 = vector.multi_reduction <add>, %54, %cst_34 [1] : vector<64x5xf32> to vector<64xf32>
    %56 = vector.shape_cast %55 : vector<64xf32> to vector<64x1xf32>
    %c0_35 = arith.constant 0 : index
    %c0_36 = arith.constant 0 : index
    %57 = vector.load %arg14[%c0_35, %c0_36] : memref<1x9xf32, #tpu.memory_space<vmem>>, vector<1x9xf32>
    %58 = vector.shape_cast %40 : vector<64x1xf32> to vector<64x1xf32>
    %59 = vector.broadcast %58 : vector<64x1xf32> to vector<64x9xf32>
    %cst_37 = arith.constant dense<0xFF800000> : vector<64xf32>
    %60 = vector.multi_reduction <maximumf>, %59, %cst_37 [1] : vector<64x9xf32> to vector<64xf32>
    %61 = vector.shape_cast %60 : vector<64xf32> to vector<64x1xf32>
    %62 = vector.broadcast %61 : vector<64x1xf32> to vector<64x9xf32>
    %63 = arith.subf %59, %62 : vector<64x9xf32>
    %64 = math.exp %63 : vector<64x9xf32>
    %cst_38 = arith.constant dense<0.000000e+00> : vector<64xf32>
    %65 = vector.multi_reduction <add>, %64, %cst_38 [1] : vector<64x9xf32> to vector<64xf32>
    %66 = vector.shape_cast %65 : vector<64xf32> to vector<64x1xf32>
    %67 = vector.broadcast %66 : vector<64x1xf32> to vector<64x9xf32>
    %68 = arith.divf %64, %67 : vector<64x9xf32>
    %69 = vector.broadcast %57 : vector<1x9xf32> to vector<64x9xf32>
    %70 = arith.mulf %68, %69 : vector<64x9xf32>
    %cst_39 = arith.constant dense<0.000000e+00> : vector<64xf32>
    %71 = vector.multi_reduction <add>, %70, %cst_39 [1] : vector<64x9xf32> to vector<64xf32>
    %72 = vector.shape_cast %71 : vector<64xf32> to vector<64x1xf32>
    %73 = math.cos %72 : vector<64x1xf32>
    %cst_40 = arith.constant -0.99999988 : f32
    %cst_41 = arith.constant 0.99999988 : f32
    %74 = vector.broadcast %cst_40 : f32 to vector<64x1xf32>
    %75 = arith.maximumf %74, %73 : vector<64x1xf32>
    %76 = vector.broadcast %cst_41 : f32 to vector<64x1xf32>
    %77 = arith.minimumf %76, %75 : vector<64x1xf32>
    %78 = arith.mulf %77, %56 : vector<64x1xf32>
    %79 = math.sin %72 : vector<64x1xf32>
    %cst_42 = arith.constant -0.99999988 : f32
    %cst_43 = arith.constant 0.99999988 : f32
    %80 = vector.broadcast %cst_42 : f32 to vector<64x1xf32>
    %81 = arith.maximumf %80, %79 : vector<64x1xf32>
    %82 = vector.broadcast %cst_43 : f32 to vector<64x1xf32>
    %83 = arith.minimumf %82, %81 : vector<64x1xf32>
    %84 = arith.mulf %83, %56 : vector<64x1xf32>
    %85 = tpu.iota {dimensions = array<i32: 1>} : vector<64x2xi32>
    %c0_i32 = arith.constant 0 : i32
    %86 = vector.broadcast %c0_i32 : i32 to vector<64x2xi32>
    %87 = arith.cmpi eq, %85, %86 : vector<64x2xi32>
    %88 = vector.shape_cast %78 : vector<64x1xf32> to vector<64x1xf32>
    %89 = vector.broadcast %88 : vector<64x1xf32> to vector<64x2xf32>
    %90 = vector.shape_cast %84 : vector<64x1xf32> to vector<64x1xf32>
    %91 = vector.broadcast %90 : vector<64x1xf32> to vector<64x2xf32>
    %92 = arith.select %87, %89, %91 : vector<64x2xi1>, vector<64x2xf32>
    %c0_44 = arith.constant 0 : index
    %c0_45 = arith.constant 0 : index
    %93 = vector.load %arg15[%c0_44, %c0_45] : memref<64x2xf32, #tpu.memory_space<vmem>>, vector<64x2xf32>
    tpu.vector_store %arg15[%c0_44, %c0_45], %92 {strides = array<i32>} : memref<64x2xf32, #tpu.memory_space<vmem>>, vector<64x2xf32>,
    return
  }
  func.func @transform_0(%arg0: i32) -> (i32, i32, i32) {
    %c0_i32 = arith.constant 0 : i32
    %c0_i32_0 = arith.constant 0 : i32
    %c0_i32_1 = arith.constant 0 : i32
    return %c0_i32, %arg0, %c0_i32_0 : i32, i32, i32
  }
  func.func @transform_1(%arg0: i32) -> (i32, i32) {
    %c0_i32 = arith.constant 0 : i32
    %c0_i32_0 = arith.constant 0 : i32
    %c0_i32_1 = arith.constant 0 : i32
    return %c0_i32, %c0_i32_0 : i32, i32
  }
  func.func @transform_2(%arg0: i32) -> (i32, i32) {
    %c0_i32 = arith.constant 0 : i32
    %c0_i32_0 = arith.constant 0 : i32
    %c0_i32_1 = arith.constant 0 : i32
    return %c0_i32, %c0_i32_0 : i32, i32
  }
  func.func @transform_3(%arg0: i32) -> (i32, i32) {
    %c0_i32 = arith.constant 0 : i32
    %c0_i32_0 = arith.constant 0 : i32
    %c0_i32_1 = arith.constant 0 : i32
    return %c0_i32, %c0_i32_0 : i32, i32
  }
  func.func @transform_4(%arg0: i32) -> (i32, i32) {
    %c0_i32 = arith.constant 0 : i32
    %c0_i32_0 = arith.constant 0 : i32
    %c0_i32_1 = arith.constant 0 : i32
    return %c0_i32, %c0_i32_0 : i32, i32
  }
  func.func @transform_5(%arg0: i32) -> (i32, i32) {
    %c0_i32 = arith.constant 0 : i32
    %c0_i32_0 = arith.constant 0 : i32
    %c0_i32_1 = arith.constant 0 : i32
    return %c0_i32, %c0_i32_0 : i32, i32
  }
  func.func @transform_6(%arg0: i32) -> (i32, i32) {
    %c0_i32 = arith.constant 0 : i32
    %c0_i32_0 = arith.constant 0 : i32
    %c0_i32_1 = arith.constant 0 : i32
    return %c0_i32, %c0_i32_0 : i32, i32
  }
  func.func @transform_7(%arg0: i32) -> (i32, i32) {
    %c0_i32 = arith.constant 0 : i32
    %c0_i32_0 = arith.constant 0 : i32
    %c0_i32_1 = arith.constant 0 : i32
    return %c0_i32, %c0_i32_0 : i32, i32
  }
  func.func @transform_8(%arg0: i32) -> (i32, i32) {
    %c0_i32 = arith.constant 0 : i32
    %c0_i32_0 = arith.constant 0 : i32
    %c0_i32_1 = arith.constant 0 : i32
    return %c0_i32, %c0_i32_0 : i32, i32
  }
  func.func @transform_9(%arg0: i32) -> (i32, i32) {
    %c0_i32 = arith.constant 0 : i32
    %c0_i32_0 = arith.constant 0 : i32
    %c0_i32_1 = arith.constant 0 : i32
    return %c0_i32, %c0_i32_0 : i32, i32
  }
  func.func @transform_10(%arg0: i32) -> (i32, i32) {
    %c0_i32 = arith.constant 0 : i32
    %c0_i32_0 = arith.constant 0 : i32
    %c0_i32_1 = arith.constant 0 : i32
    return %c0_i32, %c0_i32_0 : i32, i32
  }
  func.func @transform_11(%arg0: i32) -> (i32, i32) {
    %c0_i32 = arith.constant 0 : i32
    %c0_i32_0 = arith.constant 0 : i32
    %c0_i32_1 = arith.constant 0 : i32
    return %c0_i32, %c0_i32_0 : i32, i32
  }
  func.func @transform_12(%arg0: i32) -> (i32, i32) {
    %c0_i32 = arith.constant 0 : i32
    %c0_i32_0 = arith.constant 0 : i32
    %c0_i32_1 = arith.constant 0 : i32
    return %c0_i32, %c0_i32_0 : i32, i32
  }
  func.func @transform_13(%arg0: i32) -> (i32, i32) {
    %c0_i32 = arith.constant 0 : i32
    %c0_i32_0 = arith.constant 0 : i32
    %c0_i32_1 = arith.constant 0 : i32
    return %c0_i32, %c0_i32_0 : i32, i32
  }
  func.func @transform_14(%arg0: i32) -> (i32, i32) {
    %c0_i32 = arith.constant 0 : i32
    %c0_i32_0 = arith.constant 0 : i32
    return %arg0, %c0_i32 : i32, i32
  }
}

</mosaic_0001>

<bundles_post_ra>
// kernel: forward.2
= control target key start
LH: loop header
LB: loop body
LE: loop exit
PB: predicated region body
PF: predicated region fallthrough
CT: control target
= control target key end

     0   :  { %s1077_s12 = smov 0   ;;  %s1286_s0 = inlined_call_operand.vmem [shape: bf16[512,256], index: 0, kind: input, shape index: {}]   ;;  %s1287_s1 = inlined_call_operand.vmem [shape: bf16[256,64], index: 1, kind: input, shape index: {}]   ;;  %s1288_s2 = inlined_call_operand.vmem [shape: f32[1,64], index: 2, kind: input, shape index: {}]   ;;  %s1289_s3 = inlined_call_operand.vmem [shape: f32[512,64], index: 3, kind: output, shape index: {}]  }
   0x1 LB: > { %s787_s13 = sadd.s32 4294967295, %s1055_s12   ;;  %p791_p0 = scmp.ge.s32.totalorder %s1055_s12, 1  ;;  %s1055_s12 = sphi %s1077_s12, %s13_s12  }
   0x2   : > { %p139_p1 = scmp.lt.s32.totalorder %s1055_s12, 3 }
   0x4   : > { %p140_p2 = pnand %p791_p0, %p139_p1 }
   0x5   : > { %v985_v0 = vld [vmem:[%s1287_s1 + $0x40] sm:$0xff] (!%p140_p2)   ;;  %s792_s16 = sshll.u32 (!%p140_p2), %s787_s13, 5  ;;  %v987_v2 = vld [vmem:[%s1287_s1 + $0x48] sm:$0xff] (!%p140_p2)   ;;  %v989_v4 = vld [vmem:[%s1287_s1 + $0x50] sm:$0xff] (!%p140_p2)   ;;  %vm698_vm0 = vcmask (!%p140_p2), 523264  }
   0x6   : > { %143 = sbr.rel (%p140_p2) target bundleno = 316 (0x13c), region = 32  ;;  %v986_v1 = vld [vmem:[%s1287_s1] sm:$0xff] (!%p140_p2)   ;;  %849 = vmatprep.subr.bf16.mxu0 (!%p140_p2), %v985_v0  ;;  %961 = vmatprep.subr.bf16.mxu1 (!%p140_p2), %v985_v0  ;;  %v988_v3 = vld [vmem:[%s1287_s1 + $0x8] sm:$0xff] (!%p140_p2)   ;;  %p165_p3 = scmp.lt.s32.totalorder (!%p140_p2), %s792_s16, 63  ;;  %v990_v5 = vld [vmem:[%s1287_s1 + $0x10] sm:$0xff] (!%p140_p2)  }
   0x7   : > { %850 = vmatpush3.bf16.msra.mxu0 (!%p140_p2), %v986_v1  ;;  %969 = vmatpush3.bf16.msra.mxu1 (!%p140_p2), %v986_v1  ;;  %v991_v6 = vld [vmem:[%s1287_s1 + $0x58] sm:$0xff] (!%p140_p2)   ;;  %v993_v8 = vld [vmem:[%s1287_s1 + $0x60] sm:$0xff] (!%p140_p2)   ;;  %v995_v10 = vld [vmem:[%s1287_s1 + $0x68] sm:$0xff] (!%p140_p2)  }
   0x8   : > { %851 = vmatprep.subr.bf16.mxu0 (!%p140_p2), %v987_v2  ;;  %962 = vmatprep.subr.bf16.mxu1 (!%p140_p2), %v987_v2  ;;  %v992_v7 = vld [vmem:[%s1287_s1 + $0x18] sm:$0xff] (!%p140_p2)   ;;  %v994_v9 = vld [vmem:[%s1287_s1 + $0x20] sm:$0xff] (!%p140_p2)   ;;  %v996_v13 = vld [vmem:[%s1287_s1 + $0x28] sm:$0xff] (!%p140_p2)  }
   0x9   : > { %v997_v14 = vld [vmem:[%s1287_s1 + $0x70] sm:$0xff] (!%p140_p2)   ;;  %v999_v16 = vld [vmem:[%s1287_s1 + $0x78] sm:$0xff] (!%p140_p2)   ;;  %v1178_v50 = vld [vmem:[%s1288_s2] ss:$0 sm:$0xff] (!%p140_p2) }
   0xa   : > { %v998_v15 = vld [vmem:[%s1287_s1 + $0x30] sm:$0xff] (!%p140_p2)   ;;  %v1000_v17 = vld [vmem:[%s1287_s1 + $0x38] sm:$0xff] (!%p140_p2)  }
   0xb   : > { %852 = vmatpush3.bf16.msra.mxu0 (!%p140_p2), %v988_v3  ;;  %970 = vmatpush3.bf16.msra.mxu1 (!%p140_p2), %v988_v3 }
   0xc   : > { %853 = vmatprep.subr.bf16.mxu0 (!%p140_p2), %v989_v4  ;;  %963 = vmatprep.subr.bf16.mxu1 (!%p140_p2), %v989_v4 }
   0xd   : > { %s1291_s16 = smov (!%p165_p3, %s792_s16), 63 }
   0xe   : > { %s848_s4 = sshll.u32 %s1291_s16, 3 }
   0xf   : > { %854 = vmatpush3.bf16.msra.mxu0 %v990_v5  ;;  %971 = vmatpush3.bf16.msra.mxu1 %v990_v5  ;;  %s1120_s9 = scalar_lea.vmem %s1286_s0, %s848_s4  ;;  %s1187_s30 = scalar_lea.vmem %s1289_s3, %s848_s4 }
  0x10   : > { %855 = vmatprep.subr.bf16.mxu0 %v991_v6  ;;  %964 = vmatprep.subr.bf16.mxu1 %v991_v6  ;;  %v1003_v11 = vld [vmem:[%s1120_s9 + $0x4] ss:$8 sps:$4 sm:$0xff]   ;;  %v1001_v18 = vld [vmem:[%s1120_s9] ss:$8 sps:$4 sm:$0xff]   ;;  %v1007_v20 = vld [vmem:[%s1120_s9 + $0x14] ss:$8 sps:$4 sm:$0xff]  }
  0x11   : > { %v1006_v12 = vld [vmem:[%s1120_s9 + $0x84] ss:$8 sps:$4 sm:$0xff]   ;;  %537 = vmatprep.mubr.bf16.mxu0 %v1003_v11  ;;  %v1004_v19 = vld [vmem:[%s1120_s9 + $0x80] ss:$8 sps:$4 sm:$0xff]   ;;  %v1009_v21 = vld [vmem:[%s1120_s9 + $0x94] ss:$8 sps:$4 sm:$0xff]  }
  0x12   : > { %601 = vmatprep.mubr.bf16.mxu1 %v1006_v12  ;;  %v1011_v22 = vld [vmem:[%s1120_s9 + $0x10] ss:$8 sps:$4 sm:$0xff]   ;;  %v1013_v24 = vld [vmem:[%s1120_s9 + $0x24] ss:$8 sps:$4 sm:$0xff]   ;;  %v1017_v26 = vld [vmem:[%s1120_s9 + $0x20] ss:$8 sps:$4 sm:$0xff]  }
  0x13   : > { %856 = vmatpush3.bf16.msra.mxu0 %v992_v7  ;;  %972 = vmatpush3.bf16.msra.mxu1 %v992_v7  ;;  %v1012_v23 = vld [vmem:[%s1120_s9 + $0x90] ss:$8 sps:$4 sm:$0xff]   ;;  %v1015_v25 = vld [vmem:[%s1120_s9 + $0xa4] ss:$8 sps:$4 sm:$0xff]   ;;  %v1018_v27 = vld [vmem:[%s1120_s9 + $0xa0] ss:$8 sps:$4 sm:$0xff]  }
  0x14   : > { %857 = vmatprep.subr.bf16.mxu0 %v993_v8  ;;  %965 = vmatprep.subr.bf16.mxu1 %v993_v8  ;;  %v1019_v28 = vld [vmem:[%s1120_s9 + $0x34] ss:$8 sps:$4 sm:$0xff]   ;;  %v1023_v30 = vld [vmem:[%s1120_s9 + $0x30] ss:$8 sps:$4 sm:$0xff]   ;;  %v1025_v32 = vld [vmem:[%s1120_s9 + $0x44] ss:$8 sps:$4 sm:$0xff]  }
  0x15   : > { %v1021_v29 = vld [vmem:[%s1120_s9 + $0xb4] ss:$8 sps:$4 sm:$0xff]   ;;  %v1024_v31 = vld [vmem:[%s1120_s9 + $0xb0] ss:$8 sps:$4 sm:$0xff]   ;;  %v1027_v33 = vld [vmem:[%s1120_s9 + $0xc4] ss:$8 sps:$4 sm:$0xff]  }
  0x16   : > { %v1029_v34 = vld [vmem:[%s1120_s9 + $0x40] ss:$8 sps:$4 sm:$0xff]   ;;  %v1031_v36 = vld [vmem:[%s1120_s9 + $0x54] ss:$8 sps:$4 sm:$0xff]   ;;  %v1035_v38 = vld [vmem:[%s1120_s9 + $0x50] ss:$8 sps:$4 sm:$0xff]  }
  0x17   : > { %858 = vmatpush3.bf16.msra.mxu0 %v994_v9  ;;  %973 = vmatpush3.bf16.msra.mxu1 %v994_v9  ;;  %v1030_v35 = vld [vmem:[%s1120_s9 + $0xc0] ss:$8 sps:$4 sm:$0xff]   ;;  %v1033_v37 = vld [vmem:[%s1120_s9 + $0xd4] ss:$8 sps:$4 sm:$0xff]   ;;  %v1036_v39 = vld [vmem:[%s1120_s9 + $0xd0] ss:$8 sps:$4 sm:$0xff]  }
  0x18   : > { %859 = vmatprep.subr.bf16.mxu0 %v995_v10  ;;  %966 = vmatprep.subr.bf16.mxu1 %v995_v10  ;;  %v1037_v40 = vld [vmem:[%s1120_s9 + $0x64] ss:$8 sps:$4 sm:$0xff]   ;;  %v1041_v42 = vld [vmem:[%s1120_s9 + $0x60] ss:$8 sps:$4 sm:$0xff]   ;;  %v1043_v44 = vld [vmem:[%s1120_s9 + $0x74] ss:$8 sps:$4 sm:$0xff]  }
  0x19   : > { %v1039_v41 = vld [vmem:[%s1120_s9 + $0xe4] ss:$8 sps:$4 sm:$0xff]   ;;  %v1042_v43 = vld [vmem:[%s1120_s9 + $0xe0] ss:$8 sps:$4 sm:$0xff]   ;;  %v1045_v45 = vld [vmem:[%s1120_s9 + $0xf4] ss:$8 sps:$4 sm:$0xff]  }
  0x1a   : > { %v1047_v46 = vld [vmem:[%s1120_s9 + $0x70] ss:$8 sps:$4 sm:$0xff]  }
  0x1b   : > { %860 = vmatpush3.bf16.msra.mxu0 %v996_v13  ;;  %974 = vmatpush3.bf16.msra.mxu1 %v996_v13  ;;  %v1048_v47 = vld [vmem:[%s1120_s9 + $0xf0] ss:$8 sps:$4 sm:$0xff]  }
  0x1c   : > { %861 = vmatprep.subr.bf16.mxu0 %v997_v14  ;;  %967 = vmatprep.subr.bf16.mxu1 %v997_v14 }
  0x1f   : > { %862 = vmatpush3.bf16.msra.mxu0 %v998_v15  ;;  %975 = vmatpush3.bf16.msra.mxu1 %v998_v15 }
  0x20   : > { %863 = vmatprep.subr.bf16.mxu0 %v999_v16  ;;  %968 = vmatprep.subr.bf16.mxu1 %v999_v16 }
  0x23   : > { %864 = vmatpush3.bf16.msra.mxu0 %v1000_v17  ;;  %976 = vmatpush3.bf16.msra.mxu1 %v1000_v17 }
  0x26   : > { %538 = vmatmul.mubr.bf16.vlgmr.msra.gmra.mrb[0].mxu0 %v1001_v18  ;;  %602 = vmatmul.mubr.bf16.vlgmr.msra.gmra.mrb[0].mxu1 %v1004_v19 }
  0x27   : > { %545 = vmatprep.mubr.bf16.mxu0 %v1007_v20  ;;  %609 = vmatprep.mubr.bf16.mxu1 %v1009_v21 }
  0x2e   : > { %546 = vmatmul.mubr.bf16.gmra.mrb[4].mxu0 %v1011_v22  ;;  %610 = vmatmul.mubr.bf16.gmra.mrb[4].mxu1 %v1012_v23 }
  0x2f   : > { %553 = vmatprep.mubr.bf16.mxu0 %v1013_v24  ;;  %617 = vmatprep.mubr.bf16.mxu1 %v1015_v25 }
  0x36   : > { %554 = vmatmul.mubr.bf16.gmra.mrb[8].mxu0 %v1017_v26  ;;  %618 = vmatmul.mubr.bf16.gmra.mrb[8].mxu1 %v1018_v27 }
  0x37   : > { %561 = vmatprep.mubr.bf16.mxu0 %v1019_v28  ;;  %625 = vmatprep.mubr.bf16.mxu1 %v1021_v29 }
  0x3e   : > { %562 = vmatmul.mubr.bf16.gmra.mrb[12].mxu0 %v1023_v30  ;;  %626 = vmatmul.mubr.bf16.gmra.mrb[12].mxu1 %v1024_v31 }
  0x3f   : > { %569 = vmatprep.mubr.bf16.mxu0 %v1025_v32  ;;  %633 = vmatprep.mubr.bf16.mxu1 %v1027_v33 }
  0x46   : > { %570 = vmatmul.mubr.bf16.gmra.mrb[16].mxu0 %v1029_v34  ;;  %634 = vmatmul.mubr.bf16.gmra.mrb[16].mxu1 %v1030_v35 }
  0x47   : > { %577 = vmatprep.mubr.bf16.mxu0 %v1031_v36  ;;  %641 = vmatprep.mubr.bf16.mxu1 %v1033_v37 }
  0x4e   : > { %578 = vmatmul.mubr.bf16.gmra.mrb[20].mxu0 %v1035_v38  ;;  %642 = vmatmul.mubr.bf16.gmra.mrb[20].mxu1 %v1036_v39 }
  0x4f   : > { %585 = vmatprep.mubr.bf16.mxu0 %v1037_v40  ;;  %649 = vmatprep.mubr.bf16.mxu1 %v1039_v41 }
  0x56   : > { %586 = vmatmul.mubr.bf16.gmra.mrb[24].mxu0 %v1041_v42  ;;  %650 = vmatmul.mubr.bf16.gmra.mrb[24].mxu1 %v1042_v43 }
  0x57   : > { %593 = vmatprep.mubr.bf16.mxu0 %v1043_v44  ;;  %657 = vmatprep.mubr.bf16.mxu1 %v1045_v45 }
  0x5e   : > { %594 = vmatmul.mubr.bf16.gmra.mrb[28].mxu0 %v1047_v46  ;;  %658 = vmatmul.mubr.bf16.gmra.mrb[28].mxu1 %v1048_v47 }
  0xf9   : > { %v865_v48 = vpop.f32.mrb[0].mxu0  ;;  %v913_v49 = vpop.f32.mrb[0].mxu1 }
  0xfa   : > { %v866_v51 = vpop.f32.mrb[1].mxu0  ;;  %v914_v52 = vpop.f32.mrb[1].mxu1 }
  0xfb   : > { %v867_v53 = vadd.f32 %v866_v51, %v865_v48  ;;  %v915_v54 = vadd.f32 %v914_v52, %v913_v49  ;;  %v868_v55 = vpop.f32.mrb[2].mxu0  ;;  %v916_v56 = vpop.f32.mrb[2].mxu1 }
  0xfc   : > { %v869_v57 = vpop.f32.mrb[3].mxu0  ;;  %v917_v58 = vpop.f32.mrb[3].mxu1 }
  0xfd   : > { %v540_v59 = vadd.f32 %v867_v53, %v1178_v50  ;;  %v604_v60 = vadd.f32 %v915_v54, %v1178_v50  ;;  %v870_v61 = vadd.f32 %v869_v57, %v868_v55  ;;  %v918_v62 = vadd.f32 %v917_v58, %v916_v56 }
  0xff   : > { %v666_v63 = vmax.f32 %v540_v59, 0.0  ;;  %v682_v0 = vmax.f32 %v604_v60, 0.0  ;;  %v543_v1 = vadd.f32 %v870_v61, %v1178_v50  ;;  %v607_v2 = vadd.f32 %v918_v62, %v1178_v50 }
 0x101   : > { %699 = vst.msk [vmem:[%s1187_s30] sm:$0xff] %vm698_vm0, %v666_v63  ;;  %715 = vst.msk [vmem:[%s1187_s30 + $0x80] sm:$0xff] %vm698_vm0, %v682_v0  ;;  %v667_v3 = vmax.f32 %v543_v1, 0.0  ;;  %v683_v4 = vmax.f32 %v607_v2, 0.0  ;;  %v871_v5 = vpop.f32.mrb[4].mxu0  ;;  %v919_v6 = vpop.f32.mrb[4].mxu1 }
 0x102   : > { %v872_v7 = vpop.f32.mrb[5].mxu0  ;;  %v920_v8 = vpop.f32.mrb[5].mxu1 }
 0x103   : > { %700 = vst.msk [vmem:[%s1187_s30 + $0x8] sm:$0xff] %vm698_vm0, %v667_v3  ;;  %716 = vst.msk [vmem:[%s1187_s30 + $0x88] sm:$0xff] %vm698_vm0, %v683_v4  ;;  %v873_v9 = vadd.f32 %v872_v7, %v871_v5  ;;  %v921_v10 = vadd.f32 %v920_v8, %v919_v6  ;;  %v874_v11 = vpop.f32.mrb[6].mxu0  ;;  %v922_v12 = vpop.f32.mrb[6].mxu1 }
 0x104   : > { %v875_v13 = vpop.f32.mrb[7].mxu0  ;;  %v923_v14 = vpop.f32.mrb[7].mxu1 }
 0x105   : > { %v548_v15 = vadd.f32 %v873_v9, %v1178_v50  ;;  %v612_v16 = vadd.f32 %v921_v10, %v1178_v50  ;;  %v876_v17 = vadd.f32 %v875_v13, %v874_v11  ;;  %v924_v18 = vadd.f32 %v923_v14, %v922_v12 }
 0x107   : > { %v668_v19 = vmax.f32 %v548_v15, 0.0  ;;  %v684_v20 = vmax.f32 %v612_v16, 0.0  ;;  %v551_v21 = vadd.f32 %v876_v17, %v1178_v50  ;;  %v615_v22 = vadd.f32 %v924_v18, %v1178_v50 }
 0x109   : > { %701 = vst.msk [vmem:[%s1187_s30 + $0x10] sm:$0xff] %vm698_vm0, %v668_v19  ;;  %717 = vst.msk [vmem:[%s1187_s30 + $0x90] sm:$0xff] %vm698_vm0, %v684_v20  ;;  %v669_v23 = vmax.f32 %v551_v21, 0.0  ;;  %v685_v24 = vmax.f32 %v615_v22, 0.0  ;;  %v877_v25 = vpop.f32.mrb[8].mxu0  ;;  %v925_v26 = vpop.f32.mrb[8].mxu1 }
 0x10a   : > { %v878_v27 = vpop.f32.mrb[9].mxu0  ;;  %v926_v28 = vpop.f32.mrb[9].mxu1 }
 0x10b   : > { %702 = vst.msk [vmem:[%s1187_s30 + $0x18] sm:$0xff] %vm698_vm0, %v669_v23  ;;  %718 = vst.msk [vmem:[%s1187_s30 + $0x98] sm:$0xff] %vm698_vm0, %v685_v24  ;;  %v879_v29 = vadd.f32 %v878_v27, %v877_v25  ;;  %v927_v30 = vadd.f32 %v926_v28, %v925_v26  ;;  %v880_v31 = vpop.f32.mrb[10].mxu0  ;;  %v928_v32 = vpop.f32.mrb[10].mxu1 }
 0x10c   : > { %v881_v33 = vpop.f32.mrb[11].mxu0  ;;  %v929_v34 = vpop.f32.mrb[11].mxu1 }
 0x10d   : > { %v556_v35 = vadd.f32 %v879_v29, %v1178_v50  ;;  %v620_v36 = vadd.f32 %v927_v30, %v1178_v50  ;;  %v882_v37 = vadd.f32 %v881_v33, %v880_v31  ;;  %v930_v38 = vadd.f32 %v929_v34, %v928_v32 }
 0x10f   : > { %v670_v39 = vmax.f32 %v556_v35, 0.0  ;;  %v686_v40 = vmax.f32 %v620_v36, 0.0  ;;  %v559_v41 = vadd.f32 %v882_v37, %v1178_v50  ;;  %v623_v42 = vadd.f32 %v930_v38, %v1178_v50 }
 0x111   : > { %703 = vst.msk [vmem:[%s1187_s30 + $0x20] sm:$0xff] %vm698_vm0, %v670_v39  ;;  %719 = vst.msk [vmem:[%s1187_s30 + $0xa0] sm:$0xff] %vm698_vm0, %v686_v40  ;;  %v671_v43 = vmax.f32 %v559_v41, 0.0  ;;  %v687_v44 = vmax.f32 %v623_v42, 0.0  ;;  %v883_v45 = vpop.f32.mrb[12].mxu0  ;;  %v931_v46 = vpop.f32.mrb[12].mxu1 }
 0x112   : > { %v884_v47 = vpop.f32.mrb[13].mxu0  ;;  %v932_v48 = vpop.f32.mrb[13].mxu1 }
 0x113   : > { %704 = vst.msk [vmem:[%s1187_s30 + $0x28] sm:$0xff] %vm698_vm0, %v671_v43  ;;  %720 = vst.msk [vmem:[%s1187_s30 + $0xa8] sm:$0xff] %vm698_vm0, %v687_v44  ;;  %v885_v49 = vadd.f32 %v884_v47, %v883_v45  ;;  %v933_v51 = vadd.f32 %v932_v48, %v931_v46  ;;  %v886_v52 = vpop.f32.mrb[14].mxu0  ;;  %v934_v53 = vpop.f32.mrb[14].mxu1 }
 0x114   : > { %v887_v54 = vpop.f32.mrb[15].mxu0  ;;  %v935_v55 = vpop.f32.mrb[15].mxu1 }
 0x115   : > { %v564_v56 = vadd.f32 %v885_v49, %v1178_v50  ;;  %v628_v57 = vadd.f32 %v933_v51, %v1178_v50  ;;  %v888_v58 = vadd.f32 %v887_v54, %v886_v52  ;;  %v936_v59 = vadd.f32 %v935_v55, %v934_v53 }
 0x117   : > { %v672_v60 = vmax.f32 %v564_v56, 0.0  ;;  %v688_v61 = vmax.f32 %v628_v57, 0.0  ;;  %v567_v62 = vadd.f32 %v888_v58, %v1178_v50  ;;  %v631_v63 = vadd.f32 %v936_v59, %v1178_v50 }
 0x119   : > { %705 = vst.msk [vmem:[%s1187_s30 + $0x30] sm:$0xff] %vm698_vm0, %v672_v60  ;;  %721 = vst.msk [vmem:[%s1187_s30 + $0xb0] sm:$0xff] %vm698_vm0, %v688_v61  ;;  %v673_v0 = vmax.f32 %v567_v62, 0.0  ;;  %v689_v1 = vmax.f32 %v631_v63, 0.0  ;;  %v889_v2 = vpop.f32.mrb[16].mxu0  ;;  %v937_v3 = vpop.f32.mrb[16].mxu1 }
 0x11a   : > { %v890_v4 = vpop.f32.mrb[17].mxu0  ;;  %v938_v5 = vpop.f32.mrb[17].mxu1 }
 0x11b   : > { %706 = vst.msk [vmem:[%s1187_s30 + $0x38] sm:$0xff] %vm698_vm0, %v673_v0  ;;  %722 = vst.msk [vmem:[%s1187_s30 + $0xb8] sm:$0xff] %vm698_vm0, %v689_v1  ;;  %v891_v6 = vadd.f32 %v890_v4, %v889_v2  ;;  %v939_v7 = vadd.f32 %v938_v5, %v937_v3  ;;  %v892_v8 = vpop.f32.mrb[18].mxu0  ;;  %v940_v9 = vpop.f32.mrb[18].mxu1 }
 0x11c   : > { %v893_v10 = vpop.f32.mrb[19].mxu0  ;;  %v941_v11 = vpop.f32.mrb[19].mxu1 }
 0x11d   : > { %v572_v12 = vadd.f32 %v891_v6, %v1178_v50  ;;  %v636_v13 = vadd.f32 %v939_v7, %v1178_v50  ;;  %v894_v14 = vadd.f32 %v893_v10, %v892_v8  ;;  %v942_v15 = vadd.f32 %v941_v11, %v940_v9 }
 0x11f   : > { %v674_v16 = vmax.f32 %v572_v12, 0.0  ;;  %v690_v17 = vmax.f32 %v636_v13, 0.0  ;;  %v575_v18 = vadd.f32 %v894_v14, %v1178_v50  ;;  %v639_v19 = vadd.f32 %v942_v15, %v1178_v50 }
 0x121   : > { %707 = vst.msk [vmem:[%s1187_s30 + $0x40] sm:$0xff] %vm698_vm0, %v674_v16  ;;  %723 = vst.msk [vmem:[%s1187_s30 + $0xc0] sm:$0xff] %vm698_vm0, %v690_v17  ;;  %v675_v20 = vmax.f32 %v575_v18, 0.0  ;;  %v691_v21 = vmax.f32 %v639_v19, 0.0  ;;  %v895_v22 = vpop.f32.mrb[20].mxu0  ;;  %v943_v23 = vpop.f32.mrb[20].mxu1 }
 0x122   : > { %v896_v24 = vpop.f32.mrb[21].mxu0  ;;  %v944_v25 = vpop.f32.mrb[21].mxu1 }
 0x123   : > { %708 = vst.msk [vmem:[%s1187_s30 + $0x48] sm:$0xff] %vm698_vm0, %v675_v20  ;;  %724 = vst.msk [vmem:[%s1187_s30 + $0xc8] sm:$0xff] %vm698_vm0, %v691_v21  ;;  %v897_v26 = vadd.f32 %v896_v24, %v895_v22  ;;  %v945_v27 = vadd.f32 %v944_v25, %v943_v23  ;;  %v898_v28 = vpop.f32.mrb[22].mxu0  ;;  %v946_v29 = vpop.f32.mrb[22].mxu1 }
 0x124   : > { %v899_v30 = vpop.f32.mrb[23].mxu0  ;;  %v947_v31 = vpop.f32.mrb[23].mxu1 }
 0x125   : > { %v580_v32 = vadd.f32 %v897_v26, %v1178_v50  ;;  %v644_v33 = vadd.f32 %v945_v27, %v1178_v50  ;;  %v900_v34 = vadd.f32 %v899_v30, %v898_v28  ;;  %v948_v35 = vadd.f32 %v947_v31, %v946_v29 }
 0x127   : > { %v676_v36 = vmax.f32 %v580_v32, 0.0  ;;  %v692_v37 = vmax.f32 %v644_v33, 0.0  ;;  %v583_v38 = vadd.f32 %v900_v34, %v1178_v50  ;;  %v647_v39 = vadd.f32 %v948_v35, %v1178_v50 }
 0x129   : > { %709 = vst.msk [vmem:[%s1187_s30 + $0x50] sm:$0xff] %vm698_vm0, %v676_v36  ;;  %725 = vst.msk [vmem:[%s1187_s30 + $0xd0] sm:$0xff] %vm698_vm0, %v692_v37  ;;  %v677_v40 = vmax.f32 %v583_v38, 0.0  ;;  %v693_v41 = vmax.f32 %v647_v39, 0.0  ;;  %v901_v42 = vpop.f32.mrb[24].mxu0  ;;  %v949_v43 = vpop.f32.mrb[24].mxu1 }
 0x12a   : > { %v902_v44 = vpop.f32.mrb[25].mxu0  ;;  %v950_v45 = vpop.f32.mrb[25].mxu1 }
 0x12b   : > { %710 = vst.msk [vmem:[%s1187_s30 + $0x58] sm:$0xff] %vm698_vm0, %v677_v40  ;;  %726 = vst.msk [vmem:[%s1187_s30 + $0xd8] sm:$0xff] %vm698_vm0, %v693_v41  ;;  %v903_v46 = vadd.f32 %v902_v44, %v901_v42  ;;  %v951_v47 = vadd.f32 %v950_v45, %v949_v43  ;;  %v904_v48 = vpop.f32.mrb[26].mxu0  ;;  %v952_v49 = vpop.f32.mrb[26].mxu1 }
 0x12c   : > { %v905_v51 = vpop.f32.mrb[27].mxu0  ;;  %v953_v52 = vpop.f32.mrb[27].mxu1 }
 0x12d   : > { %v588_v53 = vadd.f32 %v903_v46, %v1178_v50  ;;  %v652_v54 = vadd.f32 %v951_v47, %v1178_v50  ;;  %v906_v55 = vadd.f32 %v905_v51, %v904_v48  ;;  %v954_v56 = vadd.f32 %v953_v52, %v952_v49 }
 0x12f   : > { %v678_v57 = vmax.f32 %v588_v53, 0.0  ;;  %v694_v58 = vmax.f32 %v652_v54, 0.0  ;;  %v591_v59 = vadd.f32 %v906_v55, %v1178_v50  ;;  %v655_v60 = vadd.f32 %v954_v56, %v1178_v50 }
 0x131   : > { %711 = vst.msk [vmem:[%s1187_s30 + $0x60] sm:$0xff] %vm698_vm0, %v678_v57  ;;  %727 = vst.msk [vmem:[%s1187_s30 + $0xe0] sm:$0xff] %vm698_vm0, %v694_v58  ;;  %v679_v61 = vmax.f32 %v591_v59, 0.0  ;;  %v695_v62 = vmax.f32 %v655_v60, 0.0  ;;  %v907_v63 = vpop.f32.mrb[28].mxu0  ;;  %v955_v0 = vpop.f32.mrb[28].mxu1 }
 0x132   : > { %v908_v1 = vpop.f32.mrb[29].mxu0  ;;  %v956_v2 = vpop.f32.mrb[29].mxu1 }
 0x133   : > { %712 = vst.msk [vmem:[%s1187_s30 + $0x68] sm:$0xff] %vm698_vm0, %v679_v61  ;;  %728 = vst.msk [vmem:[%s1187_s30 + $0xe8] sm:$0xff] %vm698_vm0, %v695_v62  ;;  %v909_v3 = vadd.f32 %v908_v1, %v907_v63  ;;  %v957_v4 = vadd.f32 %v956_v2, %v955_v0  ;;  %v910_v5 = vpop.f32.mrb[30].mxu0  ;;  %v958_v6 = vpop.f32.mrb[30].mxu1 }
 0x134   : > { %v911_v7 = vpop.f32.mrb[31].mxu0  ;;  %v959_v8 = vpop.f32.mrb[31].mxu1 }
 0x135   : > { %v596_v9 = vadd.f32 %v909_v3, %v1178_v50  ;;  %v660_v10 = vadd.f32 %v957_v4, %v1178_v50  ;;  %v912_v11 = vadd.f32 %v911_v7, %v910_v5  ;;  %v960_v12 = vadd.f32 %v959_v8, %v958_v6 }
 0x137   : > { %v680_v13 = vmax.f32 %v596_v9, 0.0  ;;  %v696_v14 = vmax.f32 %v660_v10, 0.0  ;;  %v599_v15 = vadd.f32 %v912_v11, %v1178_v50  ;;  %v663_v16 = vadd.f32 %v960_v12, %v1178_v50 }
 0x139   : > { %713 = vst.msk [vmem:[%s1187_s30 + $0x70] sm:$0xff] %vm698_vm0, %v680_v13  ;;  %729 = vst.msk [vmem:[%s1187_s30 + $0xf0] sm:$0xff] %vm698_vm0, %v696_v14  ;;  %v681_v17 = vmax.f32 %v599_v15, 0.0  ;;  %v697_v18 = vmax.f32 %v663_v16, 0.0 }
 0x13b   : > { %714 = vst.msk [vmem:[%s1187_s30 + $0x78] sm:$0xff] %vm698_vm0, %v681_v17  ;;  %730 = vst.msk [vmem:[%s1187_s30 + $0xf8] sm:$0xff] %vm698_vm0, %v697_v18 }
 0x13c PF: > { %s13_s12 = sadd.s32 1, %s1055_s12  }
 0x13d   : > { %p10_p4 = scmp.ge.s32.totalorder %s13_s12, 4  }
 0x13f   :  { %12 = sbr.rel (!%p10_p4) target bundleno = 1 (0x1), region = 62 }

// kernel: squeeze.2
= control target key start
LH: loop header
LB: loop body
LE: loop exit
PB: predicated region body
PF: predicated region fallthrough
CT: control target
= control target key end

     0   :  { %s207_s0 = inlined_call_operand.vmem [shape: f32[128], index: 0, kind: input, shape index: {}]   ;;  %s208_s1 = inlined_call_operand.hbm [shape: f32[2,1,8,8], index: 1, kind: output, shape index: {}]  }
   0x1   :  { %v5_v0 = vld [vmem:[%s207_s0] sm:$0x1] }
   0x2   :  { %6 = vst [vmem:[#allocation2] sm:$0x1] %v5_v0 }
   0x3   :  { %2 = vsyncpa [#allocation1], 0  ;;  %s150_s0 = smov 120   ;;  %s151_s8 = smov 104   ;;  %vm8_vm0 = vcmask 64512  }
   0x4   :  { %s152_s9 = smov 112   ;;  %s153_s10 = smov 96  }
   0x5   :  { %s154_s11 = smov 88   ;;  %s155_s12 = smov 80  }
   0x6   :  { %s156_s13 = smov 72   ;;  %s157_s14 = smov 64  }
   0x7   :  { %s158_s15 = smov 56   ;;  %s159_s16 = smov 48  }
   0x8   :  { %s160_s17 = smov 40   ;;  %s161_s18 = smov 32  }
   0x9   :  { %v10_v1 = vld [vmem:[#allocation2] sm:$0x1]   ;;  %s162_s19 = smov 24   ;;  %s163_s20 = smov 16  }
   0xa   :  { %v22_v2 = vld [vmem:[#allocation2] sm:$0x1]   ;;  %11 = vrot.lane.b32.xlu0 %v10_v1, %s150_s0  ;;  %s164_s21 = smov 8   ;;  %s165_s22 = smov [#allocation0]  }
   0xb   :  { %23 = vrot.lane.b32.xlu1 %v22_v2, %s151_s8  ;;  %v16_v3 = vld [vmem:[#allocation2] sm:$0x1]   ;;  %s104_s23 = sshll.u32 %s165_s22, 4  ;;  %s105_s23 = int_to_ptr.vmem [resolvable:$true] %s104_s23 }
   0xc   :  { %v28_v4 = vld [vmem:[#allocation2] sm:$0x1]   ;;  %s126_s24 = scalar_lea.vmem %s105_s23, 256  ;;  %p131_p1 = scmp.lt.s32.totalorder %s105_s23, %s105_s23 }
   0xd   :  { %v34_v5 = vld [vmem:[#allocation2] sm:$0x1]   ;;  %p127_p0 = scmp.ne.s32.totalorder %s105_s23, %s126_s24  ;;  %p132_p2 = scmp.lt.s32.totalorder %s126_s24, %s126_s24 }
   0xe   :  { %17 = vrot.lane.b32.xlu0 %v16_v3, %s152_s9  ;;  %v40_v6 = vld [vmem:[#allocation2] sm:$0x1]  }
   0xf   :  { %29 = vrot.lane.b32.xlu1 %v28_v4, %s153_s10  ;;  %v46_v7 = vld [vmem:[#allocation2] sm:$0x1]   ;;  %p133_p3 = por %p132_p2, %p131_p1 }
  0x10   :  { %v52_v8 = vld [vmem:[#allocation2] sm:$0x1]  }
  0x11   :  { %v58_v9 = vld [vmem:[#allocation2] sm:$0x1]   ;;  %p134_p4 = pnand %p133_p3, %p127_p0 }
  0x12   :  { %35 = vrot.lane.b32.xlu0 %v34_v5, %s154_s11  ;;  %v64_v10 = vld [vmem:[#allocation2] sm:$0x1]  }
  0x13   :  { %41 = vrot.lane.b32.xlu1 %v40_v6, %s155_s12  ;;  %v7_v11 = vld [vmem:[#allocation2] sm:$0x1]  }
  0x14   :  { %9 = vst.msk [vmem:[#allocation0] sm:$0x1] %vm8_vm0, %v7_v11   ;;  %v70_v12 = vld [vmem:[#allocation2] sm:$0x1]  }
  0x15   :  { %v76_v13 = vld [vmem:[#allocation2] sm:$0x1]  }
  0x16   :  { %47 = vrot.lane.b32.xlu0 %v46_v7, %s156_s13  ;;  %v82_v14 = vld [vmem:[#allocation2] sm:$0x1]  }
  0x17   :  { %53 = vrot.lane.b32.xlu1 %v52_v8, %s157_s14  ;;  %v88_v15 = vld [vmem:[#allocation2] sm:$0x1]  }
  0x18   :  { %v94_v16 = vld [vmem:[#allocation2] sm:$0x1]  }
  0x1a   :  { %59 = vrot.lane.b32.xlu0 %v58_v9, %s158_s15 }
  0x1b   :  { %65 = vrot.lane.b32.xlu1 %v64_v10, %s159_s16 }
  0x1e   :  { %71 = vrot.lane.b32.xlu0 %v70_v12, %s160_s17 }
  0x1f   :  { %77 = vrot.lane.b32.xlu1 %v76_v13, %s161_s18 }
  0x22   :  { %83 = vrot.lane.b32.xlu0 %v82_v14, %s162_s19 }
  0x23   :  { %89 = vrot.lane.b32.xlu1 %v88_v15, %s163_s20 }
  0x26   :  { %95 = vrot.lane.b32.xlu0 %v94_v16, %s164_s21 }
  0x7c   :  { %v12_v17 = vpop.permute.xlu0 %11  }
  0x7d   :  { %v24_v18 = vpop.permute.xlu1 %23   ;;  %15 = vst.msk [vmem:[#allocation0 + $0x1] sm:$0x1] %vm8_vm0, %v12_v17  }
  0x7e   :  { %27 = vst.msk [vmem:[#allocation0 + $0x3] sm:$0x1] %vm8_vm0, %v24_v18  }
  0x80   :  { %v18_v19 = vpop.permute.xlu0 %17  }
  0x81   :  { %v30_v20 = vpop.permute.xlu1 %29   ;;  %21 = vst.msk [vmem:[#allocation0 + $0x2] sm:$0x1] %vm8_vm0, %v18_v19  }
  0x82   :  { %33 = vst.msk [vmem:[#allocation0 + $0x4] sm:$0x1] %vm8_vm0, %v30_v20  }
  0x84   :  { %v36_v21 = vpop.permute.xlu0 %35  }
  0x85   :  { %v42_v22 = vpop.permute.xlu1 %41   ;;  %39 = vst.msk [vmem:[#allocation0 + $0x5] sm:$0x1] %vm8_vm0, %v36_v21  }
  0x86   :  { %45 = vst.msk [vmem:[#allocation0 + $0x6] sm:$0x1] %vm8_vm0, %v42_v22  }
  0x88   :  { %v48_v23 = vpop.permute.xlu0 %47  }
  0x89   :  { %v54_v24 = vpop.permute.xlu1 %53   ;;  %51 = vst.msk [vmem:[#allocation0 + $0x7] sm:$0x1] %vm8_vm0, %v48_v23  }
  0x8a   :  { %57 = vst.msk [vmem:[#allocation0 + $0x8] sm:$0x1] %vm8_vm0, %v54_v24  }
  0x8c   :  { %v60_v25 = vpop.permute.xlu0 %59  }
  0x8d   :  { %v66_v26 = vpop.permute.xlu1 %65   ;;  %63 = vst.msk [vmem:[#allocation0 + $0x9] sm:$0x1] %vm8_vm0, %v60_v25  }
  0x8e   :  { %69 = vst.msk [vmem:[#allocation0 + $0xa] sm:$0x1] %vm8_vm0, %v66_v26  }
  0x90   :  { %v72_v27 = vpop.permute.xlu0 %71  }
  0x91   :  { %v78_v28 = vpop.permute.xlu1 %77   ;;  %75 = vst.msk [vmem:[#allocation0 + $0xb] sm:$0x1] %vm8_vm0, %v72_v27  }
  0x92   :  { %81 = vst.msk [vmem:[#allocation0 + $0xc] sm:$0x1] %vm8_vm0, %v78_v28  }
  0x94   :  { %v84_v29 = vpop.permute.xlu0 %83  }
  0x95   :  { %v90_v30 = vpop.permute.xlu1 %89   ;;  %87 = vst.msk [vmem:[#allocation0 + $0xd] sm:$0x1] %vm8_vm0, %v84_v29  }
  0x96   :  { %93 = vst.msk [vmem:[#allocation0 + $0xe] sm:$0x1] %vm8_vm0, %v90_v30  }
  0x98   :  { %v96_v31 = vpop.permute.xlu0 %95  }
  0x99   :  { %99 = vst.msk [vmem:[#allocation0 + $0xf] sm:$0x1] %vm8_vm0, %v96_v31  }
  0x9a   :  { %137 = shalt.err (!%p134_p4)
}
  0x9b   :  { %s138_s27 = scalar_lea.hbm %s208_s1, 256 }
  0x9c   :  { %p139_p5 = scmp.ne.s32.totalorder %s208_s1, %s138_s27  ;;  %p142_p6 = scmp.lt.u32.totalorder %s138_s27, %s208_s1 }
  0x9e   :  { %p144_p7 = pnand %p142_p6, %p139_p5 }
  0xa0   :  { %147 = shalt.err (!%p144_p7)
}
  0xa1   :  { %107 = dma.vmem_to_hbm [thread:$0]  %s105_s23, 256, %s208_s1, [#allocation1]  }
  0xa2   :  { %148 = dma.done.wait [#allocation1], 256  }
  0xa3   :  { %149 = vsyncadd [#allocation1], 4294967040 }
  0xa4   :  { %109 = vsyncpa [#allocation1], 1 }

// kernel: forward.3
= control target key start
LH: loop header
LB: loop body
LE: loop exit
PB: predicated region body
PF: predicated region fallthrough
CT: control target
= control target key end

     0   :  { %s5339_s0 = inlined_call_operand.vmem [shape: f32[9,128,64], index: 0, kind: input, shape index: {}]   ;;  %s5340_s1 = inlined_call_operand.vmem [shape: bf16[64,64], index: 1, kind: input, shape index: {}]   ;;  %s5341_s2 = inlined_call_operand.vmem [shape: bf16[64,32], index: 2, kind: input, shape index: {}]   ;;  %s5342_s3 = inlined_call_operand.vmem [shape: f32[1,32], index: 3, kind: input, shape index: {}]   ;;  %s5343_s4 = inlined_call_operand.vmem [shape: f32[1,32], index: 4, kind: input, shape index: {}]   ;;  %s5344_s5 = inlined_call_operand.vmem [shape: f32[1,32], index: 5, kind: input, shape index: {}]   ;;  %s5345_s6 = inlined_call_operand.vmem [shape: bf16[32,32], index: 6, kind: input, shape index: {}]   ;;  %s5346_s7 = inlined_call_operand.vmem [shape: f32[1,32], index: 7, kind: input, shape index: {}]   ;;  %s5347_s8 = inlined_call_operand.vmem [shape: f32[1,32], index: 8, kind: input, shape index: {}]   ;;  %s5348_s9 = inlined_call_operand.vmem [shape: f32[1,32], index: 9, kind: input, shape index: {}]   ;;  %s5349_s10 = inlined_call_operand.<no memory space> [shape: f32[1,1], index: 10, kind: input, shape index: {}]   ;;  %s5350_s12 = inlined_call_operand.vmem [shape: f32[1,5], index: 12, kind: input, shape index: {}]   ;;  %s5351_s13 = inlined_call_operand.vmem [shape: f32[1,9], index: 13, kind: input, shape index: {}]   ;;  %s5352_s14 = inlined_call_operand.vmem [shape: f32[128,2], index: 14, kind: output, shape index: {}]   ;;  %s5353_s11 = inlined_call_operand.<no memory space> [shape: f32[1,1], index: 11, kind: input, shape index: {}]  }
   0x1   :  { %v19_v0 = vstv %s5349_s10  ;;  %v21_v1 = vstv %s5353_s11 }
   0x2   :  { %20 = vst [vmem:[#allocation2] sm:$0x1] %v19_v0  ;;  %22 = vst [vmem:[#allocation3] sm:$0x1] %v21_v1 }
   0x3   :  { %s4041_s17 = smov 0   ;;  %s4043_s18 = smov 0  }
   0x4   :  { %s4045_s19 = smov 0  }
   0x5 LB: > { %s3561_s10 = sadd.s32 4294967295, %s3951_s19   ;;  %s4058_s11 = sadd.s32 1, %s3951_s19   ;;  %s3951_s19 = sphi %s4045_s19, %s5378_s19   ;;  %s3947_s18 = sphi %s4043_s18, %s5377_s18   ;;  %s3943_s17 = sphi %s4041_s17, %s5376_s17  }
   0x6   : > { %s32_s20 = ssub.s32 %s3951_s19, %s4058_s11  ;;  %s35_s21 = sadd.s32 1, %s3947_s18 }
   0x7   : > { %p33_p0 = scmp.eq.s32.totalorder %s32_s20, 0  ;;  %p42_p1 = scmp.ne.s32.totalorder %s3947_s18, %s3943_s17 }
   0x8   : > { %p43_p2 = scmp.eq.s32.totalorder %s3951_s19, 0  ;;  %p3564_p4 = scmp.ge.s32.totalorder %s3951_s19, 2 }
   0x9   : > { %s4067_s22 = scalar_select %p33_p0, %s3947_s18, %s35_s21  }
   0xa   : > { %p44_p3 = por %p43_p2, %p42_p1  ;;  %406 = sbr.rel (%p3564_p4) target bundleno = 58 (0x3a), region = 68 }
  0x11   : > { %409 = sbr.rel (!%p44_p3) target bundleno = 58 (0x3a), region = 72  ;;  %s411_s23 = sand.u32 (%p44_p3), 1, %s3947_s18  }
  0x12   : > { %s3684_s24 = sshll.u32 (%p44_p3), %s3951_s19, 6  ;;  %s3755_s25 = smul.u32 (%p44_p3), 576, %s411_s23 }
  0x13   : > { %s4075_s28 = scalar_lea.vmem (%p44_p3), %s5339_s0, %s3684_s24 }
  0x14   : > { %v586_v2 = vld [vmem:[%s4075_s28] sm:$0xff] (%p44_p3)  ;;  %v588_v3 = vld [vmem:[%s4075_s28 + $0x8] sm:$0xff] (%p44_p3)  ;;  %v590_v4 = vld [vmem:[%s4075_s28 + $0x10] sm:$0xff] (%p44_p3)  ;;  %s4083_s29 = scalar_lea.vmem (%p44_p3), [#allocation4], %s3755_s25 }
  0x15   : > { %v592_v5 = vld [vmem:[%s4075_s28 + $0x18] sm:$0xff] (%p44_p3)  ;;  %v594_v6 = vld [vmem:[%s4075_s28 + $0x20] sm:$0xff] (%p44_p3)  ;;  %v596_v7 = vld [vmem:[%s4075_s28 + $0x28] sm:$0xff] (%p44_p3)  ;;  %587 = vst [vmem:[%s4083_s29] sm:$0xff] (%p44_p3), %v586_v2 }
  0x16   : > { %589 = vst [vmem:[%s4083_s29 + $0x8] sm:$0xff] (%p44_p3), %v588_v3  ;;  %591 = vst [vmem:[%s4083_s29 + $0x10] sm:$0xff] (%p44_p3), %v590_v4  ;;  %v598_v8 = vld [vmem:[%s4075_s28 + $0x30] sm:$0xff] (%p44_p3)  ;;  %v600_v9 = vld [vmem:[%s4075_s28 + $0x38] sm:$0xff] (%p44_p3) }
  0x17   : > { %593 = vst [vmem:[%s4083_s29 + $0x18] sm:$0xff] (%p44_p3), %v592_v5  ;;  %595 = vst [vmem:[%s4083_s29 + $0x20] sm:$0xff] (%p44_p3), %v594_v6  ;;  %v602_v10 = vld [vmem:[%s4075_s28 + $0x80] sm:$0xff] (%p44_p3)  ;;  %v604_v11 = vld [vmem:[%s4075_s28 + $0x88] sm:$0xff] (%p44_p3) }
  0x18   : > { %597 = vst [vmem:[%s4083_s29 + $0x28] sm:$0xff] %v596_v7  ;;  %599 = vst [vmem:[%s4083_s29 + $0x30] sm:$0xff] %v598_v8  ;;  %v606_v12 = vld [vmem:[%s4075_s28 + $0x90] sm:$0xff]  ;;  %v608_v13 = vld [vmem:[%s4075_s28 + $0x98] sm:$0xff] }
  0x19   : > { %601 = vst [vmem:[%s4083_s29 + $0x38] sm:$0xff] %v600_v9  ;;  %603 = vst [vmem:[%s4083_s29 + $0x40] sm:$0xff] %v602_v10  ;;  %v610_v14 = vld [vmem:[%s4075_s28 + $0xa0] sm:$0xff]  ;;  %v612_v15 = vld [vmem:[%s4075_s28 + $0xa8] sm:$0xff] }
  0x1a   : > { %605 = vst [vmem:[%s4083_s29 + $0x48] sm:$0xff] %v604_v11  ;;  %607 = vst [vmem:[%s4083_s29 + $0x50] sm:$0xff] %v606_v12  ;;  %v614_v16 = vld [vmem:[%s4075_s28 + $0xb0] sm:$0xff]  ;;  %v616_v17 = vld [vmem:[%s4075_s28 + $0xb8] sm:$0xff] }
  0x1b   : > { %609 = vst [vmem:[%s4083_s29 + $0x58] sm:$0xff] %v608_v13  ;;  %611 = vst [vmem:[%s4083_s29 + $0x60] sm:$0xff] %v610_v14  ;;  %v618_v18 = vld [vmem:[%s4075_s28 + $0x100] sm:$0xff]  ;;  %v620_v19 = vld [vmem:[%s4075_s28 + $0x108] sm:$0xff] }
  0x1c   : > { %613 = vst [vmem:[%s4083_s29 + $0x68] sm:$0xff] %v612_v15  ;;  %615 = vst [vmem:[%s4083_s29 + $0x70] sm:$0xff] %v614_v16  ;;  %v622_v20 = vld [vmem:[%s4075_s28 + $0x110] sm:$0xff]  ;;  %v624_v21 = vld [vmem:[%s4075_s28 + $0x118] sm:$0xff] }
  0x1d   : > { %617 = vst [vmem:[%s4083_s29 + $0x78] sm:$0xff] %v616_v17  ;;  %619 = vst [vmem:[%s4083_s29 + $0x80] sm:$0xff] %v618_v18  ;;  %v626_v22 = vld [vmem:[%s4075_s28 + $0x120] sm:$0xff]  ;;  %v628_v23 = vld [vmem:[%s4075_s28 + $0x128] sm:$0xff] }
  0x1e   : > { %621 = vst [vmem:[%s4083_s29 + $0x88] sm:$0xff] %v620_v19  ;;  %623 = vst [vmem:[%s4083_s29 + $0x90] sm:$0xff] %v622_v20  ;;  %v630_v24 = vld [vmem:[%s4075_s28 + $0x130] sm:$0xff]  ;;  %v632_v25 = vld [vmem:[%s4075_s28 + $0x138] sm:$0xff] }
  0x1f   : > { %625 = vst [vmem:[%s4083_s29 + $0x98] sm:$0xff] %v624_v21  ;;  %627 = vst [vmem:[%s4083_s29 + $0xa0] sm:$0xff] %v626_v22  ;;  %v634_v26 = vld [vmem:[%s4075_s28 + $0x180] sm:$0xff]  ;;  %v636_v27 = vld [vmem:[%s4075_s28 + $0x188] sm:$0xff] }
  0x20   : > { %629 = vst [vmem:[%s4083_s29 + $0xa8] sm:$0xff] %v628_v23  ;;  %631 = vst [vmem:[%s4083_s29 + $0xb0] sm:$0xff] %v630_v24  ;;  %v638_v28 = vld [vmem:[%s4075_s28 + $0x190] sm:$0xff]  ;;  %v640_v29 = vld [vmem:[%s4075_s28 + $0x198] sm:$0xff] }
  0x21   : > { %633 = vst [vmem:[%s4083_s29 + $0xb8] sm:$0xff] %v632_v25  ;;  %635 = vst [vmem:[%s4083_s29 + $0xc0] sm:$0xff] %v634_v26  ;;  %v642_v30 = vld [vmem:[%s4075_s28 + $0x1a0] sm:$0xff]  ;;  %v644_v31 = vld [vmem:[%s4075_s28 + $0x1a8] sm:$0xff] }
  0x22   : > { %637 = vst [vmem:[%s4083_s29 + $0xc8] sm:$0xff] %v636_v27  ;;  %639 = vst [vmem:[%s4083_s29 + $0xd0] sm:$0xff] %v638_v28  ;;  %v646_v32 = vld [vmem:[%s4075_s28 + $0x1b0] sm:$0xff]  ;;  %v648_v33 = vld [vmem:[%s4075_s28 + $0x1b8] sm:$0xff] }
  0x23   : > { %641 = vst [vmem:[%s4083_s29 + $0xd8] sm:$0xff] %v640_v29  ;;  %643 = vst [vmem:[%s4083_s29 + $0xe0] sm:$0xff] %v642_v30  ;;  %v650_v34 = vld [vmem:[%s4075_s28 + $0x200] sm:$0xff]  ;;  %v652_v35 = vld [vmem:[%s4075_s28 + $0x208] sm:$0xff] }
  0x24   : > { %645 = vst [vmem:[%s4083_s29 + $0xe8] sm:$0xff] %v644_v31  ;;  %647 = vst [vmem:[%s4083_s29 + $0xf0] sm:$0xff] %v646_v32  ;;  %v654_v36 = vld [vmem:[%s4075_s28 + $0x210] sm:$0xff]  ;;  %v656_v37 = vld [vmem:[%s4075_s28 + $0x218] sm:$0xff] }
  0x25   : > { %649 = vst [vmem:[%s4083_s29 + $0xf8] sm:$0xff] %v648_v33  ;;  %651 = vst [vmem:[%s4083_s29 + $0x100] sm:$0xff] %v650_v34  ;;  %v658_v38 = vld [vmem:[%s4075_s28 + $0x220] sm:$0xff]  ;;  %v660_v39 = vld [vmem:[%s4075_s28 + $0x228] sm:$0xff] }
  0x26   : > { %653 = vst [vmem:[%s4083_s29 + $0x108] sm:$0xff] %v652_v35  ;;  %655 = vst [vmem:[%s4083_s29 + $0x110] sm:$0xff] %v654_v36  ;;  %v662_v40 = vld [vmem:[%s4075_s28 + $0x230] sm:$0xff]  ;;  %v664_v41 = vld [vmem:[%s4075_s28 + $0x238] sm:$0xff] }
  0x27   : > { %657 = vst [vmem:[%s4083_s29 + $0x118] sm:$0xff] %v656_v37  ;;  %659 = vst [vmem:[%s4083_s29 + $0x120] sm:$0xff] %v658_v38  ;;  %v666_v42 = vld [vmem:[%s4075_s28 + $0x280] sm:$0xff]  ;;  %v668_v43 = vld [vmem:[%s4075_s28 + $0x288] sm:$0xff] }
  0x28   : > { %661 = vst [vmem:[%s4083_s29 + $0x128] sm:$0xff] %v660_v39  ;;  %663 = vst [vmem:[%s4083_s29 + $0x130] sm:$0xff] %v662_v40  ;;  %v670_v44 = vld [vmem:[%s4075_s28 + $0x290] sm:$0xff]  ;;  %v672_v45 = vld [vmem:[%s4075_s28 + $0x298] sm:$0xff] }
  0x29   : > { %665 = vst [vmem:[%s4083_s29 + $0x138] sm:$0xff] %v664_v41  ;;  %667 = vst [vmem:[%s4083_s29 + $0x140] sm:$0xff] %v666_v42  ;;  %v674_v46 = vld [vmem:[%s4075_s28 + $0x2a0] sm:$0xff]  ;;  %v676_v47 = vld [vmem:[%s4075_s28 + $0x2a8] sm:$0xff] }
  0x2a   : > { %669 = vst [vmem:[%s4083_s29 + $0x148] sm:$0xff] %v668_v43  ;;  %671 = vst [vmem:[%s4083_s29 + $0x150] sm:$0xff] %v670_v44  ;;  %v678_v48 = vld [vmem:[%s4075_s28 + $0x2b0] sm:$0xff]  ;;  %v680_v49 = vld [vmem:[%s4075_s28 + $0x2b8] sm:$0xff] }
  0x2b   : > { %673 = vst [vmem:[%s4083_s29 + $0x158] sm:$0xff] %v672_v45  ;;  %675 = vst [vmem:[%s4083_s29 + $0x160] sm:$0xff] %v674_v46  ;;  %v682_v50 = vld [vmem:[%s4075_s28 + $0x300] sm:$0xff]  ;;  %v684_v51 = vld [vmem:[%s4075_s28 + $0x308] sm:$0xff] }
  0x2c   : > { %677 = vst [vmem:[%s4083_s29 + $0x168] sm:$0xff] %v676_v47  ;;  %679 = vst [vmem:[%s4083_s29 + $0x170] sm:$0xff] %v678_v48  ;;  %v686_v52 = vld [vmem:[%s4075_s28 + $0x310] sm:$0xff]  ;;  %v688_v53 = vld [vmem:[%s4075_s28 + $0x318] sm:$0xff] }
  0x2d   : > { %681 = vst [vmem:[%s4083_s29 + $0x178] sm:$0xff] %v680_v49  ;;  %683 = vst [vmem:[%s4083_s29 + $0x180] sm:$0xff] %v682_v50  ;;  %v690_v54 = vld [vmem:[%s4075_s28 + $0x320] sm:$0xff]  ;;  %v692_v55 = vld [vmem:[%s4075_s28 + $0x328] sm:$0xff] }
  0x2e   : > { %685 = vst [vmem:[%s4083_s29 + $0x188] sm:$0xff] %v684_v51  ;;  %687 = vst [vmem:[%s4083_s29 + $0x190] sm:$0xff] %v686_v52  ;;  %v694_v56 = vld [vmem:[%s4075_s28 + $0x330] sm:$0xff]  ;;  %v696_v57 = vld [vmem:[%s4075_s28 + $0x338] sm:$0xff] }
  0x2f   : > { %689 = vst [vmem:[%s4083_s29 + $0x198] sm:$0xff] %v688_v53  ;;  %691 = vst [vmem:[%s4083_s29 + $0x1a0] sm:$0xff] %v690_v54  ;;  %v698_v58 = vld [vmem:[%s4075_s28 + $0x380] sm:$0xff]  ;;  %v700_v59 = vld [vmem:[%s4075_s28 + $0x388] sm:$0xff] }
  0x30   : > { %693 = vst [vmem:[%s4083_s29 + $0x1a8] sm:$0xff] %v692_v55  ;;  %695 = vst [vmem:[%s4083_s29 + $0x1b0] sm:$0xff] %v694_v56  ;;  %v702_v60 = vld [vmem:[%s4075_s28 + $0x390] sm:$0xff]  ;;  %v704_v61 = vld [vmem:[%s4075_s28 + $0x398] sm:$0xff] }
  0x31   : > { %697 = vst [vmem:[%s4083_s29 + $0x1b8] sm:$0xff] %v696_v57  ;;  %699 = vst [vmem:[%s4083_s29 + $0x1c0] sm:$0xff] %v698_v58  ;;  %v706_v62 = vld [vmem:[%s4075_s28 + $0x3a0] sm:$0xff]  ;;  %v708_v63 = vld [vmem:[%s4075_s28 + $0x3a8] sm:$0xff] }
  0x32   : > { %701 = vst [vmem:[%s4083_s29 + $0x1c8] sm:$0xff] %v700_v59  ;;  %703 = vst [vmem:[%s4083_s29 + $0x1d0] sm:$0xff] %v702_v60  ;;  %v710_v0 = vld [vmem:[%s4075_s28 + $0x3b0] sm:$0xff]  ;;  %v712_v1 = vld [vmem:[%s4075_s28 + $0x3b8] sm:$0xff] }
  0x33   : > { %705 = vst [vmem:[%s4083_s29 + $0x1d8] sm:$0xff] %v704_v61  ;;  %707 = vst [vmem:[%s4083_s29 + $0x1e0] sm:$0xff] %v706_v62  ;;  %v714_v2 = vld [vmem:[%s4075_s28 + $0x400] sm:$0xff]  ;;  %v716_v3 = vld [vmem:[%s4075_s28 + $0x408] sm:$0xff] }
  0x34   : > { %709 = vst [vmem:[%s4083_s29 + $0x1e8] sm:$0xff] %v708_v63  ;;  %711 = vst [vmem:[%s4083_s29 + $0x1f0] sm:$0xff] %v710_v0  ;;  %v718_v4 = vld [vmem:[%s4075_s28 + $0x410] sm:$0xff]  ;;  %v720_v5 = vld [vmem:[%s4075_s28 + $0x418] sm:$0xff] }
  0x35   : > { %713 = vst [vmem:[%s4083_s29 + $0x1f8] sm:$0xff] %v712_v1  ;;  %715 = vst [vmem:[%s4083_s29 + $0x200] sm:$0xff] %v714_v2  ;;  %v722_v6 = vld [vmem:[%s4075_s28 + $0x420] sm:$0xff]  ;;  %v724_v7 = vld [vmem:[%s4075_s28 + $0x428] sm:$0xff] }
  0x36   : > { %717 = vst [vmem:[%s4083_s29 + $0x208] sm:$0xff] %v716_v3  ;;  %719 = vst [vmem:[%s4083_s29 + $0x210] sm:$0xff] %v718_v4  ;;  %v726_v8 = vld [vmem:[%s4075_s28 + $0x430] sm:$0xff]  ;;  %v728_v9 = vld [vmem:[%s4075_s28 + $0x438] sm:$0xff] }
  0x37   : > { %721 = vst [vmem:[%s4083_s29 + $0x218] sm:$0xff] %v720_v5  ;;  %723 = vst [vmem:[%s4083_s29 + $0x220] sm:$0xff] %v722_v6 }
  0x38   : > { %725 = vst [vmem:[%s4083_s29 + $0x228] sm:$0xff] %v724_v7  ;;  %727 = vst [vmem:[%s4083_s29 + $0x230] sm:$0xff] %v726_v8 }
  0x39   : > { %729 = vst [vmem:[%s4083_s29 + $0x238] sm:$0xff] %v728_v9 }
  0x3a PF: > { %p3567_p5 = scmp.ge.s32.totalorder %s3951_s19, 1  ;;  %p734_p6 = scmp.lt.s32.totalorder %s3951_s19, 3 }
  0x3c   : > { %p735_p7 = pnand %p3567_p5, %p734_p6 }
  0x3d   : > { %v3822_v10 = vld [vmem:[%s5340_s1] sm:$0xff] (!%p735_p7)   ;;  %s741_s16 = sand.u32 (!%p735_p7), 1, %s3943_s17   ;;  %v3823_v11 = vld [vmem:[%s5340_s1 + $0x8] sm:$0xff] (!%p735_p7)   ;;  %vm866_vm0 = vcmask (!%p735_p7), 523264   ;;  %v3824_v12 = vld [vmem:[%s5340_s1 + $0x10] sm:$0xff] (!%p735_p7)   ;;  %vm1301_vm1 = vcmask (!%p735_p7), 261120  }
  0x3e   : > { %738 = sbr.rel (%p735_p7) target bundleno = 1667 (0x683), region = 110  ;;  %3707 = vmatprep.subr.bf16.mxu0 (!%p735_p7), %v3822_v10  ;;  %v3825_v34 = vld [vmem:[%s5340_s1 + $0x18] sm:$0xff] (!%p735_p7)   ;;  %vm1696_vm2 = vcmask (!%p735_p7), 72704   ;;  %vm1552_vm3 = vcmask (!%p735_p7), 39936  }
  0x3f   : > { %s3756_s23 = smul.u32 (!%p735_p7), 576, %s741_s16  ;;  %3708 = vmatpush3.bf16.msra.mxu0 (!%p735_p7), %v3822_v10  ;;  %s5118_s16 = sshll.u32 (!%p735_p7), %s3561_s10, 3 }
  0x40   : > { %3709 = vmatprep.subr.bf16.mxu0 (!%p735_p7), %v3823_v11  ;;  %p788_p8 = scmp.lt.s32.totalorder (!%p735_p7), %s5118_s16, 15 }
  0x41   : > { %s4235_s26 = scalar_lea.vmem (!%p735_p7), [#allocation4], %s3756_s23 }
  0x42   : > { %v794_v13 = vld [vmem:[%s4235_s26] sm:$0xff] (!%p735_p7)  ;;  %v795_v14 = vld [vmem:[%s4235_s26 + $0x8] sm:$0xff] (!%p735_p7)  ;;  %v796_v49 = vld [vmem:[%s4235_s26 + $0x10] sm:$0xff] (!%p735_p7) }
  0x43   : > { %v802_v15 = vld [vmem:[%s4235_s26 + $0x40] sm:$0xff] (!%p735_p7)  ;;  %v803_v16 = vld [vmem:[%s4235_s26 + $0x48] sm:$0xff] (!%p735_p7)  ;;  %v867_v19 = vsel (!%p735_p7), %vm866_vm0, %v794_v13, -inf  ;;  %v884_v21 = vsel (!%p735_p7), %vm866_vm0, %v795_v14, -inf  ;;  %3710 = vmatpush3.bf16.msra.mxu0 (!%p735_p7), %v3823_v11  ;;  %v797_v50 = vld [vmem:[%s4235_s26 + $0x18] sm:$0xff] (!%p735_p7)  ;;  %v901_v56 = vsel (!%p735_p7), %vm866_vm0, %v796_v49, -inf }
  0x44   : > { %v810_v17 = vld [vmem:[%s4235_s26 + $0x80] sm:$0xff] (!%p735_p7)  ;;  %v811_v18 = vld [vmem:[%s4235_s26 + $0x88] sm:$0xff] (!%p735_p7)  ;;  %v868_v20 = vsel (!%p735_p7), %vm866_vm0, %v802_v15, -inf  ;;  %v885_v27 = vsel (!%p735_p7), %vm866_vm0, %v803_v16, -inf  ;;  %3711 = vmatprep.subr.bf16.mxu0 (!%p735_p7), %v3824_v12  ;;  %v804_v51 = vld [vmem:[%s4235_s26 + $0x50] sm:$0xff] (!%p735_p7)  ;;  %v918_v58 = vsel (!%p735_p7), %vm866_vm0, %v797_v50, -inf }
  0x45   : > { %v818_v22 = vld [vmem:[%s4235_s26 + $0xc0] sm:$0xff]  ;;  %v819_v23 = vld [vmem:[%s4235_s26 + $0xc8] sm:$0xff]  ;;  %v869_v25 = vmax.f32 %v867_v19, %v868_v20  ;;  %v870_v26 = vsel %vm866_vm0, %v810_v17, -inf  ;;  %v887_v28 = vsel %vm866_vm0, %v811_v18, -inf  ;;  %v886_v33 = vmax.f32 %v884_v21, %v885_v27  ;;  %v805_v53 = vld [vmem:[%s4235_s26 + $0x58] sm:$0xff]  ;;  %s5380_s16 = smov (!%p788_p8, %s5118_s16), 15 }
  0x46   : > { %v826_v24 = vld [vmem:[%s4235_s26 + $0x100] sm:$0xff]  ;;  %v827_v29 = vld [vmem:[%s4235_s26 + $0x108] sm:$0xff]  ;;  %v872_v32 = vsel %vm866_vm0, %v818_v22, -inf  ;;  %v889_v38 = vsel %vm866_vm0, %v819_v23, -inf  ;;  %v812_v54 = vld [vmem:[%s4235_s26 + $0x90] sm:$0xff]  ;;  %v902_v57 = vsel %vm866_vm0, %v804_v51, -inf }
  0x47   : > { %v834_v30 = vld [vmem:[%s4235_s26 + $0x140] sm:$0xff]  ;;  %v835_v31 = vld [vmem:[%s4235_s26 + $0x148] sm:$0xff]  ;;  %v871_v37 = vmax.f32 %v869_v25, %v870_v26  ;;  %v874_v41 = vsel %vm866_vm0, %v826_v24, -inf  ;;  %v888_v43 = vmax.f32 %v886_v33, %v887_v28  ;;  %v891_v44 = vsel %vm866_vm0, %v827_v29, -inf  ;;  %3712 = vmatpush3.bf16.msra.mxu0 %v3824_v12  ;;  %v813_v55 = vld [vmem:[%s4235_s26 + $0x98] sm:$0xff]  ;;  %s3569_s19 = sshll.u32 %s5380_s16, 3 }
  0x48   : > { %v842_v35 = vld [vmem:[%s4235_s26 + $0x180] sm:$0xff]  ;;  %v843_v39 = vld [vmem:[%s4235_s26 + $0x188] sm:$0xff]  ;;  %v876_v42 = vsel %vm866_vm0, %v834_v30, -inf  ;;  %v893_v48 = vsel %vm866_vm0, %v835_v31, -inf  ;;  %3713 = vmatprep.subr.bf16.mxu0 %v3825_v34  ;;  %v820_v61 = vld [vmem:[%s4235_s26 + $0xd0] sm:$0xff]  ;;  %v903_v63 = vmax.f32 %v901_v56, %v902_v57  ;;  %v904_v0 = vsel %vm866_vm0, %v812_v54, -inf  ;;  %s5199_s21 = scalar_lea.vmem %s5352_s14, %s3569_s19 }
  0x49   : > { %v850_v36 = vld [vmem:[%s4235_s26 + $0x1c0] sm:$0xff]  ;;  %v873_v45 = vmax.f32 %v871_v37, %v872_v32  ;;  %v878_v46 = vsel %vm866_vm0, %v842_v35, -inf  ;;  %v890_v52 = vmax.f32 %v888_v43, %v889_v38  ;;  %v851_v59 = vld [vmem:[%s4235_s26 + $0x1c8] sm:$0xff]  ;;  %v828_v62 = vld [vmem:[%s4235_s26 + $0x110] sm:$0xff]  ;;  %v919_v1 = vsel %vm866_vm0, %v805_v53, -inf }
  0x4a   : > { %v858_v40 = vld [vmem:[%s4235_s26 + $0x200] sm:$0xff]  ;;  %v4269_v47 = vsel %vm866_vm0, %v850_v36, -inf  ;;  %v859_v2 = vld [vmem:[%s4235_s26 + $0x208] sm:$0xff]  ;;  %v895_v4 = vsel %vm866_vm0, %v843_v39, -inf  ;;  %v821_v5 = vld [vmem:[%s4235_s26 + $0xd8] sm:$0xff]  ;;  %v906_v6 = vsel %vm866_vm0, %v820_v61, -inf  ;;  %v920_v7 = vmax.f32 %v918_v58, %v919_v1 }
  0x4b   : > { %v875_v60 = vmax.f32 %v873_v45, %v874_v41  ;;  %v892_v3 = vmax.f32 %v890_v52, %v891_v44  ;;  %v882_v9 = vsel %vm866_vm0, %v858_v40, -inf  ;;  %v829_v10 = vld [vmem:[%s4235_s26 + $0x118] sm:$0xff]  ;;  %v836_v11 = vld [vmem:[%s4235_s26 + $0x150] sm:$0xff]  ;;  %v905_v12 = vmax.f32 %v903_v63, %v904_v0  ;;  %3714 = vmatpush3.bf16.msra.mxu0 %v3825_v34  ;;  %v798_v25 = vld [vmem:[%s4235_s26 + $0x20] sm:$0xff] }
  0x4c   : > { %v921_v13 = vsel %vm866_vm0, %v813_v55, -inf  ;;  %v897_v15 = vsel %vm866_vm0, %v851_v59, -inf  ;;  %v837_v16 = vld [vmem:[%s4235_s26 + $0x158] sm:$0xff]  ;;  %v844_v17 = vld [vmem:[%s4235_s26 + $0x190] sm:$0xff]  ;;  %v908_v18 = vsel %vm866_vm0, %v828_v62, -inf  ;;  %v899_v21 = vsel %vm866_vm0, %v859_v2, -inf }
  0x4d   : > { %v877_v8 = vmax.f32 %v875_v60, %v876_v42  ;;  %v894_v14 = vmax.f32 %v892_v3, %v893_v48  ;;  %v922_v19 = vmax.f32 %v920_v7, %v921_v13  ;;  %v845_v22 = vld [vmem:[%s4235_s26 + $0x198] sm:$0xff]  ;;  %v907_v23 = vmax.f32 %v905_v12, %v906_v6  ;;  %v806_v30 = vld [vmem:[%s4235_s26 + $0x60] sm:$0xff]  ;;  %v852_v33 = vld [vmem:[%s4235_s26 + $0x1d0] sm:$0xff] }
  0x4e   : > { %v923_v24 = vsel %vm866_vm0, %v821_v5, -inf  ;;  %v910_v27 = vsel %vm866_vm0, %v836_v11, -inf  ;;  %v925_v29 = vsel %vm866_vm0, %v829_v10, -inf  ;;  %v814_v31 = vld [vmem:[%s4235_s26 + $0xa0] sm:$0xff]  ;;  %v912_v35 = vsel %vm866_vm0, %v844_v17, -inf  ;;  %v853_v38 = vld [vmem:[%s4235_s26 + $0x1d8] sm:$0xff] }
  0x4f   : > { %v879_v20 = vmax.f32 %v877_v8, %v878_v46  ;;  %v896_v26 = vmax.f32 %v894_v14, %v895_v4  ;;  %v924_v28 = vmax.f32 %v922_v19, %v923_v24  ;;  %v909_v34 = vmax.f32 %v907_v23, %v908_v18  ;;  %v860_v39 = vld [vmem:[%s4235_s26 + $0x210] sm:$0xff]  ;;  %v822_v42 = vld [vmem:[%s4235_s26 + $0xe0] sm:$0xff]  ;;  %v861_v45 = vld [vmem:[%s4235_s26 + $0x218] sm:$0xff] }
  0x50   : > { %v927_v36 = vsel %vm866_vm0, %v837_v16, -inf  ;;  %v929_v41 = vsel %vm866_vm0, %v845_v22, -inf  ;;  %v935_v43 = vsel %vm866_vm0, %v798_v25, -inf  ;;  %v938_v48 = vsel %vm866_vm0, %v814_v31, -inf  ;;  %v799_v52 = vld [vmem:[%s4235_s26 + $0x28] sm:$0xff]  ;;  %v830_v54 = vld [vmem:[%s4235_s26 + $0x120] sm:$0xff] }
  0x51   : > { %v881_v32 = vmax.f32 %v879_v20, %v4269_v47  ;;  %v898_v37 = vmax.f32 %v896_v26, %v897_v15  ;;  %v926_v40 = vmax.f32 %v924_v28, %v925_v29  ;;  %v911_v46 = vmax.f32 %v909_v34, %v910_v27  ;;  %v807_v53 = vld [vmem:[%s4235_s26 + $0x68] sm:$0xff]  ;;  %v838_v1 = vld [vmem:[%s4235_s26 + $0x160] sm:$0xff]  ;;  %v800_v14 = vld [vmem:[%s4235_s26 + $0x30] sm:$0xff] }
  0x52   : > { %v936_v47 = vsel %vm866_vm0, %v806_v30, -inf  ;;  %v914_v50 = vsel %vm866_vm0, %v852_v33, -inf  ;;  %v916_v57 = vsel %vm866_vm0, %v860_v39, -inf  ;;  %v931_v58 = vsel %vm866_vm0, %v853_v38, -inf  ;;  %v815_v59 = vld [vmem:[%s4235_s26 + $0xa8] sm:$0xff]  ;;  %v846_v2 = vld [vmem:[%s4235_s26 + $0x1a0] sm:$0xff] }
  0x53   : > { %v883_v44 = vmax.f32 %v881_v32, %v882_v9  ;;  %v900_v49 = vmax.f32 %v898_v37, %v899_v21  ;;  %v928_v51 = vmax.f32 %v926_v40, %v927_v36  ;;  %v937_v55 = vmax.f32 %v935_v43, %v936_v47  ;;  %v823_v0 = vld [vmem:[%s4235_s26 + $0xe8] sm:$0xff]  ;;  %v854_v5 = vld [vmem:[%s4235_s26 + $0x1e0] sm:$0xff]  ;;  %v808_v15 = vld [vmem:[%s4235_s26 + $0x70] sm:$0xff] }
  0x54   : > { %v913_v56 = vmax.f32 %v911_v46, %v912_v35  ;;  %v940_v60 = vsel %vm866_vm0, %v822_v42, -inf  ;;  %v933_v63 = vsel %vm866_vm0, %v861_v45, -inf  ;;  %v942_v6 = vsel %vm866_vm0, %v830_v54, -inf  ;;  %v831_v10 = vld [vmem:[%s4235_s26 + $0x128] sm:$0xff]  ;;  %v862_v18 = vld [vmem:[%s4235_s26 + $0x220] sm:$0xff]  ;;  %v801_v27 = vld [vmem:[%s4235_s26 + $0x38] sm:$0xff] }
  0x55   : > { %v1003_v61 = vpack.c.bf16 %v900_v49, %v883_v44  ;;  %v930_v62 = vmax.f32 %v928_v51, %v929_v41  ;;  %v939_v3 = vmax.f32 %v937_v55, %v938_v48  ;;  %v952_v7 = vsel %vm866_vm0, %v799_v52, -inf  ;;  %v839_v17 = vld [vmem:[%s4235_s26 + $0x168] sm:$0xff]  ;;  %v809_v28 = vld [vmem:[%s4235_s26 + $0x78] sm:$0xff]  ;;  %v816_v29 = vld [vmem:[%s4235_s26 + $0xb0] sm:$0xff] }
  0x56   : > { %v915_v4 = vmax.f32 %v913_v56, %v914_v50  ;;  %v953_v8 = vsel %vm866_vm0, %v807_v53, -inf  ;;  %v955_v13 = vsel %vm866_vm0, %v815_v59, -inf  ;;  %v944_v19 = vsel %vm866_vm0, %v838_v1, -inf  ;;  %v847_v23 = vld [vmem:[%s4235_s26 + $0x1a8] sm:$0xff]  ;;  %v824_v30 = vld [vmem:[%s4235_s26 + $0xf0] sm:$0xff]  ;;  %v817_v39 = vld [vmem:[%s4235_s26 + $0xb8] sm:$0xff] }
  0x57   : > { %3715 = vmatprep.mubr.msk.bf16.mxu0 %vm866_vm0, %v1003_v61  ;;  %v932_v9 = vmax.f32 %v930_v62, %v931_v58  ;;  %v941_v11 = vmax.f32 %v939_v3, %v940_v60  ;;  %v954_v12 = vmax.f32 %v952_v7, %v953_v8  ;;  %v946_v20 = vsel %vm866_vm0, %v846_v2, -inf  ;;  %v832_v32 = vld [vmem:[%s4235_s26 + $0x130] sm:$0xff]  ;;  %v855_v36 = vld [vmem:[%s4235_s26 + $0x1e8] sm:$0xff]  ;;  %v825_v40 = vld [vmem:[%s4235_s26 + $0xf8] sm:$0xff] }
  0x58   : > { %v917_v16 = vmax.f32 %v915_v4, %v916_v57  ;;  %v957_v21 = vsel %vm866_vm0, %v823_v0, -inf  ;;  %v948_v25 = vsel %vm866_vm0, %v854_v5, -inf  ;;  %v959_v31 = vsel %vm866_vm0, %v831_v10, -inf  ;;  %v3826_v42 = vld [vmem:[%s5341_s2] sm:$0xff]   ;;  %v840_v44 = vld [vmem:[%s4235_s26 + $0x170] sm:$0xff]  ;;  %v863_v47 = vld [vmem:[%s4235_s26 + $0x228] sm:$0xff] }
  0x59   : > { %v934_v22 = vmax.f32 %v932_v9, %v933_v63  ;;  %v943_v24 = vmax.f32 %v941_v11, %v942_v6  ;;  %v956_v26 = vmax.f32 %v954_v12, %v955_v13  ;;  %v969_v33 = vsel %vm866_vm0, %v800_v14, -inf  ;;  %v833_v51 = vld [vmem:[%s4235_s26 + $0x138] sm:$0xff]  ;;  %3723 = vmatprep.subr.bf16.mxu1 %v3826_v42  ;;  %v3827_v53 = vld [vmem:[%s5341_s2 + $0x8] sm:$0xff]   ;;  %v848_v55 = vld [vmem:[%s4235_s26 + $0x1b0] sm:$0xff] }
  0x5a   : > { %v970_v34 = vsel %vm866_vm0, %v808_v15, -inf  ;;  %v961_v43 = vsel %vm866_vm0, %v839_v17, -inf  ;;  %v972_v45 = vsel %vm866_vm0, %v816_v29, -inf  ;;  %v974_v46 = vsel %vm866_vm0, %v824_v30, -inf  ;;  %3724 = vmatpush3.bf16.msra.mxu1 %v3826_v42  ;;  %v3828_v59 = vld [vmem:[%s5341_s2 + $0x10] sm:$0xff]   ;;  %v841_v62 = vld [vmem:[%s4235_s26 + $0x178] sm:$0xff] }
  0x5b   : > { %v1004_v35 = vpack.c.bf16 %v934_v22, %v917_v16  ;;  %v945_v37 = vmax.f32 %v943_v24, %v944_v19  ;;  %v958_v38 = vmax.f32 %v956_v26, %v957_v21  ;;  %v971_v41 = vmax.f32 %v969_v33, %v970_v34  ;;  %3725 = vmatprep.subr.bf16.mxu1 %v3827_v53  ;;  %v856_v6 = vld [vmem:[%s4235_s26 + $0x1f0] sm:$0xff]  ;;  %v849_v14 = vld [vmem:[%s4235_s26 + $0x1b8] sm:$0xff] }
  0x5c   : > { %v950_v49 = vsel %vm866_vm0, %v862_v18, -inf  ;;  %v963_v54 = vsel %vm866_vm0, %v847_v23, -inf  ;;  %v976_v56 = vsel %vm866_vm0, %v832_v32, -inf  ;;  %v986_v57 = vsel %vm866_vm0, %v801_v27, -inf  ;;  %v864_v21 = vld [vmem:[%s4235_s26 + $0x230] sm:$0xff]  ;;  %v865_v26 = vld [vmem:[%s4235_s26 + $0x238] sm:$0xff] }
  0x5d   : > { %3716 = vmatmul.mubr.msk.bf16.vlgmr.msra.gmra.mrb[0].mxu0 %vm866_vm0, %v1004_v35  ;;  %v947_v48 = vmax.f32 %v945_v37, %v946_v20  ;;  %v960_v50 = vmax.f32 %v958_v38, %v959_v31  ;;  %v973_v52 = vmax.f32 %v971_v41, %v972_v45  ;;  %v987_v58 = vsel %vm866_vm0, %v809_v28, -inf  ;;  %v857_v20 = vld [vmem:[%s4235_s26 + $0x1f8] sm:$0xff] }
  0x5e   : > { %v988_v0 = vmax.f32 %v986_v57, %v987_v58  ;;  %v965_v1 = vsel %vm866_vm0, %v855_v36, -inf  ;;  %v978_v2 = vsel %vm866_vm0, %v840_v44, -inf  ;;  %v989_v3 = vsel %vm866_vm0, %v817_v39, -inf  ;;  %3726 = vmatpush3.bf16.msra.mxu1 %v3827_v53  ;;  %v3829_v37 = vld [vmem:[%s5341_s2 + $0x18] sm:$0xff]   ;;  %v3830_v38 = vld [vmem:[%s5345_s6] sm:$0xff]  }
  0x5f   : > { %v949_v60 = vmax.f32 %v947_v48, %v948_v25  ;;  %v962_v61 = vmax.f32 %v960_v50, %v961_v43  ;;  %v975_v63 = vmax.f32 %v973_v52, %v974_v46  ;;  %v991_v4 = vsel %vm866_vm0, %v825_v40, -inf  ;;  %3727 = vmatprep.subr.bf16.mxu1 %v3828_v59  ;;  %3739 = vmatprep.subr.bf16.mxu0 %v3830_v38  ;;  %v3578_v52 = vld [vmem:[%s5342_s3] ss:$0 sm:$0xff] }
  0x60   : > { %v990_v8 = vmax.f32 %v988_v0, %v989_v3  ;;  %v967_v9 = vsel %vm866_vm0, %v863_v47, -inf  ;;  %v980_v10 = vsel %vm866_vm0, %v848_v55, -inf  ;;  %v993_v11 = vsel %vm866_vm0, %v833_v51, -inf  ;;  %3740 = vmatpush3.bf16.msra.mxu0 %v3830_v38  ;;  %v3831_v51 = vld [vmem:[%s5345_s6 + $0x8] sm:$0xff]   ;;  %v3588_v57 = vld [vmem:[%s5344_s5] ss:$0 sm:$0xff] }
  0x61   : > { %v964_v5 = vmax.f32 %v962_v61, %v963_v54  ;;  %v977_v7 = vmax.f32 %v975_v63, %v976_v56  ;;  %v951_v12 = vmax.f32 %v949_v60, %v950_v49  ;;  %v982_v17 = vsel %vm866_vm0, %v856_v6, -inf  ;;  %3741 = vmatprep.subr.bf16.mxu0 %v3831_v51  ;;  %v3587_v54 = vld [vmem:[%s5343_s4] ss:$0 sm:$0xff] }
  0x62   : > { %v992_v16 = vmax.f32 %v990_v8, %v991_v4  ;;  %v995_v18 = vsel %vm866_vm0, %v841_v62, -inf  ;;  %v997_v24 = vsel %vm866_vm0, %v849_v14, -inf  ;;  %3728 = vmatpush3.bf16.msra.mxu1 %v3828_v59  ;;  %v984_v29 = vsel %vm866_vm0, %v864_v21, -inf }
  0x63   : > { %v966_v13 = vmax.f32 %v964_v5, %v965_v1  ;;  %v979_v15 = vmax.f32 %v977_v7, %v978_v2  ;;  %v999_v30 = vsel %vm866_vm0, %v857_v20, -inf  ;;  %v1001_v32 = vsel %vm866_vm0, %v865_v26, -inf  ;;  %3729 = vmatprep.subr.bf16.mxu1 %v3829_v37 }
  0x64   : > { %v994_v23 = vmax.f32 %v992_v16, %v993_v11  ;;  %3742 = vmatpush3.bf16.msra.mxu0 %v3831_v51 }
  0x65   : > { %v968_v19 = vmax.f32 %v966_v13, %v967_v9  ;;  %v981_v22 = vmax.f32 %v979_v15, %v980_v10 }
  0x66   : > { %v996_v28 = vmax.f32 %v994_v23, %v995_v18  ;;  %3730 = vmatpush3.bf16.msra.mxu1 %v3829_v37  ;;  %v3598_v37 = vld [vmem:[%s5348_s9] ss:$0 sm:$0xff] }
  0x67   : > { %v1005_v25 = vpack.c.bf16 %v968_v19, %v951_v12  ;;  %v983_v27 = vmax.f32 %v981_v22, %v982_v17  ;;  %3751 = vmatprep.subr.bf16.mxu1 %v3830_v38 }
  0x68   : > { %v998_v31 = vmax.f32 %v996_v28, %v997_v24 }
  0x69   : > { %3719 = vmatprep.mubr.msk.bf16.mxu0 %vm866_vm0, %v1005_v25  ;;  %v985_v33 = vmax.f32 %v983_v27, %v984_v29 }
  0x6a   : > { %v1000_v34 = vmax.f32 %v998_v31, %v999_v30 }
  0x6c   : > { %v1002_v35 = vmax.f32 %v1000_v34, %v1001_v32 }
  0x6e   : > { %v1006_v36 = vpack.c.bf16 %v1002_v35, %v985_v33  ;;  %v3589_v35 = vld [vmem:[%s5346_s7] ss:$0 sm:$0xff] }
  0x70   : > { %3720 = vmatmul.mubr.msk.bf16.gmra.mrb[4].mxu0 %vm866_vm0, %v1006_v36 }
 0x130   : > { %v3717_v39 = vpop.f32.mrb[0].mxu0 }
 0x131   : > { %v1085_v40 = vpop.f32.mrb[1].mxu0 }
 0x132   : > { %v3718_v41 = vpop.f32.mrb[2].mxu0 }
 0x133   : > { %v1117_v42 = vpack.c.bf16 %v3718_v41, %v3717_v39  ;;  %v1088_v43 = vpop.f32.mrb[3].mxu0 }
 0x134   : > { %v1116_v44 = vpack.c.bf16 %v1088_v43, %v1085_v40 }
 0x136   : > { %3731 = vmatprep.mubr.msk.bf16.mxu1 %vm866_vm0, %v1116_v44 }
 0x137   : > { %3732 = vmatmul.mubr.msk.bf16.vlgmr.msra.gmra.mrb[0].mxu1 %vm866_vm0, %v1117_v42 }
 0x138   : > { %3753 = vmatpush3.bf16.msra.mxu1 %v3830_v38  ;;  %v3596_v38 = vld [vmem:[%s5347_s8] ss:$0 sm:$0xff] }
 0x139   : > { %3752 = vmatprep.subr.bf16.mxu1 %v3831_v51 }
 0x13c   : > { %3754 = vmatpush3.bf16.msra.mxu1 %v3831_v51 }
 0x143   : > { %v3721_v45 = vpop.f32.mrb[4].mxu0 }
 0x144   : > { %v1101_v46 = vpop.f32.mrb[5].mxu0 }
 0x145   : > { %v3722_v47 = vpop.f32.mrb[6].mxu0 }
 0x146   : > { %v1119_v48 = vpack.c.bf16 %v3722_v47, %v3721_v45  ;;  %v1104_v49 = vpop.f32.mrb[7].mxu0 }
 0x147   : > { %v1118_v50 = vpack.c.bf16 %v1104_v49, %v1101_v46 }
 0x149   : > { %3735 = vmatprep.mubr.msk.bf16.mxu1 %vm866_vm0, %v1118_v50 }
 0x14a   : > { %3736 = vmatmul.mubr.msk.bf16.gmra.mrb[4].mxu1 %vm866_vm0, %v1119_v48 }
 0x20a   : > { %v3733_v53 = vpop.f32.mrb[0].mxu1 }
 0x20b   : > { %v1214_v55 = vadd.f32 %v3733_v53, %v3578_v52  ;;  %v1205_v56 = vpop.f32.mrb[1].mxu1 }
 0x20c   : > { %v1206_v58 = vadd.f32 %v3578_v52, %v1205_v56  ;;  %v3734_v59 = vpop.f32.mrb[2].mxu1 }
 0x20d   : > { %v1245_v60 = vmul.f32 %v3587_v54, %v1214_v55  ;;  %v1217_v61 = vadd.f32 %v3734_v59, %v3578_v52  ;;  %v1208_v62 = vpop.f32.mrb[3].mxu1 }
 0x20e   : > { %v1243_v63 = vmul.f32 %v3587_v54, %v1206_v58  ;;  %v1209_v0 = vadd.f32 %v3578_v52, %v1208_v62 }
 0x20f   : > { %v1260_v1 = vadd.f32 %v3588_v57, %v1245_v60  ;;  %v1246_v2 = vmul.f32 %v3587_v54, %v1217_v61 }
 0x210   : > { %v1258_v3 = vadd.f32 %v3588_v57, %v1243_v63  ;;  %v1244_v4 = vmul.f32 %v3587_v54, %v1209_v0 }
 0x211   : > { %v1261_v5 = vadd.f32 %v3588_v57, %v1246_v2  ;;  %v1268_v7 = vmax.f32 %v1260_v1, 0.0  ;;  %v3953_v1 = vmov 0  }
 0x212   : > { %v1259_v6 = vadd.f32 %v3588_v57, %v1244_v4  ;;  %v1266_v9 = vmax.f32 %v1258_v3, 0.0  ;;  %3820 = vset.pattern.permute.xlu1 %v3953_v1  ;;  %3821 = vset.pattern.permute.xlu0 %v3953_v1 }
 0x213   : > { %v1269_v8 = vmax.f32 %v1261_v5, 0.0 }
 0x214   : > { %v1267_v10 = vmax.f32 %v1259_v6, 0.0 }
 0x215   : > { %v1275_v11 = vpack.c.bf16 %v1269_v8, %v1268_v7 }
 0x216   : > { %v1274_v12 = vpack.c.bf16 %v1267_v10, %v1266_v9 }
 0x218   : > { %3743 = vmatprep.mubr.msk.bf16.mxu0 %vm1301_vm1, %v1274_v12 }
 0x219   : > { %3744 = vmatmul.mubr.msk.bf16.vlgmr.msra.gmra.mrb[8].mxu0 %vm1301_vm1, %v1275_v11 }
 0x21d   : > { %v3737_v13 = vpop.f32.mrb[4].mxu1 }
 0x21e   : > { %v1230_v14 = vadd.f32 %v3737_v13, %v3578_v52  ;;  %v1221_v15 = vpop.f32.mrb[5].mxu1 }
 0x21f   : > { %v1222_v16 = vadd.f32 %v3578_v52, %v1221_v15  ;;  %v3738_v17 = vpop.f32.mrb[6].mxu1 }
 0x220   : > { %v1249_v18 = vmul.f32 %v3587_v54, %v1230_v14  ;;  %v1233_v19 = vadd.f32 %v3738_v17, %v3578_v52  ;;  %v1224_v20 = vpop.f32.mrb[7].mxu1 }
 0x221   : > { %v1247_v21 = vmul.f32 %v3587_v54, %v1222_v16  ;;  %v1225_v22 = vadd.f32 %v3578_v52, %v1224_v20 }
 0x222   : > { %v1264_v23 = vadd.f32 %v3588_v57, %v1249_v18  ;;  %v1250_v24 = vmul.f32 %v3587_v54, %v1233_v19 }
 0x223   : > { %v1262_v25 = vadd.f32 %v3588_v57, %v1247_v21  ;;  %v1248_v26 = vmul.f32 %v3587_v54, %v1225_v22  ;;  %v3599_v21 = vld [vmem:[#allocation3] ss:$0 sm:$0xff] }
 0x224   : > { %v1272_v27 = vmax.f32 %v1264_v23, 0.0  ;;  %v1265_v28 = vadd.f32 %v3588_v57, %v1250_v24 }
 0x225   : > { %v1270_v29 = vmax.f32 %v1262_v25, 0.0  ;;  %v1263_v30 = vadd.f32 %v3588_v57, %v1248_v26 }
 0x226   : > { %v1273_v31 = vmax.f32 %v1265_v28, 0.0 }
 0x227   : > { %v1271_v32 = vmax.f32 %v1263_v30, 0.0 }
 0x228   : > { %v1277_v33 = vpack.c.bf16 %v1273_v31, %v1272_v27 }
 0x229   : > { %v1276_v34 = vpack.c.bf16 %v1271_v32, %v1270_v29 }
 0x22b   : > { %3747 = vmatprep.mubr.msk.bf16.mxu1 %vm1301_vm1, %v1276_v34 }
 0x22c   : > { %3748 = vmatmul.mubr.msk.bf16.vlgmr.msra.gmra.mrb[8].mxu1 %vm1301_vm1, %v1277_v33 }
 0x2ec   : > { %v3745_v36 = vpop.f32.mrb[8].mxu0 }
 0x2ed   : > { %v1357_v39 = vadd.f32 %v3745_v36, %v3589_v35  ;;  %v1348_v40 = vpop.f32.mrb[9].mxu0 }
 0x2ee   : > { %v1349_v41 = vadd.f32 %v3589_v35, %v1348_v40  ;;  %v3746_v42 = vpop.f32.mrb[10].mxu0 }
 0x2ef   : > { %v1351_v43 = vpop.f32.mrb[11].mxu0  ;;  %v1442_v44 = vmul.f32 %v3598_v37, %v1357_v39  ;;  %v1388_v45 = vmul.f32 %v3596_v38, %v1357_v39  ;;  %v1360_v46 = vadd.f32 %v3746_v42, %v3589_v35 }
 0x2f0   : > { %v1352_v47 = vadd.f32 %v3589_v35, %v1351_v43  ;;  %v1440_v50 = vmul.f32 %v3598_v37, %v1349_v41  ;;  %v1386_v51 = vmul.f32 %v3596_v38, %v1349_v41  ;;  %v4450_v43 = vld [vmem:[#allocation2] ss:$0 sm:$0xff] }
 0x2f1   : > { %v1454_v48 = vsel %vm1301_vm1, %v1442_v44, 0.0  ;;  %v1400_v49 = vsel %vm1301_vm1, %v1388_v45, 0.0  ;;  %v1443_v55 = vmul.f32 %v3598_v37, %v1360_v46  ;;  %v1389_v59 = vmul.f32 %v3596_v38, %v1360_v46 }
 0x2f2   : > { %1455 = vadd.xlane.f32.xlu1 %v1454_v48  ;;  %1401 = vadd.xlane.f32.xlu0 %v1400_v49  ;;  %v1448_v52 = vsel %vm1301_vm1, %v1440_v50, 0.0  ;;  %v1394_v53 = vsel %vm1301_vm1, %v1386_v51, 0.0  ;;  %v1441_v54 = vmul.f32 %v3598_v37, %v1352_v47  ;;  %v1387_v58 = vmul.f32 %v3596_v38, %v1352_v47 }
 0x2f3   : > { %v1457_v57 = vsel %vm1301_vm1, %v1443_v55, 0.0  ;;  %v1403_v61 = vsel %vm1301_vm1, %v1389_v59, 0.0 }
 0x2f4   : > { %v1451_v56 = vsel %vm1301_vm1, %v1441_v54, 0.0  ;;  %v1397_v60 = vsel %vm1301_vm1, %v1387_v58, 0.0 }
 0x2f6   : > { %1449 = vadd.xlane.f32.xlu0 %v1448_v52  ;;  %1395 = vadd.xlane.f32.xlu1 %v1394_v53 }
 0x2fa   : > { %1452 = vadd.xlane.f32.xlu0 %v1451_v56  ;;  %1458 = vadd.xlane.f32.xlu1 %v1457_v57 }
 0x2fe   : > { %1398 = vadd.xlane.f32.xlu0 %v1397_v60  ;;  %1404 = vadd.xlane.f32.xlu1 %v1403_v61 }
 0x2ff   : > { %v3749_v62 = vpop.f32.mrb[8].mxu1 }
 0x300   : > { %v1373_v63 = vadd.f32 %v3749_v62, %v3589_v35  ;;  %v1364_v0 = vpop.f32.mrb[9].mxu1 }
 0x301   : > { %v1365_v2 = vadd.f32 %v3589_v35, %v1364_v0  ;;  %v3750_v3 = vpop.f32.mrb[10].mxu1 }
 0x302   : > { %v1376_v4 = vadd.f32 %v3750_v3, %v3589_v35  ;;  %v1367_v5 = vpop.f32.mrb[11].mxu1  ;;  %v1446_v6 = vmul.f32 %v3598_v37, %v1373_v63  ;;  %v1392_v7 = vmul.f32 %v3596_v38, %v1373_v63 }
 0x303   : > { %v1368_v8 = vadd.f32 %v3589_v35, %v1367_v5  ;;  %v1444_v11 = vmul.f32 %v3598_v37, %v1365_v2  ;;  %v1390_v16 = vmul.f32 %v3596_v38, %v1365_v2 }
 0x304   : > { %v1466_v9 = vsel %vm1301_vm1, %v1446_v6, 0.0  ;;  %v1447_v10 = vmul.f32 %v3598_v37, %v1376_v4  ;;  %v1393_v12 = vmul.f32 %v3596_v38, %v1376_v4  ;;  %v1412_v42 = vsel %vm1301_vm1, %v1392_v7, 0.0 }
 0x305   : > { %1467 = vadd.xlane.f32.xlu0 %v1466_v9  ;;  %v1445_v14 = vmul.f32 %v3598_v37, %v1368_v8  ;;  %v1460_v15 = vsel %vm1301_vm1, %v1444_v11, 0.0  ;;  %v1391_v18 = vmul.f32 %v3596_v38, %v1368_v8  ;;  %v1406_v19 = vsel %vm1301_vm1, %v1390_v16, 0.0 }
 0x306   : > { %v1469_v13 = vsel %vm1301_vm1, %v1447_v10, 0.0  ;;  %v1415_v48 = vsel %vm1301_vm1, %v1393_v12, 0.0 }
 0x307   : > { %1470 = vadd.xlane.f32.xlu1 %v1469_v13  ;;  %v1463_v17 = vsel %vm1301_vm1, %v1445_v14, 0.0  ;;  %v1409_v20 = vsel %vm1301_vm1, %v1391_v18, 0.0 }
 0x309   : > { %1461 = vadd.xlane.f32.xlu0 %v1460_v15 }
 0x30b   : > { %1464 = vadd.xlane.f32.xlu1 %v1463_v17 }
 0x30d   : > { %1407 = vadd.xlane.f32.xlu0 %v1406_v19 }
 0x30f   : > { %1410 = vadd.xlane.f32.xlu1 %v1409_v20 }
 0x37f   : > { %v1456_v22 = vpop.xlane.xlu1 %1455  ;;  %v1402_v23 = vpop.xlane.xlu0 %1401 }
 0x380   : > { %v1481_v24 = vadd.f32 %v3599_v21, %v1456_v22  ;;  %v1427_v50 = vadd.f32 %v4450_v43, %v1402_v23 }
 0x382   : > { %1644 = vperm.xlu1 %3820, %v1481_v24  }
 0x383   : > { %v1450_v25 = vpop.xlane.xlu0 %1449  ;;  %v1396_v26 = vpop.xlane.xlu1 %1395 }
 0x384   : > { %v1479_v27 = vadd.f32 %v3599_v21, %v1450_v25  ;;  %v1425_v44 = vadd.f32 %v4450_v43, %v1396_v26 }
 0x386   : > { %1634 = vperm.xlu0 %3821, %v1479_v27  }
 0x387   : > { %v1453_v28 = vpop.xlane.xlu0 %1452  ;;  %v1459_v29 = vpop.xlane.xlu1 %1458 }
 0x388   : > { %v1482_v30 = vadd.f32 %v3599_v21, %v1459_v29  ;;  %v1480_v31 = vadd.f32 %v3599_v21, %v1453_v28 }
 0x38a   : > { %1649 = vperm.xlu1 %3820, %v1482_v30  }
 0x38b   : > { %v1399_v32 = vpop.xlane.xlu0 %1398  ;;  %v1405_v33 = vpop.xlane.xlu1 %1404 }
 0x38c   : > { %v1428_v45 = vadd.f32 %v4450_v43, %v1405_v33  ;;  %v1426_v49 = vadd.f32 %v4450_v43, %v1399_v32 }
 0x38e   : > { %1639 = vperm.xlu1 %3820, %v1480_v31  }
 0x392   : > { %v1468_v34 = vpop.xlane.xlu0 %1467 }
 0x393   : > { %v1485_v35 = vadd.f32 %v3599_v21, %v1468_v34 }
 0x394   : > { %v1471_v36 = vpop.xlane.xlu1 %1470 }
 0x395   : > { %1664 = vperm.xlu1 %3820, %v1485_v35   ;;  %v1486_v39 = vadd.f32 %v3599_v21, %v1471_v36 }
 0x396   : > { %v1462_v37 = vpop.xlane.xlu0 %1461 }
 0x397   : > { %v1483_v38 = vadd.f32 %v3599_v21, %v1462_v37 }
 0x398   : > { %v1465_v40 = vpop.xlane.xlu1 %1464 }
 0x399   : > { %1654 = vperm.xlu1 %3820, %v1483_v38   ;;  %v1484_v41 = vadd.f32 %v3599_v21, %v1465_v40 }
 0x39a   : > { %v1408_v51 = vpop.xlane.xlu0 %1407 }
 0x39b   : > { %v1429_v52 = vadd.f32 %v4450_v43, %v1408_v51 }
 0x39c   : > { %v1411_v46 = vpop.xlane.xlu1 %1410 }
 0x39d   : > { %1669 = vperm.xlu1 %3820, %v1486_v39   ;;  %v1430_v47 = vadd.f32 %v4450_v43, %v1411_v46 }
 0x3a1   : > { %1659 = vperm.xlu1 %3820, %v1484_v41  }
 0x3a5   : > { %1413 = vadd.xlane.f32.xlu0 %v1412_v42 }
 0x3bb   : > { %1490 = vperm.xlu0 %3821, %v1425_v44  }
 0x3bf   : > { %1505 = vperm.xlu0 %3821, %v1428_v45  }
 0x3c3   : > { %1515 = vperm.xlu0 %3821, %v1430_v47  }
 0x3c5   : > { %1416 = vadd.xlane.f32.xlu1 %v1415_v48 }
 0x3d6   : > { %1495 = vperm.xlu1 %3820, %v1426_v49  }
 0x3da   : > { %1500 = vperm.xlu1 %3820, %v1427_v50  }
 0x3de   : > { %1510 = vperm.xlu1 %3820, %v1429_v52  }
 0x401   : > { %v1645_v53 = vpop.permute.xlu1 %1644 }
 0x402   : > { %v1674_v54 = vsub.f32 %v1645_v53, %v1645_v53 }
 0x404   : > { %v1684_v55 = vmul.f32 1.442695, %v1674_v54 }
 0x405   : > { %v1635_v56 = vpop.permute.xlu0 %1634 }
 0x406   : > { %3832 = vpow2.f32 %v1684_v55  ;;  %v1672_v57 = vsub.f32 %v1635_v56, %v1635_v56 }
 0x408   : > { %v1680_v58 = vmul.f32 1.442695, %v1672_v57 }
 0x409   : > { %v1650_v59 = vpop.permute.xlu1 %1649 }
 0x40a   : > { %3834 = vpow2.f32 %v1680_v58  ;;  %v1675_v60 = vsub.f32 %v1650_v59, %v1650_v59 }
 0x40c   : > { %v1686_v61 = vmul.f32 1.442695, %v1675_v60 }
 0x40d   : > { %v1640_v62 = vpop.permute.xlu1 %1639 }
 0x40e   : > { %3836 = vpow2.f32 %v1686_v61  ;;  %v1673_v63 = vsub.f32 %v1640_v62, %v1640_v62 }
 0x410   : > { %v4459_v0 = vpop.eup %3832  ;;  %v1682_v1 = vmul.f32 1.442695, %v1673_v63 }
 0x411   : > { %v1703_v2 = vsel %vm1696_vm2, %v4459_v0, 0.0 }
 0x412   : > { %3838 = vpow2.f32 %v1682_v1  ;;  %1704 = vadd.xlane.f32.xlu0 %v1703_v2 }
 0x414   : > { %v4463_v3 = vpop.eup %3834  ;;  %v1665_v4 = vpop.permute.xlu1 %1664 }
 0x415   : > { %v1697_v5 = vsel %vm1696_vm2, %v4463_v3, 0.0  ;;  %v1678_v6 = vsub.f32 %v1665_v4, %v1665_v4 }
 0x416   : > { %1698 = vadd.xlane.f32.xlu0 %v1697_v5 }
 0x417   : > { %v1692_v8 = vmul.f32 1.442695, %v1678_v6 }
 0x418   : > { %v4467_v7 = vpop.eup %3836  ;;  %v1655_v9 = vpop.permute.xlu1 %1654 }
 0x419   : > { %v1706_v10 = vsel %vm1696_vm2, %v4467_v7, 0.0  ;;  %3840 = vpow2.f32 %v1692_v8  ;;  %v1676_v11 = vsub.f32 %v1655_v9, %v1655_v9 }
 0x41a   : > { %1707 = vadd.xlane.f32.xlu1 %v1706_v10 }
 0x41b   : > { %v1688_v13 = vmul.f32 1.442695, %v1676_v11 }
 0x41c   : > { %v4471_v12 = vpop.eup %3838  ;;  %v1670_v14 = vpop.permute.xlu1 %1669 }
 0x41d   : > { %v1700_v15 = vsel %vm1696_vm2, %v4471_v12, 0.0  ;;  %3842 = vpow2.f32 %v1688_v13  ;;  %v1679_v16 = vsub.f32 %v1670_v14, %v1670_v14  ;;  %v3601_v13 = vld [vmem:[%s5351_s13] ss:$0 sm:$0xff] }
 0x41e   : > { %1701 = vadd.xlane.f32.xlu1 %v1700_v15 }
 0x41f   : > { %v1694_v17 = vmul.f32 1.442695, %v1679_v16 }
 0x420   : > { %v1660_v18 = vpop.permute.xlu1 %1659 }
 0x421   : > { %3844 = vpow2.f32 %v1694_v17  ;;  %v1677_v19 = vsub.f32 %v1660_v18, %v1660_v18 }
 0x423   : > { %v4475_v20 = vpop.eup %3840  ;;  %v1690_v21 = vmul.f32 1.442695, %v1677_v19 }
 0x424   : > { %v1715_v22 = vsel %vm1696_vm2, %v4475_v20, 0.0 }
 0x425   : > { %3846 = vpow2.f32 %v1690_v21  ;;  %1716 = vadd.xlane.f32.xlu0 %v1715_v22 }
 0x427   : > { %v4479_v23 = vpop.eup %3842 }
 0x428   : > { %v1709_v24 = vsel %vm1696_vm2, %v4479_v23, 0.0 }
 0x429   : > { %1710 = vadd.xlane.f32.xlu0 %v1709_v24 }
 0x42b   : > { %v4483_v25 = vpop.eup %3844 }
 0x42c   : > { %v1718_v26 = vsel %vm1696_vm2, %v4483_v25, 0.0 }
 0x42d   : > { %1719 = vadd.xlane.f32.xlu1 %v1718_v26 }
 0x42f   : > { %v4487_v27 = vpop.eup %3846 }
 0x430   : > { %v1712_v28 = vsel %vm1696_vm2, %v4487_v27, 0.0 }
 0x431   : > { %1713 = vadd.xlane.f32.xlu1 %v1712_v28 }
 0x432   : > { %v1414_v29 = vpop.xlane.xlu0 %1413 }
 0x433   : > { %v1431_v30 = vadd.f32 %v4450_v43, %v1414_v29 }
 0x43a   : > { %v1491_v31 = vpop.permute.xlu0 %1490 }
 0x43b   : > { %v1528_v32 = vsub.f32 %v1491_v31, %v1491_v31 }
 0x43d   : > { %v1536_v36 = vmul.f32 1.442695, %v1528_v32 }
 0x43e   : > { %v1506_v33 = vpop.permute.xlu0 %1505 }
 0x43f   : > { %v1531_v37 = vsub.f32 %v1506_v33, %v1506_v33  ;;  %3848 = vpow2.f32 %v1536_v36 }
 0x441   : > { %v1542_v39 = vmul.f32 1.442695, %v1531_v37 }
 0x442   : > { %1520 = vperm.xlu1 %3820, %v1431_v30   ;;  %v1516_v59 = vpop.permute.xlu0 %1515 }
 0x443   : > { %3850 = vpow2.f32 %v1542_v39  ;;  %v1533_v15 = vsub.f32 %v1516_v59, %v1516_v59 }
 0x445   : > { %v1546_v24 = vmul.f32 1.442695, %v1533_v15 }
 0x449   : > { %v4493_v42 = vpop.eup %3848 }
 0x44a   : > { %v1553_v47 = vsel %vm1552_vm3, %v4493_v42, 0.0 }
 0x44d   : > { %v4497_v48 = vpop.eup %3850 }
 0x44e   : > { %v1562_v50 = vsel %vm1552_vm3, %v4497_v48, 0.0 }
 0x452   : > { %v1417_v34 = vpop.xlane.xlu1 %1416 }
 0x453   : > { %v1432_v35 = vadd.f32 %v4450_v43, %v1417_v34 }
 0x455   : > { %1525 = vperm.xlu0 %3821, %v1432_v35  }
 0x456   : > { %v1496_v38 = vpop.permute.xlu1 %1495 }
 0x457   : > { %v1529_v41 = vsub.f32 %v1496_v38, %v1496_v38 }
 0x459   : > { %v1538_v44 = vmul.f32 1.442695, %v1529_v41 }
 0x45a   : > { %v1501_v40 = vpop.permute.xlu1 %1500 }
 0x45b   : > { %v1530_v45 = vsub.f32 %v1501_v40, %v1501_v40  ;;  %3852 = vpow2.f32 %v1538_v44 }
 0x45d   : > { %v1540_v43 = vmul.f32 1.442695, %v1530_v45 }
 0x45e   : > { %v1511_v46 = vpop.permute.xlu1 %1510 }
 0x45f   : > { %v1532_v49 = vsub.f32 %v1511_v46, %v1511_v46  ;;  %3854 = vpow2.f32 %v1540_v43 }
 0x461   : > { %v1544_v51 = vmul.f32 1.442695, %v1532_v49 }
 0x463   : > { %3856 = vpow2.f32 %v1544_v51 }
 0x465   : > { %v4501_v52 = vpop.eup %3852 }
 0x466   : > { %1554 = vadd.xlane.f32.xlu1 %v1553_v47  ;;  %v1556_v53 = vsel %vm1552_vm3, %v4501_v52, 0.0 }
 0x469   : > { %v4505_v54 = vpop.eup %3854 }
 0x46a   : > { %1563 = vadd.xlane.f32.xlu1 %v1562_v50  ;;  %v1559_v55 = vsel %vm1552_vm3, %v4505_v54, 0.0 }
 0x46d   : > { %v4509_v56 = vpop.eup %3856 }
 0x46e   : > { %v1565_v57 = vsel %vm1552_vm3, %v4509_v56, 0.0 }
 0x474   : > { %1557 = vadd.xlane.f32.xlu0 %v1556_v53 }
 0x478   : > { %1560 = vadd.xlane.f32.xlu0 %v1559_v55 }
 0x47c   : > { %1566 = vadd.xlane.f32.xlu0 %v1565_v57 }
 0x49f   : > { %v1705_v60 = vpop.xlane.xlu0 %1704 }
 0x4a0   : > { %3858 = vrcp.f32 %v1705_v60 }
 0x4a3   : > { %v1699_v63 = vpop.xlane.xlu0 %1698 }
 0x4a4   : > { %3860 = vrcp.f32 %v1699_v63 }
 0x4a7   : > { %v1708_v58 = vpop.xlane.xlu1 %1707 }
 0x4aa   : > { %v3859_v9 = vpop.eup %3858 }
 0x4ab   : > { %v1702_v61 = vpop.xlane.xlu1 %1701  ;;  %v1726_v10 = vmul.f32 %v3859_v9, %v4459_v0 }
 0x4ad   : > { %v1745_v17 = vmul.f32 %v3601_v13, %v1726_v10 }
 0x4ae   : > { %v3861_v11 = vpop.eup %3860 }
 0x4af   : > { %v1722_v18 = vmul.f32 %v3861_v11, %v4463_v3  ;;  %v1757_v0 = vsel %vm1696_vm2, %v1745_v17, 0.0 }
 0x4b1   : > { %v1743_v26 = vmul.f32 %v3601_v13, %v1722_v18 }
 0x4b2   : > { %v1717_v2 = vpop.xlane.xlu0 %1716 }
 0x4b3   : > { %v1751_v31 = vsel %vm1696_vm2, %v1743_v26, 0.0 }
 0x4b6   : > { %v1711_v8 = vpop.xlane.xlu0 %1710 }
 0x4ba   : > { %v1720_v62 = vpop.xlane.xlu1 %1719 }
 0x4be   : > { %v1714_v1 = vpop.xlane.xlu1 %1713 }
 0x4c2   : > { %v1521_v4 = vpop.permute.xlu1 %1520 }
 0x4c3   : > { %v1534_v5 = vsub.f32 %v1521_v4, %v1521_v4 }
 0x4c5   : > { %v1548_v6 = vmul.f32 1.442695, %v1534_v5 }
 0x4c7   : > { %3862 = vpow2.f32 %v1548_v6 }
 0x4c8   : > { %3864 = vrcp.f32 %v1711_v8 }
 0x4c9   : > { %3866 = vrcp.f32 %v1717_v2 }
 0x4ca   : > { %3868 = vrcp.f32 %v1708_v58 }
 0x4d1   : > { %v4517_v14 = vpop.eup %3862 }
 0x4d2   : > { %v1571_v16 = vsel %vm1552_vm3, %v4517_v14, 0.0  ;;  %v3865_v19 = vpop.eup %3864 }
 0x4d3   : > { %1572 = vadd.xlane.f32.xlu0 %v1571_v16  ;;  %v1730_v28 = vmul.f32 %v3865_v19, %v4479_v23  ;;  %v3867_v29 = vpop.eup %3866 }
 0x4d4   : > { %v1526_v21 = vpop.permute.xlu0 %1525  ;;  %v1734_v3 = vmul.f32 %v3867_v29, %v4475_v20  ;;  %v3869_v35 = vpop.eup %3868 }
 0x4d5   : > { %v1535_v22 = vsub.f32 %v1526_v21, %v1526_v21  ;;  %v1747_v32 = vmul.f32 %v3601_v13, %v1730_v28  ;;  %v1728_v20 = vmul.f32 %v3869_v35, %v4467_v7 }
 0x4d6   : > { %v1749_v34 = vmul.f32 %v3601_v13, %v1734_v3 }
 0x4d7   : > { %v1550_v30 = vmul.f32 1.442695, %v1535_v22  ;;  %1758 = vadd.xlane.f32.xlu0 %v1757_v0  ;;  %v1763_v33 = vsel %vm1696_vm2, %v1747_v32, 0.0  ;;  %v1746_v41 = vmul.f32 %v3601_v13, %v1728_v20 }
 0x4d8   : > { %v1769_v23 = vsel %vm1696_vm2, %v1749_v34, 0.0 }
 0x4d9   : > { %3870 = vpow2.f32 %v1550_v30  ;;  %v1760_v46 = vsel %vm1696_vm2, %v1746_v41, 0.0 }
 0x4da   : > { %3872 = vpow2.f32 %v1546_v24 }
 0x4db   : > { %3874 = vrcp.f32 %v1702_v61  ;;  %1752 = vadd.xlane.f32.xlu0 %v1751_v31 }
 0x4dc   : > { %3876 = vrcp.f32 %v1714_v1 }
 0x4dd   : > { %3878 = vrcp.f32 %v1720_v62 }
 0x4df   : > { %1764 = vadd.xlane.f32.xlu0 %v1763_v33 }
 0x4e3   : > { %v4528_v36 = vpop.eup %3870  ;;  %1770 = vadd.xlane.f32.xlu0 %v1769_v23 }
 0x4e4   : > { %v4530_v37 = vpop.eup %3872  ;;  %v1574_v38 = vsel %vm1552_vm3, %v4528_v36, 0.0 }
 0x4e5   : > { %v3875_v39 = vpop.eup %3874  ;;  %1575 = vadd.xlane.f32.xlu1 %v1574_v38  ;;  %v1568_v40 = vsel %vm1552_vm3, %v4530_v37, 0.0 }
 0x4e6   : > { %v1724_v44 = vmul.f32 %v3875_v39, %v4471_v12  ;;  %v3877_v45 = vpop.eup %3876 }
 0x4e7   : > { %v1732_v43 = vmul.f32 %v3877_v45, %v4487_v27  ;;  %v3879_v49 = vpop.eup %3878  ;;  %v3600_v27 = vld [vmem:[%s5350_s12] ss:$0 sm:$0xff] }
 0x4e8   : > { %v1744_v47 = vmul.f32 %v3601_v13, %v1724_v44  ;;  %v1736_v51 = vmul.f32 %v3879_v49, %v4483_v25  ;;  %v3954_v49 = vmov 683565275  }
 0x4e9   : > { %1569 = vadd.xlane.f32.xlu1 %v1568_v40  ;;  %v1748_v7 = vmul.f32 %v3601_v13, %v1732_v43 }
 0x4ea   : > { %v1754_v50 = vsel %vm1696_vm2, %v1744_v47, 0.0  ;;  %v1750_v12 = vmul.f32 %v3601_v13, %v1736_v51 }
 0x4eb   : > { %v1766_v55 = vsel %vm1696_vm2, %v1748_v7, 0.0 }
 0x4ec   : > { %v1772_v57 = vsel %vm1696_vm2, %v1750_v12, 0.0  ;;  %v3957_v12 = vmov 2102212464  }
 0x4ed   : > { %1761 = vadd.xlane.f32.xlu1 %v1760_v46 }
 0x4f1   : > { %1755 = vadd.xlane.f32.xlu1 %v1754_v50 }
 0x4f3   : > { %v1555_v53 = vpop.xlane.xlu1 %1554 }
 0x4f4   : > { %3880 = vrcp.f32 %v1555_v53  ;;  %v3956_v53 = vmov 2131351028  }
 0x4f5   : > { %1767 = vadd.xlane.f32.xlu1 %v1766_v55 }
 0x4f7   : > { %v1564_v58 = vpop.xlane.xlu1 %1563 }
 0x4f8   : > { %3882 = vrcp.f32 %v1564_v58  ;;  %v3958_v58 = vmov 920167782  }
 0x4f9   : > { %1773 = vadd.xlane.f32.xlu1 %v1772_v57 }
 0x4fe   : > { %v3881_v59 = vpop.eup %3880 }
 0x4ff   : > { %v1578_v60 = vmul.f32 %v3881_v59, %v4493_v42 }
 0x501   : > { %v1558_v25 = vpop.xlane.xlu0 %1557  ;;  %v1599_v61 = vmul.f32 %v3600_v27, %v1578_v60 }
 0x502   : > { %3884 = vrcp.f32 %v1558_v25  ;;  %v3883_v2 = vpop.eup %3882 }
 0x503   : > { %v1607_v62 = vsel %vm1552_vm3, %v1599_v61, 0.0  ;;  %v1584_v6 = vmul.f32 %v3883_v2, %v4497_v48 }
 0x504   : > { %1608 = vadd.xlane.f32.xlu0 %v1607_v62 }
 0x505   : > { %v1561_v63 = vpop.xlane.xlu0 %1560  ;;  %v1602_v10 = vmul.f32 %v3600_v27, %v1584_v6 }
 0x506   : > { %3886 = vrcp.f32 %v1561_v63  ;;  %v3959_v63 = vmov 1326507024  }
 0x507   : > { %v1616_v16 = vsel %vm1552_vm3, %v1602_v10, 0.0 }
 0x509   : > { %v1567_v1 = vpop.xlane.xlu0 %1566 }
 0x50a   : > { %3888 = vrcp.f32 %v1567_v1 }
 0x50c   : > { %v3885_v4 = vpop.eup %3884 }
 0x50d   : > { %v1580_v5 = vmul.f32 %v3885_v4, %v4501_v52 }
 0x50f   : > { %v1600_v8 = vmul.f32 %v3600_v27, %v1580_v5 }
 0x510   : > { %v3887_v9 = vpop.eup %3886 }
 0x511   : > { %v1610_v42 = vsel %vm1552_vm3, %v1600_v8, 0.0  ;;  %v1582_v11 = vmul.f32 %v3887_v9, %v4505_v54 }
 0x512   : > { %1611 = vadd.xlane.f32.xlu1 %v1610_v42 }
 0x513   : > { %v1601_v13 = vmul.f32 %v3600_v27, %v1582_v11 }
 0x514   : > { %v3889_v15 = vpop.eup %3888 }
 0x515   : > { %v1613_v17 = vsel %vm1552_vm3, %v1601_v13, 0.0  ;;  %v1586_v18 = vmul.f32 %v3889_v15, %v4509_v56 }
 0x516   : > { %1617 = vadd.xlane.f32.xlu1 %v1616_v16  ;;  %1614 = vadd.xlane.f32.xlu0 %v1613_v17 }
 0x517   : > { %v1603_v52 = vmul.f32 %v3600_v27, %v1586_v18 }
 0x519   : > { %v1619_v48 = vsel %vm1552_vm3, %v1603_v52, 0.0 }
 0x51a   : > { %1620 = vadd.xlane.f32.xlu0 %v1619_v48 }
 0x560   : > { %v1573_v19 = vpop.xlane.xlu0 %1572 }
 0x561   : > { %3890 = vrcp.f32 %v1573_v19 }
 0x564   : > { %v4557_v21 = vpop.xlane.xlu0 %1758 }
 0x565   : > { %v1981_v54 = vand.u32 2147483647, %v4557_v21  ;;  %v1984_v22 = vand.u32 2139095040, %v4557_v21 }
 0x567   : > { %v1985_v24 = vshrl.u32 %v1984_v22, 23  ;;  %v1988_v0 = vand.u32 8388607, %v1981_v54 }
 0x568   : > { %v4563_v26 = vpop.xlane.xlu0 %1752 }
 0x569   : > { %v3610_v56 = vadd.s32 4294967169, %v1985_v24  ;;  %v1775_v28 = vand.u32 2147483647, %v4563_v26  ;;  %v1778_v29 = vand.u32 2139095040, %v4563_v26  ;;  %v1989_v32 = vor.u32 8388608, %v1988_v0 }
 0x56b   : > { %v3891_v30 = vpop.eup %3890  ;;  %v1991_v31 = vadd.s32 1, %v3610_v56  ;;  %v1779_v3 = vshrl.u32 %v1778_v29, 23  ;;  %v4569_v33 = vand.u32 8388607, %v1775_v28  ;;  %v4575_v44 = vshll.u32 %v1989_v32, 8 }
 0x56c   : > { %v4571_v34 = vpop.xlane.xlu0 %1764  ;;  %v1590_v35 = vmul.f32 %v3891_v30, %v4517_v14  ;;  %v3955_v14 = vmov 2475754826  }
 0x56d   : > { %vm1992_vm4 = vcmp.gt.s32.totalorder %v1991_v31, 0  ;;  %v3602_v38 = vadd.s32 4294967169, %v1779_v3  ;;  %v2190_v20 = vand.u32 2139095040, %v4571_v34  ;;  %v1783_v45 = vor.u32 8388608, %v4569_v33 }
 0x56e   : > { %v1993_v23 = vsel %vm1992_vm4, %v1991_v31, 0  ;;  %v1605_v39 = vmul.f32 %v3600_v27, %v1590_v35 }
 0x56f   : > { %v1994_v40 = vshrl.u32 %v1993_v23, 5  ;;  %v1995_v41 = vand.u32 31, %v1993_v23  ;;  %v1785_v46 = vadd.s32 1, %v3602_v38  ;;  %v2191_v51 = vshrl.u32 %v2190_v20, 23 }
 0x570   : > { %v1625_v47 = vsel %vm1552_vm3, %v1605_v39, 0.0  ;;  %v1823_v33 = vshll.u32 %v1783_v45, 8 }
 0x571   : > { %v1996_v43 = vsub.s32 32, %v1995_v41  ;;  %v1998_v50 = vshll.u32 %v3954_v49, %v1995_v41  ;;  %v2001_v7 = vshll.u32 %v3955_v14, %v1995_v41  ;;  %1626 = vadd.xlane.f32.xlu0 %v1625_v47  ;;  %v2004_v55 = vshll.u32 %v3956_v53, %v1995_v41 }
 0x572   : > { %v2007_v57 = vshll.u32 %v3957_v12, %v1995_v41  ;;  %v2010_v59 = vshll.u32 %v3958_v58, %v1995_v41  ;;  %vm2013_vm5 = vcmp.lt.s32.totalorder %v1994_v40, 1  ;;  %vm2014_vm6 = vcmp.lt.s32.totalorder %v1994_v40, 2 }
 0x573   : > { %v1999_v27 = vshrl.u32 %v3955_v14, %v1996_v43  ;;  %v2002_v60 = vshrl.u32 %v3956_v53, %v1996_v43  ;;  %v2005_v25 = vshrl.u32 %v3957_v12, %v1996_v43  ;;  %v1997_v61 = vshrl.u32 %v3954_v49, %v1996_v43 }
 0x574   : > { %v2008_v62 = vshrl.u32 %v3958_v58, %v1996_v43  ;;  %v2011_v1 = vshrl.u32 %v3959_v63, %v1996_v43  ;;  %vm2015_vm7 = vcmp.lt.s32.totalorder %v1994_v40, 3  ;;  %vm1786_vm8 = vcmp.gt.s32.totalorder %v1785_v46, 0 }
 0x575   : > { %v2000_v2 = vor.u32 %v1999_v27, %v1998_v50  ;;  %v2003_v4 = vor.u32 %v2002_v60, %v2001_v7  ;;  %v2006_v5 = vor.u32 %v2005_v25, %v2004_v55  ;;  %vm2016_vm9 = vcmp.lt.s32.totalorder %v1994_v40, 4 }
 0x576   : > { %v2009_v6 = vor.u32 %v2008_v62, %v2007_v57  ;;  %v2012_v8 = vor.u32 %v2011_v1, %v2010_v59  ;;  %v1787_v9 = vsel %vm1786_vm8, %v1785_v46, 0  ;;  %v3618_v35 = vadd.s32 4294967169, %v2191_v51 }
 0x577   : > { %v2017_v42 = vsel %vm2013_vm5, %v1997_v61, %v2000_v2  ;;  %v2018_v10 = vsel %vm2016_vm9, %v2006_v5, 2102212464  ;;  %v2021_v11 = vsel %vm2013_vm5, %v2000_v2, %v2003_v4  ;;  %v2025_v13 = vsel %vm2013_vm5, %v2003_v4, %v2006_v5 }
 0x578   : > { %v2019_v15 = vsel %vm2015_vm7, %v2003_v4, %v2018_v10  ;;  %v2022_v16 = vsel %vm2016_vm9, %v2009_v6, 920167782  ;;  %v2026_v17 = vsel %vm2016_vm9, %v2012_v8, 1326507024  ;;  %v1788_v18 = vshrl.u32 %v1787_v9, 5 }
 0x579   : > { %v2020_v52 = vsel %vm2014_vm6, %v2017_v42, %v2019_v15  ;;  %v2023_v48 = vsel %vm2015_vm7, %v2006_v5, %v2022_v16  ;;  %v2027_v19 = vsel %vm2015_vm7, %v2009_v6, %v2026_v17  ;;  %v1789_v22 = vand.u32 31, %v1787_v9 }
 0x57a   : > { %v2024_v24 = vsel %vm2014_vm6, %v2021_v11, %v2023_v48  ;;  %v2028_v0 = vsel %vm2014_vm6, %v2025_v13, %v2027_v19  ;;  %v2036_v32 = vmul.u32 %v4575_v44, %v2020_v52  ;;  %vm1807_vm10 = vcmp.lt.s32.totalorder %v1788_v18, 1 }
 0x57b   : > { %v4600_v56 = vmul.u32.u64.low %v4575_v44, %v2028_v0  ;;  %v4601_v29 = vmul.u32.u64.high %v4575_v44, %v2028_v0, %v4600_v56  ;;  %v4604_v30 = vmul.u32.u64.low %v4575_v44, %v2024_v24  ;;  %v4605_v31 = vmul.u32.u64.high %v4575_v44, %v2024_v24, %v4604_v30 }
 0x57c   : > { %v1790_v3 = vsub.s32 32, %v1789_v22  ;;  %v1792_v23 = vshll.u32 %v3954_v49, %v1789_v22  ;;  %v1795_v38 = vshll.u32 %v3955_v14, %v1789_v22  ;;  %v1798_v20 = vshll.u32 %v3956_v53, %v1789_v22 }
 0x57d   : > { %v1801_v46 = vshll.u32 %v3957_v12, %v1789_v22  ;;  %vm2038_vm11 = vc.u32 %v4601_v29, %v4604_v30  ;;  %v2039_v44 = vadd.s32 1, %v4605_v31  ;;  %v1804_v47 = vshll.u32 %v3958_v58, %v1789_v22 }
 0x57e   : > { %v1793_v39 = vshrl.u32 %v3955_v14, %v1790_v3  ;;  %v1796_v40 = vshrl.u32 %v3956_v53, %v1790_v3  ;;  %v1799_v41 = vshrl.u32 %v3957_v12, %v1790_v3  ;;  %v1802_v45 = vshrl.u32 %v3958_v58, %v1790_v3 }
 0x57f   : > { %v1805_v51 = vshrl.u32 %v3959_v63, %v1790_v3  ;;  %v2040_v55 = vsel %vm2038_vm11, %v2039_v44, %v4605_v31  ;;  %vm1808_vm12 = vcmp.lt.s32.totalorder %v1788_v18, 2  ;;  %vm1810_vm13 = vcmp.lt.s32.totalorder %v1788_v18, 4 }
 0x580   : > { %v1794_v43 = vor.u32 %v1793_v39, %v1792_v23  ;;  %v1797_v50 = vor.u32 %v1796_v40, %v1795_v38  ;;  %v1800_v7 = vor.u32 %v1799_v41, %v1798_v20  ;;  %v1803_v57 = vor.u32 %v1802_v45, %v1801_v46 }
 0x581   : > { %v2041_v59 = vadd.s32 %v2040_v55, %v2036_v32  ;;  %v1791_v27 = vshrl.u32 %v3954_v49, %v1790_v3  ;;  %v1806_v60 = vor.u32 %v1805_v51, %v1804_v47  ;;  %vm1809_vm14 = vcmp.lt.s32.totalorder %v1788_v18, 3 }
 0x582   : > { %v1812_v25 = vsel %vm1810_vm13, %v1800_v7, 2102212464  ;;  %v1815_v61 = vsel %vm1807_vm10, %v1794_v43, %v1797_v50  ;;  %v1816_v62 = vsel %vm1810_vm13, %v1803_v57, 920167782  ;;  %v1819_v1 = vsel %vm1807_vm10, %v1797_v50, %v1800_v7 }
 0x583   : > { %v2042_v2 = vadd.s32 536870912, %v2041_v59  ;;  %v1811_v4 = vsel %vm1807_vm10, %v1791_v27, %v1794_v43  ;;  %v1817_v5 = vsel %vm1809_vm14, %v1800_v7, %v1816_v62  ;;  %v1820_v6 = vsel %vm1810_vm13, %v1806_v60, 1326507024 }
 0x584   : > { %v1813_v8 = vsel %vm1809_vm14, %v1797_v50, %v1812_v25  ;;  %v1818_v9 = vsel %vm1808_vm12, %v1815_v61, %v1817_v5  ;;  %v1821_v42 = vsel %vm1809_vm14, %v1803_v57, %v1820_v6  ;;  %v2197_v10 = vadd.s32 1, %v3618_v35 }
 0x585   : > { %v4628_v11 = vshrl.u32 %v2042_v2, 30  ;;  %v1822_v13 = vsel %vm1808_vm12, %v1819_v1, %v1821_v42  ;;  %v4631_v15 = vmul.u32.u64.low %v1823_v33, %v1818_v9  ;;  %v4632_v16 = vmul.u32.u64.high %v1823_v33, %v1818_v9, %v4631_v15  ;;  %v4663_v1 = vpop.xlane.xlu0 %1770 }
 0x586   : > { %v4635_v17 = vmul.u32.u64.low %v1823_v33, %v1822_v13  ;;  %v4636_v52 = vmul.u32.u64.high %v1823_v33, %v1822_v13, %v4635_v17  ;;  %vm2198_vm15 = vcmp.gt.s32.totalorder %v2197_v10, 0  ;;  %v1814_v19 = vsel %vm1808_vm12, %v1811_v4, %v1813_v8 }
 0x587   : > { %v2044_v48 = vshll.u32 %v4628_v11, 30  ;;  %v5355_v22 = vand.u32 2147483647, %v4571_v34  ;;  %v2199_v24 = vsel %vm2198_vm15, %v2197_v10, 0  ;;  %v1833_v31 = vadd.s32 1, %v4632_v16 }
 0x588   : > { %v2201_v0 = vand.u32 31, %v2199_v24  ;;  %v1830_v32 = vmul.u32 %v1823_v33, %v1814_v19  ;;  %vm1832_vm0 = vc.u32 %v4636_v52, %v4631_v15  ;;  %v2200_v20 = vshrl.u32 %v2199_v24, 5 }
 0x589   : > { %v4641_v56 = vsub.s32 %v2041_v59, %v2044_v48  ;;  %v1834_v23 = vsel %vm1832_vm0, %v1833_v31, %v4632_v16  ;;  %v2194_v18 = vand.u32 8388607, %v5355_v22  ;;  %v2396_v10 = vand.u32 2139095040, %v4663_v1 }
 0x58a   : > { %v2202_v3 = vsub.s32 32, %v2201_v0  ;;  %v1835_v38 = vadd.s32 %v1834_v23, %v1830_v32  ;;  %v2204_v33 = vshll.u32 %v3954_v49, %v2201_v0  ;;  %v2207_v46 = vshll.u32 %v3955_v14, %v2201_v0 }
 0x58b   : > { %v2047_v35 = vsub.s32 0, %v4641_v56  ;;  %v2210_v47 = vshll.u32 %v3956_v53, %v2201_v0  ;;  %v2213_v43 = vshll.u32 %v3957_v12, %v2201_v0  ;;  %v2195_v7 = vor.u32 8388608, %v2194_v18 }
 0x58c   : > { %v2205_v39 = vshrl.u32 %v3955_v14, %v2202_v3  ;;  %v2208_v40 = vshrl.u32 %v3956_v53, %v2202_v3  ;;  %v2211_v44 = vshrl.u32 %v3957_v12, %v2202_v3  ;;  %v1836_v45 = vadd.s32 536870912, %v1835_v38 }
 0x58d   : > { %v3611_v41 = vmin.u32 %v2047_v35, %v4641_v56  ;;  %v2214_v50 = vshrl.u32 %v3958_v58, %v2202_v3  ;;  %v2217_v57 = vshrl.u32 %v3959_v63, %v2202_v3  ;;  %v2216_v25 = vshll.u32 %v3958_v58, %v2201_v0 }
 0x58e   : > { %v2206_v51 = vor.u32 %v2205_v39, %v2204_v33  ;;  %v2209_v55 = vor.u32 %v2208_v40, %v2207_v46  ;;  %v4660_v59 = vshrl.u32 %v1836_v45, 30  ;;  %v2212_v27 = vor.u32 %v2211_v44, %v2210_v47 }
 0x58f   : > { %v2215_v60 = vor.u32 %v2214_v50, %v2213_v43  ;;  %v2049_v61 = vclz %v3611_v41  ;;  %v2218_v62 = vor.u32 %v2217_v57, %v2216_v25  ;;  %vm2222_vm1 = vcmp.lt.s32.totalorder %v2200_v20, 4  ;;  %v4690_v57 = vpop.xlane.xlu1 %1575 }
 0x590   : > { %v1838_v2 = vshll.u32 %v4660_v59, 30  ;;  %vm2219_vm2 = vcmp.lt.s32.totalorder %v2200_v20, 1  ;;  %v2203_v5 = vshrl.u32 %v3954_v49, %v2202_v3  ;;  %v2224_v6 = vsel %vm2222_vm1, %v2212_v27, 2102212464 }
 0x591   : > { %v2228_v4 = vsel %vm2222_vm1, %v2215_v60, 920167782  ;;  %v2227_v8 = vsel %vm2219_vm2, %v2206_v51, %v2209_v55  ;;  %v2235_v9 = vshll.u32 %v2195_v7, 8  ;;  %v3612_v42 = vadd.s32 4294967294, %v2049_v61 }
 0x592   : > { %vm2220_vm4 = vcmp.lt.s32.totalorder %v2200_v20, 2  ;;  %vm2221_vm5 = vcmp.lt.s32.totalorder %v2200_v20, 3  ;;  %v2223_v13 = vsel %vm2219_vm2, %v2203_v5, %v2206_v51  ;;  %v2231_v17 = vsel %vm2219_vm2, %v2209_v55, %v2212_v27 }
 0x593   : > { %v2229_v16 = vsel %vm2221_vm5, %v2212_v27, %v2228_v4  ;;  %v2232_v48 = vsel %vm2222_vm1, %v2218_v62, 1326507024  ;;  %v4671_v19 = vsub.s32 %v1835_v38, %v1838_v2  ;;  %v2225_v24 = vsel %vm2221_vm5, %v2209_v55, %v2224_v6 }
 0x594   : > { %v2230_v0 = vsel %vm2220_vm4, %v2227_v8, %v2229_v16  ;;  %v2233_v31 = vsel %vm2221_vm5, %v2215_v60, %v2232_v48  ;;  %vm3613_vm6 = vcmp.lt.s32.totalorder %v3612_v42, 0  ;;  %v2226_v39 = vsel %vm2220_vm4, %v2223_v13, %v2225_v24  ;;  %v4705_v16 = vpop.xlane.xlu1 %1569 }
 0x595   : > { %v2234_v32 = vsel %vm2220_vm4, %v2231_v17, %v2233_v31  ;;  %v4673_v3 = vmul.u32.u64.low %v2235_v9, %v2230_v0  ;;  %v4674_v35 = vmul.u32.u64.high %v2235_v9, %v2230_v0, %v4673_v3  ;;  %v2397_v40 = vshrl.u32 %v2396_v10, 23 }
 0x596   : > { %v4677_v23 = vmul.u32.u64.low %v2235_v9, %v2234_v32  ;;  %v4678_v18 = vmul.u32.u64.high %v2235_v9, %v2234_v32, %v4677_v23  ;;  %v1841_v41 = vsub.s32 0, %v4671_v19  ;;  %v4681_v20 = vsel %vm3613_vm6, 0, %v3612_v42 }
 0x597   : > { %v2245_v38 = vadd.s32 1, %v4674_v35  ;;  %v3626_v33 = vadd.s32 4294967169, %v2397_v40  ;;  %v2242_v46 = vmul.u32 %v2235_v9, %v2226_v39  ;;  %v2057_v47 = vsub.s32 4294967266, %v4681_v20 }
 0x598   : > { %vm2244_vm7 = vc.u32 %v4678_v18, %v4673_v3  ;;  %v3603_v43 = vmin.u32 %v1841_v41, %v4671_v19  ;;  %v5354_v7 = vand.u32 2147483647, %v4663_v1  ;;  %v2037_v5 = vadd.s32 %v4604_v30, %v4601_v29 }
 0x599   : > { %v2246_v44 = vsel %vm2244_vm7, %v2245_v38, %v4674_v35  ;;  %v2403_v45 = vadd.s32 1, %v3626_v33  ;;  %v2058_v60 = vadd.s32 127, %v2057_v47  ;;  %v2053_v6 = vsub.s32 32, %v4681_v20 }
 0x59a   : > { %v2247_v50 = vadd.s32 %v2246_v44, %v2242_v46  ;;  %v1843_v25 = vclz %v3603_v43  ;;  %v2400_v62 = vand.u32 8388607, %v5354_v7  ;;  %v2054_v8 = vshll.u32 %v4641_v56, %v4681_v20  ;;  %v4718_v43 = vpop.xlane.xlu1 %1761 }
 0x59b   : > { %vm2404_vm8 = vcmp.gt.s32.totalorder %v2403_v45, 0  ;;  %v2059_v9 = vshll.u32 %v2058_v60, 23  ;;  %v2055_v38 = vshrl.u32 %v2037_v5, %v2053_v6  ;;  %v2087_v6 = vand.u32 2139095040, %v4718_v43 }
 0x59c   : > { %v2248_v51 = vadd.s32 536870912, %v2247_v50  ;;  %v2405_v55 = vsel %vm2404_vm8, %v2403_v45, 0  ;;  %v3604_v42 = vadd.s32 4294967294, %v1843_v25  ;;  %v2401_v17 = vor.u32 8388608, %v2400_v62 }
 0x59d   : > { %v2407_v27 = vand.u32 31, %v2405_v55  ;;  %v2406_v0 = vshrl.u32 %v2405_v55, 5  ;;  %v2060_v33 = vor.u32 4788187, %v2059_v9  ;;  %vm1983_vm0 = vcmp.lt.s32.totalorder %v4557_v21, 0 }
 0x59e   : > { %v4692_v61 = vshrl.u32 %v2248_v51, 30  ;;  %vm3605_vm9 = vcmp.lt.s32.totalorder %v3604_v42, 0  ;;  %v2441_v47 = vshll.u32 %v2401_v17, 8  ;;  %vm4767_vm2 = vcmp.le.f32.partialorder %v1981_v54, 0.7853982 }
 0x59f   : > { %v2408_v2 = vsub.s32 32, %v2407_v27  ;;  %v2410_v48 = vshll.u32 %v3954_v49, %v2407_v27  ;;  %v2413_v24 = vshll.u32 %v3955_v14, %v2407_v27  ;;  %v2416_v56 = vshll.u32 %v3956_v53, %v2407_v27 }
 0x5a0   : > { %v2250_v4 = vshll.u32 %v4692_v61, 30  ;;  %v2419_v23 = vshll.u32 %v3957_v12, %v2407_v27  ;;  %v2422_v41 = vshll.u32 %v3958_v58, %v2407_v27  ;;  %vm2425_vm10 = vcmp.lt.s32.totalorder %v2406_v0, 1 }
 0x5a1   : > { %v2411_v13 = vshrl.u32 %v3955_v14, %v2408_v2  ;;  %v2414_v29 = vshrl.u32 %v3956_v53, %v2408_v2  ;;  %v2417_v31 = vshrl.u32 %v3957_v12, %v2408_v2  ;;  %v2420_v39 = vshrl.u32 %v3958_v58, %v2408_v2 }
 0x5a2   : > { %v4702_v10 = vsub.s32 %v2247_v50, %v2250_v4  ;;  %v2423_v20 = vshrl.u32 %v3959_v63, %v2408_v2  ;;  %vm2428_vm11 = vcmp.lt.s32.totalorder %v2406_v0, 4  ;;  %v1846_v50 = vsel %vm3605_vm9, 0, %v3604_v42 }
 0x5a3   : > { %v2412_v32 = vor.u32 %v2411_v13, %v2410_v48  ;;  %v2415_v35 = vor.u32 %v2414_v29, %v2413_v24  ;;  %v2418_v40 = vor.u32 %v2417_v31, %v2416_v56  ;;  %v2421_v44 = vor.u32 %v2420_v39, %v2419_v23 }
 0x5a4   : > { %v2253_v30 = vsub.s32 0, %v4702_v10  ;;  %v2424_v45 = vor.u32 %v2423_v20, %v2422_v41  ;;  %vm2427_vm12 = vcmp.lt.s32.totalorder %v2406_v0, 3  ;;  %v2409_v27 = vshrl.u32 %v3954_v49, %v2408_v2  ;;  %v4742_v41 = vpop.xlane.xlu1 %1755 }
 0x5a5   : > { %v2433_v51 = vsel %vm2425_vm10, %v2412_v32, %v2415_v35  ;;  %v2434_v55 = vsel %vm2428_vm11, %v2421_v44, 920167782  ;;  %vm2426_vm13 = vcmp.lt.s32.totalorder %v2406_v0, 2  ;;  %v2430_v60 = vsel %vm2428_vm11, %v2418_v40, 2102212464 }
 0x5a6   : > { %v3619_v46 = vmin.u32 %v2253_v30, %v4702_v10  ;;  %v2435_v25 = vsel %vm2427_vm12, %v2418_v40, %v2434_v55  ;;  %v2437_v5 = vsel %vm2425_vm10, %v2415_v35, %v2418_v40  ;;  %v1847_v9 = vsub.s32 32, %v1846_v50 }
 0x5a7   : > { %v2436_v4 = vsel %vm2426_vm13, %v2433_v51, %v2435_v25  ;;  %v1851_v42 = vsub.s32 4294967266, %v1846_v50  ;;  %v2429_v13 = vsel %vm2425_vm10, %v2409_v27, %v2412_v32  ;;  %v2438_v17 = vsel %vm2428_vm11, %v2424_v45, 1326507024 }
 0x5a8   : > { %v2255_v62 = vclz %v3619_v46  ;;  %v2431_v2 = vsel %vm2427_vm12, %v2415_v35, %v2430_v60  ;;  %v2439_v48 = vsel %vm2427_vm12, %v2421_v44, %v2438_v17  ;;  %v2056_v30 = vor.u32 %v2055_v38, %v2054_v8 }
 0x5a9   : > { %v4732_v24 = vmul.u32.u64.low %v2441_v47, %v2436_v4  ;;  %v4733_v29 = vmul.u32.u64.high %v2441_v47, %v2436_v4, %v4732_v24  ;;  %v1831_v56 = vadd.s32 %v4631_v15, %v4636_v52  ;;  %v2440_v31 = vsel %vm2426_vm13, %v2437_v5, %v2439_v48 }
 0x5aa   : > { %v3620_v23 = vadd.s32 4294967294, %v2255_v62  ;;  %v4739_v39 = vmul.u32.u64.low %v2441_v47, %v2440_v31  ;;  %v4740_v40 = vmul.u32.u64.high %v2441_v47, %v2440_v31, %v4739_v39  ;;  %v2088_v32 = vshrl.u32 %v2087_v6, 23 }
 0x5ab   : > { %v2061_v35 = vand.u32 2147483647, %v2060_v33  ;;  %v1852_v20 = vadd.s32 127, %v1851_v42  ;;  %v2432_v46 = vsel %vm2426_vm13, %v2429_v13, %v2431_v2  ;;  %v2067_v44 = vsub.s32 4, %v4628_v11 }
 0x5ac   : > { %v1849_v45 = vshrl.u32 %v1831_v56, %v1847_v9  ;;  %v2451_v8 = vadd.s32 1, %v4733_v29  ;;  %v3614_v38 = vadd.s32 4294967169, %v2088_v32  ;;  %v2063_v15 = vcvt.s32.f32 %v2056_v30 }
 0x5ad   : > { %v1848_v52 = vshll.u32 %v4671_v19, %v1846_v50  ;;  %v5356_v51 = vand.u32 2147483647, %v4718_v43  ;;  %v1881_v55 = vand.u32 2139095040, %v4742_v41  ;;  %vm3621_vm14 = vcmp.lt.s32.totalorder %v3620_v23, 0 }
 0x5ae   : > { %v2448_v27 = vmul.u32 %v2441_v47, %v2432_v46  ;;  %vm2450_vm15 = vc.u32 %v4740_v40, %v4732_v24  ;;  %v2094_v0 = vadd.s32 1, %v3614_v38  ;;  %v4753_v33 = vmul.f32 %v2063_v15, %v2061_v35 }
 0x5af   : > { %v1853_v60 = vshll.u32 %v1852_v20, 23  ;;  %v2452_v25 = vsel %vm2450_vm15, %v2451_v8, %v4733_v29  ;;  %v2068_v19 = vsel %vm1983_vm0, %v2067_v44, %v4628_v11  ;;  %v4759_v50 = vor.u32 %v1849_v45, %v1848_v52 }
 0x5b0   : > { %v2453_v62 = vadd.s32 %v2452_v25, %v2448_v27  ;;  %vm2095_vm1 = vcmp.gt.s32.totalorder %v2094_v0, 0  ;;  %v4761_v47 = vsel %vm3621_vm14, 0, %v3620_v23  ;;  %v2091_v4 = vand.u32 8388607, %v5356_v51 }
 0x5b1   : > { %v2096_v5 = vsel %vm2095_vm1, %v2094_v0, 0  ;;  %v1882_v6 = vshrl.u32 %v1881_v55, 23  ;;  %v2065_v11 = vxor.u32 2147483648, %v4753_v33  ;;  %v4774_v17 = vsel %vm4767_vm2, 0, %v2068_v19 }
 0x5b2   : > { %v2454_v42 = vadd.s32 536870912, %v2453_v62  ;;  %v2098_v13 = vand.u32 31, %v2096_v5  ;;  %v1854_v2 = vor.u32 4788187, %v1853_v60  ;;  %v1857_v48 = vcvt.s32.f32 %v4759_v50 }
 0x5b3   : > { %v2263_v29 = vsub.s32 4294967266, %v4761_v47  ;;  %v2092_v54 = vor.u32 8388608, %v2091_v4  ;;  %v2097_v31 = vshrl.u32 %v2096_v5, 5  ;;  %v3606_v39 = vadd.s32 4294967169, %v1882_v6 }
 0x5b4   : > { %v4778_v30 = vshrl.u32 %v2454_v42, 30  ;;  %v2099_v56 = vsub.s32 32, %v2098_v13  ;;  %v2101_v23 = vshll.u32 %v3954_v49, %v2098_v13  ;;  %v2104_v20 = vshll.u32 %v3955_v14, %v2098_v13 }
 0x5b5   : > { %v2107_v46 = vshll.u32 %v3956_v53, %v2098_v13  ;;  %v2110_v8 = vshll.u32 %v3957_v12, %v2098_v13  ;;  %v1855_v15 = vand.u32 2147483647, %v1854_v2  ;;  %v2259_v52 = vsub.s32 32, %v4761_v47 }
 0x5b6   : > { %v2456_v32 = vshll.u32 %v4778_v30, 30  ;;  %v2102_v35 = vshrl.u32 %v3955_v14, %v2099_v56  ;;  %v2105_v44 = vshrl.u32 %v3956_v53, %v2099_v56  ;;  %v2108_v45 = vshrl.u32 %v3957_v12, %v2099_v56 }
 0x5b7   : > { %v2111_v38 = vshrl.u32 %v3958_v58, %v2099_v56  ;;  %v1888_v19 = vadd.s32 1, %v3606_v39  ;;  %v2264_v50 = vadd.s32 127, %v2263_v29  ;;  %v2113_v4 = vshll.u32 %v3958_v58, %v2098_v13 }
 0x5b8   : > { %v4790_v55 = vsub.s32 %v2453_v62, %v2456_v32  ;;  %v2103_v27 = vor.u32 %v2102_v35, %v2101_v23  ;;  %v2106_v0 = vor.u32 %v2105_v44, %v2104_v20  ;;  %v2109_v60 = vor.u32 %v2108_v45, %v2107_v46 }
 0x5b9   : > { %v2112_v25 = vor.u32 %v2111_v38, %v2110_v8  ;;  %v2114_v5 = vshrl.u32 %v3959_v63, %v2099_v56  ;;  %v1878_v6 = vand.u32 2147483647, %v4742_v41  ;;  %v2100_v42 = vshrl.u32 %v3954_v49, %v2099_v56 }
 0x5ba   : > { %vm2116_vm4 = vcmp.lt.s32.totalorder %v2097_v31, 1  ;;  %vm2119_vm5 = vcmp.lt.s32.totalorder %v2097_v31, 4  ;;  %v2132_v2 = vshll.u32 %v2092_v54, 8  ;;  %v2459_v62 = vsub.s32 0, %v4790_v55 }
 0x5bb   : > { %v2115_v32 = vor.u32 %v2114_v5, %v2113_v4  ;;  %v2121_v23 = vsel %vm2119_vm5, %v2109_v60, 2102212464  ;;  %v2124_v35 = vsel %vm2116_vm4, %v2103_v27, %v2106_v0  ;;  %vm2118_vm6 = vcmp.lt.s32.totalorder %v2097_v31, 3 }
 0x5bc   : > { %v2125_v20 = vsel %vm2119_vm5, %v2112_v25, 920167782  ;;  %v2128_v39 = vsel %vm2116_vm4, %v2106_v0, %v2109_v60  ;;  %vm1889_vm7 = vcmp.gt.s32.totalorder %v1888_v19, 0  ;;  %vm2117_vm8 = vcmp.lt.s32.totalorder %v2097_v31, 2 }
 0x5bd   : > { %v2120_v13 = vsel %vm2116_vm4, %v2100_v42, %v2103_v27  ;;  %v2126_v29 = vsel %vm2118_vm6, %v2109_v60, %v2125_v20  ;;  %v2129_v46 = vsel %vm2119_vm5, %v2115_v32, 1326507024  ;;  %v2122_v44 = vsel %vm2118_vm6, %v2106_v0, %v2121_v23 }
 0x5be   : > { %v2127_v45 = vsel %vm2117_vm8, %v2124_v35, %v2126_v29  ;;  %v2130_v56 = vsel %vm2118_vm6, %v2112_v25, %v2129_v46  ;;  %v1890_v8 = vsel %vm1889_vm7, %v1888_v19, 0  ;;  %v3627_v54 = vmin.u32 %v2459_v62, %v4790_v55 }
 0x5bf   : > { %v2131_v38 = vsel %vm2117_vm8, %v2128_v39, %v2130_v56  ;;  %v4800_v4 = vmul.u32.u64.low %v2132_v2, %v2127_v45  ;;  %v4801_v5 = vmul.u32.u64.high %v2132_v2, %v2127_v45, %v4800_v4  ;;  %v2265_v7 = vshll.u32 %v2264_v50, 23 }
 0x5c0   : > { %v4804_v22 = vmul.u32.u64.low %v2132_v2, %v2131_v38  ;;  %v4805_v51 = vmul.u32.u64.high %v2132_v2, %v2131_v38, %v4804_v22  ;;  %v1892_v27 = vand.u32 31, %v1890_v8  ;;  %v1861_v60 = vsub.s32 4, %v4660_v59 }
 0x5c1   : > { %v2243_v0 = vadd.s32 %v4673_v3, %v4678_v18  ;;  %3892 = vrcp.f32 %v4705_v16  ;;  %v2123_v25 = vsel %vm2117_vm8, %v2120_v13, %v2122_v44  ;;  %v4817_v19 = vsel %vm1983_vm0, %v2065_v11, %v4753_v33 }
 0x5c2   : > { %v4819_v50 = vmul.f32 %v1857_v48, %v1855_v15  ;;  %v1885_v22 = vand.u32 8388607, %v1878_v6  ;;  %v1893_v42 = vsub.s32 32, %v1892_v27  ;;  %v2260_v3 = vshll.u32 %v4702_v10, %v4761_v47 }
 0x5c3   : > { %v2261_v18 = vshrl.u32 %v2243_v0, %v2259_v52  ;;  %v2461_v16 = vclz %v3627_v54  ;;  %v2142_v31 = vadd.s32 1, %v4801_v5  ;;  %v4826_v62 = vor.u32 4788187, %v2265_v7 }
 0x5c4   : > { %v2139_v32 = vmul.u32 %v2132_v2, %v2123_v25  ;;  %vm2141_vm9 = vc.u32 %v4805_v51, %v4800_v4  ;;  %v1896_v33 = vshrl.u32 %v3955_v14, %v1893_v42  ;;  %v1895_v48 = vshll.u32 %v3954_v49, %v1892_v27  ;;  %v4837_v2 = vpop.xlane.xlu1 %1767 }
 0x5c5   : > { %v2143_v11 = vsel %vm2141_vm9, %v2142_v31, %v4801_v5  ;;  %v1898_v15 = vshll.u32 %v3955_v14, %v1892_v27  ;;  %v1899_v10 = vshrl.u32 %v3956_v53, %v1893_v42  ;;  %v1886_v52 = vor.u32 8388608, %v1885_v22 }
 0x5c6   : > { %v2144_v47 = vadd.s32 %v2143_v11, %v2139_v32  ;;  %v1901_v23 = vshll.u32 %v3956_v53, %v1892_v27  ;;  %v1902_v7 = vshrl.u32 %v3957_v12, %v1893_v42  ;;  %v3628_v35 = vadd.s32 4294967294, %v2461_v16 }
 0x5c7   : > { %v1891_v20 = vshrl.u32 %v1890_v8, 5  ;;  %v1897_v39 = vor.u32 %v1896_v33, %v1895_v48  ;;  %v1900_v13 = vor.u32 %v1899_v10, %v1898_v15  ;;  %v1904_v44 = vshll.u32 %v3957_v12, %v1892_v27 }
 0x5c8   : > { %v2145_v29 = vadd.s32 536870912, %v2144_v47  ;;  %v1903_v46 = vor.u32 %v1902_v7, %v1901_v23  ;;  %v1905_v45 = vshrl.u32 %v3958_v58, %v1893_v42  ;;  %v1859_v56 = vxor.u32 2147483648, %v4819_v50 }
 0x5c9   : > { %v1907_v54 = vshll.u32 %v3958_v58, %v1892_v27  ;;  %v1908_v38 = vshrl.u32 %v3959_v63, %v1893_v42  ;;  %v2293_v5 = vand.u32 2139095040, %v4837_v2  ;;  %vm1777_vm10 = vcmp.lt.s32.totalorder %v4563_v26, 0 }
 0x5ca   : > { %v2262_v0 = vor.u32 %v2261_v18, %v2260_v3  ;;  %v2267_v8 = vand.u32 2147483647, %v4826_v62  ;;  %v4847_v25 = vshrl.u32 %v2145_v29, 30  ;;  %v1906_v22 = vor.u32 %v1905_v45, %v1904_v44 }
 0x5cb   : > { %v4849_v16 = vpop.eup %3892  ;;  %v1909_v31 = vor.u32 %v1908_v38, %v1907_v54  ;;  %vm1910_vm11 = vcmp.lt.s32.totalorder %v1891_v20, 1  ;;  %vm1913_vm12 = vcmp.lt.s32.totalorder %v1891_v20, 4  ;;  %v1926_v32 = vshll.u32 %v1886_v52, 8 }
 0x5cc   : > { %vm3629_vm13 = vcmp.lt.s32.totalorder %v3628_v35, 0  ;;  %v2147_v27 = vshll.u32 %v4847_v25, 30  ;;  %v1915_v33 = vsel %vm1913_vm12, %v1903_v46, 2102212464  ;;  %v1918_v11 = vsel %vm1910_vm11, %v1897_v39, %v1900_v13 }
 0x5cd   : > { %v1894_v3 = vshrl.u32 %v3954_v49, %v1893_v42  ;;  %vm1912_vm14 = vcmp.lt.s32.totalorder %v1891_v20, 3  ;;  %v1919_v18 = vsel %vm1913_vm12, %v1906_v22, 920167782  ;;  %v2294_v62 = vshrl.u32 %v2293_v5, 23 }
 0x5ce   : > { %vm4858_vm15 = vcmp.le.f32.partialorder %v1775_v28, 0.7853982  ;;  %v4862_v15 = vsub.s32 %v2144_v47, %v2147_v27  ;;  %vm1911_vm0 = vcmp.lt.s32.totalorder %v1891_v20, 2  ;;  %v1920_v10 = vsel %vm1912_vm14, %v1903_v46, %v1919_v18 }
 0x5cf   : > { %v1922_v52 = vsel %vm1910_vm11, %v1900_v13, %v1903_v46  ;;  %v1914_v23 = vsel %vm1910_vm11, %v1894_v3, %v1897_v39  ;;  %v1916_v7 = vsel %vm1912_vm14, %v1900_v13, %v1915_v33  ;;  %v1921_v42 = vsel %vm1911_vm0, %v1918_v11, %v1920_v10 }
 0x5d0   : > { %v1923_v29 = vsel %vm1913_vm12, %v1909_v31, 1326507024  ;;  %v2150_v44 = vsub.s32 0, %v4862_v15  ;;  %v4869_v28 = vmul.u32.u64.low %v1926_v32, %v1921_v42  ;;  %v4870_v54 = vmul.u32.u64.high %v1926_v32, %v1921_v42, %v4869_v28 }
 0x5d1   : > { %v1924_v45 = vsel %vm1912_vm14, %v1906_v22, %v1923_v29  ;;  %v2269_v47 = vcvt.s32.f32 %v2262_v0  ;;  %v5358_v5 = vand.u32 2147483647, %v4837_v2  ;;  %v3622_v46 = vadd.s32 4294967169, %v2294_v62 }
 0x5d2   : > { %v1925_v38 = vsel %vm1911_vm0, %v1922_v52, %v1924_v45  ;;  %v2464_v39 = vsel %vm3629_vm13, 0, %v3628_v35  ;;  %v3615_v13 = vmin.u32 %v2150_v44, %v4862_v15  ;;  %v2069_v22 = vsel %vm4767_vm2, %v4557_v21, %v4817_v19 }
 0x5d3   : > { %v4877_v27 = vmul.u32.u64.low %v1926_v32, %v1925_v38  ;;  %v4878_v33 = vmul.u32.u64.high %v1926_v32, %v1925_v38, %v4877_v27  ;;  %v1862_v0 = vsel %vm1777_vm10, %v1861_v60, %v4660_v59  ;;  %v1917_v31 = vsel %vm1911_vm0, %v1914_v23, %v1916_v7 }
 0x5d4   : > { %v2300_v11 = vadd.s32 1, %v3622_v46  ;;  %v1860_v35 = vsel %vm1777_vm10, %v1859_v56, %v4819_v50  ;;  %vm2189_vm1 = vcmp.lt.s32.totalorder %v4571_v34, 0  ;;  %v2270_v3 = vmul.f32 %v2269_v47, %v2267_v8 }
 0x5d5   : > { %v2152_v18 = vclz %v3615_v13  ;;  %v1936_v9 = vadd.s32 1, %v4870_v54  ;;  %v2465_v19 = vsub.s32 32, %v2464_v39  ;;  %v2469_v62 = vsub.s32 4294967266, %v2464_v39 }
 0x5d6   : > { %v2297_v10 = vand.u32 8388607, %v5358_v5  ;;  %vm2301_vm2 = vcmp.gt.s32.totalorder %v2300_v11, 0  ;;  %v1933_v60 = vmul.u32 %v1926_v32, %v1917_v31  ;;  %vm1935_vm4 = vc.u32 %v4878_v33, %v4869_v28  ;;  %v4907_v32 = vpop.xlane.xlu1 %1773 }
 0x5d7   : > { %v3616_v59 = vadd.s32 4294967294, %v2152_v18  ;;  %v2302_v20 = vsel %vm2301_vm2, %v2300_v11, 0  ;;  %v4901_v50 = vsel %vm4858_vm15, 0, %v1862_v0  ;;  %3894 = vrcp.f32 %v4690_v57 }
 0x5d8   : > { %v1937_v56 = vsel %vm1935_vm4, %v1936_v9, %v4870_v54  ;;  %v2304_v8 = vand.u32 31, %v2302_v20  ;;  %3896 = vcosq.f32 %v2069_v22  ;;  %v2449_v52 = vadd.s32 %v4732_v24, %v4740_v40 }
 0x5d9   : > { %vm3617_vm5 = vcmp.lt.s32.totalorder %v3616_v59, 0  ;;  %v1938_v23 = vadd.s32 %v1937_v56, %v1933_v60  ;;  %v1863_v7 = vsel %vm4858_vm15, %v4563_v26, %v1860_v35  ;;  %v2271_v42 = vxor.u32 2147483648, %v2270_v3 }
 0x5da   : > { %v2155_v29 = vsel %vm3617_vm5, 0, %v3616_v59  ;;  %v2298_v44 = vor.u32 8388608, %v2297_v10  ;;  %v2467_v45 = vshrl.u32 %v2449_v52, %v2465_v19  ;;  %v4912_v57 = vadd.s32 127, %v2469_v62 }
 0x5db   : > { %v2160_v54 = vsub.s32 4294967266, %v2155_v29  ;;  %v1939_v47 = vadd.s32 536870912, %v1938_v23  ;;  %3898 = vsinq.f32 %v2069_v22  ;;  %v2273_v38 = vsub.s32 4, %v4692_v61 }
 0x5dc   : > { %v2305_v24 = vsub.s32 32, %v2304_v8  ;;  %v5357_v40 = vand.u32 2147483647, %v4907_v32  ;;  %3900 = vcosq.f32 %v1863_v7  ;;  %v2466_v46 = vshll.u32 %v4790_v55, %v2464_v39 }
 0x5dd   : > { %v2156_v13 = vsub.s32 32, %v2155_v29  ;;  %v4917_v48 = vshrl.u32 %v1939_v47, 30  ;;  %3902 = vsinq.f32 %v1863_v7  ;;  %v4921_v27 = vsel %vm2189_vm1, %v2271_v42, %v2270_v3 }
 0x5de   : > { %v2140_v0 = vadd.s32 %v4800_v4, %v4805_v51  ;;  %v2161_v22 = vadd.s32 127, %v2160_v54  ;;  %v4925_v31 = vor.u32 %v2467_v45, %v2466_v46  ;;  %v2471_v11 = vshll.u32 %v4912_v57, 23 }
 0x5df   : > { %v1941_v35 = vshll.u32 %v4917_v48, 30  ;;  %v4929_v18 = vshll.u32 %v2298_v44, 8  ;;  %v2317_v55 = vshrl.u32 %v3958_v58, %v2305_v24  ;;  %v2499_v39 = vand.u32 2139095040, %v4907_v32 }
 0x5e0   : > { %v4935_v3 = vand.u32 8388607, %v5357_v40  ;;  %v1588_v51 = vmul.f32 %v4849_v16, %v4530_v37  ;;  %v2158_v4 = vshrl.u32 %v2140_v0, %v2156_v13  ;;  %v4941_v19 = vshrl.u32 %v2302_v20, 5  ;;  %v3928_v40 = vld [vmem:[%s5350_s12] ss:$0 sm:$0xff] }
 0x5e1   : > { %v4939_v9 = vsub.s32 %v1938_v23, %v1941_v35  ;;  %v2320_v62 = vshrl.u32 %v3959_v63, %v2305_v24  ;;  %v3895_v10 = vpop.eup %3894  ;;  %v2157_v59 = vshll.u32 %v4862_v15, %v2155_v29  ;;  %v2162_v60 = vshll.u32 %v2161_v22, 23 }
 0x5e2   : > { %v2308_v56 = vshrl.u32 %v3955_v14, %v2305_v24  ;;  %v2316_v52 = vshll.u32 %v3957_v12, %v2304_v8  ;;  %v4947_v7 = vpop.eup %3896  ;;  %v2311_v37 = vshrl.u32 %v3956_v53, %v2305_v24  ;;  %v2314_v16 = vshrl.u32 %v3957_v12, %v2305_v24 }
 0x5e3   : > { %v1944_v42 = vsub.s32 0, %v4939_v9  ;;  %v2319_v20 = vshll.u32 %v3958_v58, %v2304_v8  ;;  %v2307_v23 = vshll.u32 %v3954_v49, %v2304_v8  ;;  %v2310_v44 = vshll.u32 %v3955_v14, %v2304_v8 }
 0x5e4   : > { %v2318_v15 = vor.u32 %v2317_v55, %v2316_v52  ;;  %v2500_v29 = vshrl.u32 %v2499_v39, 23  ;;  %v2159_v45 = vor.u32 %v2158_v4, %v2157_v59  ;;  %v2313_v47 = vshll.u32 %v3956_v53, %v2304_v8 }
 0x5e5   : > { %v3607_v54 = vmin.u32 %v1944_v42, %v4939_v9  ;;  %v2321_v46 = vor.u32 %v2320_v62, %v2319_v20  ;;  %v4957_v13 = vpop.eup %3898  ;;  %v2163_v0 = vor.u32 4788187, %v2162_v60  ;;  %v1934_v22 = vadd.s32 %v4869_v28, %v4878_v33 }
 0x5e6   : > { %v2309_v35 = vor.u32 %v2308_v56, %v2307_v23  ;;  %v1604_v5 = vmul.f32 %v3928_v40, %v1588_v51  ;;  %v4964_v55 = vpop.eup %3900  ;;  %v2312_v4 = vor.u32 %v2311_v37, %v2310_v44  ;;  %v2315_v59 = vor.u32 %v2314_v16, %v2313_v47 }
 0x5e7   : > { %v1946_v39 = vclz %v3607_v54  ;;  %vm2325_vm6 = vcmp.lt.s32.totalorder %v4941_v19, 4  ;;  %v4967_v8 = vpop.eup %3902  ;;  %v1964_v62 = vsub.s32 4, %v4917_v48  ;;  %v2306_v60 = vshrl.u32 %v3954_v49, %v2305_v24 }
 0x5e8   : > { %v2331_v28 = vsel %vm2325_vm6, %v2318_v15, 920167782  ;;  %v3630_v33 = vadd.s32 4294967169, %v2500_v29  ;;  %v2166_v56 = vcvt.s32.f32 %v2159_v45  ;;  %vm2322_vm7 = vcmp.lt.s32.totalorder %v4941_v19, 1 }
 0x5e9   : > { %v3608_v52 = vadd.s32 4294967294, %v1946_v39  ;;  %v2335_v51 = vsel %vm2325_vm6, %v2321_v46, 1326507024  ;;  %v2164_v42 = vand.u32 2147483647, %v2163_v0  ;;  %vm2324_vm8 = vcmp.lt.s32.totalorder %v4941_v19, 3 }
 0x5ea   : > { %v2506_v37 = vadd.s32 1, %v3630_v33  ;;  %v1622_v16 = vsel %vm1552_vm3, %v1604_v5, 0.0  ;;  %v2330_v24 = vsel %vm2322_vm7, %v2309_v35, %v2312_v4  ;;  %v2332_v20 = vsel %vm2324_vm8, %v2315_v59, %v2331_v28 }
 0x5eb   : > { %vm3609_vm9 = vcmp.lt.s32.totalorder %v3608_v52, 0  ;;  %1623 = vadd.xlane.f32.xlu1 %v1622_v16  ;;  %v1592_v23 = vmul.f32 %v3895_v10, %v4528_v36  ;;  %v2334_v29 = vsel %vm2322_vm7, %v2312_v4, %v2315_v59  ;;  %v2336_v45 = vsel %vm2324_vm8, %v2318_v15, %v2335_v51 }
 0x5ec   : > { %v1949_v44 = vsel %vm3609_vm9, 0, %v3608_v52  ;;  %vm2507_vm10 = vcmp.gt.s32.totalorder %v2506_v37, 0  ;;  %vm2323_vm11 = vcmp.lt.s32.totalorder %v4941_v19, 2  ;;  %v2327_v47 = vsel %vm2325_vm6, %v2315_v59, 2102212464 }
 0x5ed   : > { %v1950_v54 = vsub.s32 32, %v1949_v44  ;;  %v1954_v5 = vsub.s32 4294967266, %v1949_v44  ;;  %v2167_v46 = vmul.f32 %v2166_v56, %v2164_v42  ;;  %v2333_v0 = vsel %vm2323_vm11, %v2330_v24, %v2332_v20 }
 0x5ee   : > { %v2508_v36 = vsel %vm2507_vm10, %v2506_v37, 0  ;;  %v1606_v10 = vmul.f32 %v3928_v40, %v1592_v23  ;;  %vm2086_vm12 = vcmp.lt.s32.totalorder %v4718_v43, 0  ;;  %vm1880_vm13 = vcmp.lt.s32.totalorder %v4742_v41, 0 }
 0x5ef   : > { %v1951_v15 = vshll.u32 %v4939_v9, %v1949_v44  ;;  %v1952_v39 = vshrl.u32 %v1934_v22, %v1950_v54  ;;  %v1955_v28 = vadd.s32 127, %v1954_v5  ;;  %v2337_v33 = vsel %vm2323_vm11, %v2334_v29, %v2336_v45 }
 0x5f0   : > { %v2326_v59 = vsel %vm2322_vm7, %v2306_v60, %v2309_v35  ;;  %v2328_v56 = vsel %vm2324_vm8, %v2312_v4, %v2327_v47  ;;  %v2510_v52 = vand.u32 31, %v2508_v36  ;;  %v1628_v40 = vsel %vm1552_vm3, %v1606_v10, 0.0 }
 0x5f1   : > { %v1953_v51 = vor.u32 %v1952_v39, %v1951_v15  ;;  %v1956_v42 = vshll.u32 %v1955_v28, 23  ;;  %v5003_v37 = vmul.u32.u64.low %v4929_v18, %v2333_v0  ;;  %v5004_v16 = vmul.u32.u64.high %v4929_v18, %v2333_v0, %v5003_v37  ;;  %1629 = vadd.xlane.f32.xlu1 %v1628_v40 }
 0x5f2   : > { %v2168_v9 = vxor.u32 2147483648, %v2167_v46  ;;  %v5008_v22 = vmul.u32.u64.low %v4929_v18, %v2337_v33  ;;  %v5009_v24 = vmul.u32.u64.high %v4929_v18, %v2337_v33, %v5008_v22  ;;  %v5011_v35 = vsub.s32 32, %v2510_v52 }
 0x5f3   : > { %v5363_v4 = vand.u32 2147483647, %v4718_v43  ;;  %vm5021_vm3 = vcmp.le.f32.partialorder %v1878_v6, 0.7853982  ;;  %v1957_v23 = vor.u32 4788187, %v1956_v42  ;;  %v2513_v29 = vshll.u32 %v3954_v49, %v2510_v52 }
 0x5f4   : > { %v5025_v44 = vshrl.u32 %v2508_v36, 5  ;;  %v2516_v45 = vshll.u32 %v3955_v14, %v2510_v52  ;;  %v1960_v54 = vcvt.s32.f32 %v1953_v51  ;;  %v2514_v5 = vshrl.u32 %v3955_v14, %v5011_v35 }
 0x5f5   : > { %vm5015_vm14 = vcmp.le.f32.partialorder %v5363_v4, 0.7853982  ;;  %v2517_v47 = vshrl.u32 %v3956_v53, %v5011_v35  ;;  %v2519_v0 = vshll.u32 %v3956_v53, %v2510_v52  ;;  %v1958_v6 = vand.u32 2147483647, %v1957_v23 }
 0x5f6   : > { %v2520_v10 = vshrl.u32 %v3957_v12, %v5011_v35  ;;  %v2522_v36 = vshll.u32 %v3957_v12, %v2510_v52  ;;  %v2523_v15 = vshrl.u32 %v3958_v58, %v5011_v35  ;;  %v5041_v39 = vor.u32 4788187, %v2471_v11 }
 0x5f7   : > { %v5043_v28 = vor.u32 %v2514_v5, %v2513_v29  ;;  %v5045_v14 = vor.u32 %v2517_v47, %v2516_v45  ;;  %v2525_v33 = vshll.u32 %v3958_v58, %v2510_v52  ;;  %v1961_v53 = vmul.f32 %v1960_v54, %v1958_v6 }
 0x5f8   : > { %v2521_v40 = vor.u32 %v2520_v10, %v2519_v0  ;;  %v2524_v51 = vor.u32 %v2523_v15, %v2522_v36  ;;  %v2526_v42 = vshrl.u32 %v3959_v63, %v5011_v35  ;;  %v2169_v12 = vsel %vm2086_vm12, %v2168_v9, %v2167_v46 }
 0x5f9   : > { %v1965_v57 = vsel %vm1880_vm13, %v1964_v62, %v4917_v48  ;;  %v2329_v11 = vsel %vm2323_vm11, %v2326_v59, %v2328_v56  ;;  %v2504_v58 = vor.u32 8388608, %v4935_v3  ;;  %v1962_v52 = vxor.u32 2147483648, %v1961_v53 }
 0x5fa   : > { %v2348_v22 = vadd.s32 1, %v5004_v16  ;;  %v2527_v4 = vor.u32 %v2526_v42, %v2525_v33  ;;  %vm2531_vm15 = vcmp.lt.s32.totalorder %v5025_v44, 4  ;;  %v5368_v63 = vand.u32 2147483647, %v4571_v34 }
 0x5fb   : > { %vm2347_vm2 = vc.u32 %v5009_v24, %v5003_v37  ;;  %vm2528_vm4 = vcmp.lt.s32.totalorder %v5025_v44, 1  ;;  %vm2530_vm5 = vcmp.lt.s32.totalorder %v5025_v44, 3  ;;  %v2537_v48 = vsel %vm2531_vm15, %v2524_v51, 920167782 }
 0x5fc   : > { %vm5064_vm0 = vcmp.le.f32.partialorder %v5368_v63, 0.7853982  ;;  %v1963_v3 = vsel %vm1880_vm13, %v1962_v52, %v1961_v53  ;;  %v2536_v19 = vsel %vm2528_vm4, %v5043_v28, %v5045_v14  ;;  %v2538_v62 = vsel %vm2530_vm5, %v2521_v40, %v2537_v48 }
 0x5fd   : > { %vm1867_vm6 = vweird.f32 %v4563_v26  ;;  %v1868_v59 = vand.u32 3, %v4901_v50  ;;  %v2172_v56 = vsel %vm5015_vm14, %v4718_v43, %v2169_v12  ;;  %v1966_v9 = vsel %vm5021_vm3, %v4742_v41, %v1963_v3 }
 0x5fe   : > { %v2345_v23 = vmul.u32 %v4929_v18, %v2329_v11  ;;  %v2540_v29 = vsel %vm2528_vm4, %v5045_v14, %v2521_v40  ;;  %3904 = vcosq.f32 %v1966_v9  ;;  %v2349_v45 = vsel %vm2347_vm2, %v2348_v22, %v5004_v16 }
 0x5ff   : > { %vm2529_vm7 = vcmp.lt.s32.totalorder %v5025_v44, 2  ;;  %v2541_v54 = vsel %vm2531_vm15, %v2527_v4, 1326507024  ;;  %3906 = vsinq.f32 %v1966_v9  ;;  %v5102_v47 = vshll.u32 %v2504_v58, 8 }
 0x600   : > { %v2539_v5 = vsel %vm2529_vm7, %v2536_v19, %v2538_v62  ;;  %v2542_v18 = vsel %vm2530_vm5, %v2524_v51, %v2541_v54  ;;  %vm1869_vm8 = vcmp.lt.s32.totalorder %v1868_v59, 2  ;;  %v1871_v16 = vxor.u32 2147483648, %v4967_v8 }
 0x601   : > { %v2543_v0 = vsel %vm2529_vm7, %v2540_v29, %v2542_v18  ;;  %v1874_v6 = vxor.u32 2147483648, %v4964_v55  ;;  %v5108_v10 = vadd.s32 %v2349_v45, %v2345_v23  ;;  %vm1870_vm9 = vcmp.eq.s32.totalorder %v1868_v59, 0 }
 0x602   : > { %vm1873_vm10 = vcmp.eq.s32.totalorder %v1868_v59, 2  ;;  %v2716_v36 = vadd.s32 3, %v4901_v50  ;;  %v5112_v15 = vmul.u32.u64.low %v5102_v47, %v2539_v5  ;;  %v5113_v33 = vmul.u32.u64.high %v5102_v47, %v2539_v5, %v5112_v15  ;;  %v1609_v5 = vpop.xlane.xlu0 %1608 }
 0x603   : > { %v1872_v53 = vsel %vm1870_vm9, %v4964_v55, %v1871_v16  ;;  %v1875_v51 = vsel %vm1873_vm10, %v1874_v6, %v4967_v8  ;;  %v5123_v42 = vmul.u32.u64.low %v5102_v47, %v2543_v0  ;;  %v5124_v12 = vmul.u32.u64.high %v5102_v47, %v2543_v0, %v5123_v42 }
 0x604   : > { %v1876_v11 = vsel %vm1869_vm8, %v1872_v53, %v1875_v51  ;;  %v2717_v58 = vand.u32 3, %v2716_v36  ;;  %v5130_v50 = vsel %vm5064_vm0, %v4571_v34, %v4921_v27  ;;  %v2473_v52 = vand.u32 2147483647, %v5041_v39 }
 0x605   : > { %v2170_v22 = vsub.s32 4, %v4847_v25  ;;  %v2533_v4 = vsel %vm2531_vm15, %v2521_v40, 2102212464  ;;  %3908 = vcosq.f32 %v2172_v56  ;;  %v2351_v63 = vadd.s32 536870912, %v5108_v10 }
 0x606   : > { %v2512_v48 = vshrl.u32 %v3954_v49, %v5011_v35  ;;  %v1877_v3 = vsel %vm1867_vm6, nan, %v1876_v11  ;;  %v2475_v27 = vcvt.s32.f32 %v4925_v31  ;;  %3910 = vsinq.f32 %v2172_v56 }
 0x607   : > { %v1967_v39 = vsel %vm5021_vm3, 0, %v1965_v57  ;;  %vm2719_vm11 = vcmp.eq.s32.totalorder %v2717_v58, 0  ;;  %v2534_v49 = vsel %vm2530_vm5, %v5045_v14, %v2533_v4  ;;  %v3479_v19 = vlaneseq }
 0x608   : > { %v2532_v40 = vsel %vm2528_vm4, %v2512_v48, %v5043_v28  ;;  %v2721_v35 = vsel %vm2719_vm11, %v4964_v55, %v1871_v16  ;;  %v3905_v62 = vpop.eup %3904  ;;  %v5152_v59 = vmul.f32 %v2475_v27, %v2473_v52  ;;  %v2171_v31 = vsel %vm2086_vm12, %v2170_v22, %v4847_v25 }
 0x609   : > { %v3634_v20 = vclamps-f32 %v1877_v3, 0.9999999  ;;  %vm2722_vm13 = vcmp.eq.s32.totalorder %v2717_v58, 2  ;;  %v3907_v57 = vpop.eup %3906  ;;  %v5157_v56 = vshrl.u32 %v2351_v63, 30  ;;  %vm2718_vm3 = vcmp.lt.s32.totalorder %v2717_v58, 2 }
 0x60a   : > { %v2724_v28 = vsel %vm2722_vm13, %v1874_v6, %v4967_v8  ;;  %v1971_v55 = vand.u32 3, %v1967_v39  ;;  %v2535_v14 = vsel %vm2529_vm7, %v2532_v40, %v2534_v49  ;;  %v1974_v23 = vxor.u32 2147483648, %v3907_v57 }
 0x60b   : > { %v2725_v9 = vsel %vm2718_vm3, %v2721_v35, %v2724_v28  ;;  %v1977_v29 = vxor.u32 2147483648, %v3905_v62  ;;  %vm2553_vm12 = vc.u32 %v5124_v12, %v5112_v15  ;;  %v2554_v25 = vadd.s32 1, %v5113_v33 }
 0x60c   : > { %v2726_v45 = vsel %vm1867_vm6, nan, %v2725_v9  ;;  %v5172_v54 = vand.u32 127, %v3479_v19  ;;  %vm2395_vm15 = vcmp.lt.s32.totalorder %v4663_v1, 0  ;;  %v2615_v18 = vmul.f32 %v3634_v20, %v1609_v5 }
 0x60d   : > { %v3674_v8 = vclamps-f32 %v2726_v45, 0.9999999  ;;  %vm1973_vm2 = vcmp.eq.s32.totalorder %v1971_v55, 0  ;;  %vm1976_vm4 = vcmp.eq.s32.totalorder %v1971_v55, 2  ;;  %vm1972_vm5 = vcmp.lt.s32.totalorder %v1971_v55, 2 }
 0x60e   : > { %v1975_v44 = vsel %vm1973_vm2, %v3905_v62, %v1974_v23  ;;  %v1978_v0 = vsel %vm1976_vm4, %v1977_v29, %v3907_v57  ;;  %v2820_v16 = vadd.s32 3, %v1967_v39  ;;  %v2477_v6 = vxor.u32 2147483648, %v5152_v59 }
 0x60f   : > { %v3471_v36 = vmul.f32 %v3674_v8, %v1609_v5  ;;  %vm1970_vm7 = vweird.f32 %v4742_v41  ;;  %v1979_v26 = vsel %vm1972_vm5, %v1975_v44, %v1978_v0  ;;  %v5178_v53 = vpop.eup %3908  ;;  %v5371_v51 = vand.u32 2147483647, %v4663_v1 }
 0x610   : > { %v2555_v11 = vsel %vm2553_vm12, %v2554_v25, %v5113_v33  ;;  %vm3481_vm8 = vcmp.eq.s32.totalorder %v5172_v54, 0  ;;  %v1980_v58 = vsel %vm1970_vm7, nan, %v1979_v26  ;;  %v2821_v52 = vand.u32 3, %v2820_v16  ;;  %v3911_v22 = vpop.eup %3910 }
 0x611   : > { %vm5182_vm6 = vcmp.le.f32.partialorder %v5371_v51, 0.7853982  ;;  %v2173_v4 = vsel %vm5015_vm14, 0, %v2171_v31  ;;  %v2551_v63 = vmul.u32 %v5102_v47, %v2535_v14  ;;  %vm3490_vm9 = vcmask 15360   ;;  %v1612_v31 = vpop.xlane.xlu1 %1611 }
 0x612   : > { %v3482_v33 = vsel %vm3481_vm8, %v2615_v18, %v3471_v36  ;;  %v2353_v48 = vshll.u32 %v5157_v56, 30  ;;  %v3635_v3 = vclamps-f32 %v1980_v58, 0.9999999  ;;  %vm2823_vm10 = vcmp.eq.s32.totalorder %v2821_v52, 0 }
 0x613   : > { %3491 = vst.msk [vmem:[%s5199_s21] sm:$0xff] %vm3490_vm9, %v3482_v33  ;;  %vm2826_vm11 = vcmp.eq.s32.totalorder %v2821_v52, 2  ;;  %v5206_v60 = vadd.s32 %v2555_v11, %v2551_v63  ;;  %vm2822_vm14 = vcmp.lt.s32.totalorder %v2821_v52, 2  ;;  %v2825_v47 = vsel %vm2823_vm10, %v3905_v62, %v1974_v23 }
 0x614   : > { %v2828_v27 = vsel %vm2826_vm11, %v1977_v29, %v3907_v57  ;;  %3912 = vcosq.f32 %v5130_v50  ;;  %v2177_v40 = vand.u32 3, %v2173_v4  ;;  %v2180_v49 = vxor.u32 2147483648, %v3911_v22 }
 0x615   : > { %v2829_v39 = vsel %vm2822_vm14, %v2825_v47, %v2828_v27  ;;  %v2274_v35 = vsel %vm2189_vm1, %v2273_v38, %v4692_v61  ;;  %3914 = vsinq.f32 %v5130_v50  ;;  %v2183_v62 = vxor.u32 2147483648, %v5178_v53 }
 0x616   : > { %v2830_v19 = vsel %vm1970_vm7, nan, %v2829_v39  ;;  %v2478_v20 = vsel %vm2395_vm15, %v2477_v6, %v5152_v59  ;;  %v2616_v28 = vmul.f32 %v3635_v3, %v1612_v31  ;;  %vm2179_vm13 = vcmp.eq.s32.totalorder %v2177_v40, 0 }
 0x617   : > { %v3675_v57 = vclamps-f32 %v2830_v19, 0.9999999  ;;  %v5222_v55 = vsub.s32 %v5108_v10, %v2353_v48  ;;  %v2557_v61 = vadd.s32 536870912, %v5206_v60  ;;  %v2181_v38 = vsel %vm2179_vm13, %v5178_v53, %v2180_v49 }
 0x618   : > { %vm2182_vm1 = vcmp.eq.s32.totalorder %v2177_v40, 2  ;;  %vm2178_vm3 = vcmp.lt.s32.totalorder %v2177_v40, 2  ;;  %v3028_v14 = vadd.s32 3, %v2173_v4  ;;  %v2481_v59 = vsel %vm5182_vm6, %v4663_v1, %v2478_v20 }
 0x619   : > { %v3472_v41 = vmul.f32 %v3675_v57, %v1612_v31  ;;  %v2184_v50 = vsel %vm2182_vm1, %v2183_v62, %v3911_v22  ;;  %vm2176_vm12 = vweird.f32 %v4718_v43  ;;  %v2074_v10 = vand.u32 3, %v4774_v17 }
 0x61a   : > { %v2185_v9 = vsel %vm2178_vm3, %v2181_v38, %v2184_v50  ;;  %v3029_v25 = vand.u32 3, %v3028_v14  ;;  %v2077_v45 = vxor.u32 2147483648, %v4957_v13  ;;  %v2276_v5 = vsel %vm5064_vm0, 0, %v2274_v35 }
 0x61b   : > { %v3483_v23 = vsel %vm3481_vm8, %v2616_v28, %v3472_v41  ;;  %v2186_v29 = vsel %vm2176_vm12, nan, %v2185_v9  ;;  %v5238_v8 = vshrl.u32 %v2557_v61, 30  ;;  %v2080_v18 = vxor.u32 2147483648, %v4947_v7 }
 0x61c   : > { %3492 = vst.msk [vmem:[%s5199_s21 + $0x8] sm:$0xff] %vm3490_vm9, %v3483_v23  ;;  %v2479_v44 = vsub.s32 4, %v4778_v30  ;;  %3916 = vsinq.f32 %v2481_v59  ;;  %v2356_v0 = vsub.s32 0, %v5222_v55  ;;  %vm3031_vm2 = vcmp.eq.s32.totalorder %v3029_v25, 0 }
 0x61d   : > { %v3637_v16 = vclamps-f32 %v2186_v29, 0.9999999  ;;  %v3033_v6 = vsel %vm3031_vm2, %v5178_v53, %v2180_v49  ;;  %vm3034_vm4 = vcmp.eq.s32.totalorder %v3029_v25, 2  ;;  %vm2076_vm5 = vcmp.eq.s32.totalorder %v2074_v10, 0  ;;  %v1618_v53 = vpop.xlane.xlu1 %1617 }
 0x61e   : > { %v5246_v36 = vpop.eup %3912  ;;  %vm3030_vm0 = vcmp.lt.s32.totalorder %v3029_v25, 2  ;;  %v3036_v46 = vsel %vm3034_vm4, %v2183_v62, %v3911_v22  ;;  %v2078_v26 = vsel %vm2076_vm5, %v4947_v7, %v2077_v45  ;;  %vm2079_vm7 = vcmp.eq.s32.totalorder %v2074_v10, 2 }
 0x61f   : > { %v3915_v51 = vpop.eup %3914  ;;  %v2559_v11 = vshll.u32 %v5238_v8, 30  ;;  %v3037_v58 = vsel %vm3030_vm0, %v3033_v6, %v3036_v46  ;;  %vm2075_vm10 = vcmp.lt.s32.totalorder %v2074_v10, 2  ;;  %v2081_v52 = vsel %vm2079_vm7, %v2080_v18, %v4957_v13 }
 0x620   : > { %v3038_v4 = vsel %vm2176_vm12, nan, %v3037_v58  ;;  %vm2073_vm11 = vweird.f32 %v4557_v21  ;;  %v2082_v63 = vsel %vm2075_vm10, %v2078_v26, %v2081_v52  ;;  %v2924_v33 = vadd.s32 3, %v4774_v17 }
 0x621   : > { %3918 = vcosq.f32 %v2481_v59  ;;  %v3677_v22 = vclamps-f32 %v3038_v4, 0.9999999  ;;  %v2618_v48 = vmul.f32 %v3637_v16, %v1618_v53  ;;  %v2083_v3 = vsel %vm2073_vm11, nan, %v2082_v63 }
 0x622   : > { %v3636_v47 = vclamps-f32 %v2083_v3, 0.9999999  ;;  %v2925_v27 = vand.u32 3, %v2924_v33  ;;  %v2280_v39 = vand.u32 3, %v2276_v5  ;;  %v2480_v43 = vsel %vm2395_vm15, %v2479_v44, %v4778_v30  ;;  %v1615_v30 = vpop.xlane.xlu0 %1614 }
 0x623   : > { %v3474_v40 = vmul.f32 %v3677_v22, %v1618_v53  ;;  %v2283_v49 = vxor.u32 2147483648, %v3915_v51  ;;  %v2286_v35 = vxor.u32 2147483648, %v5246_v36  ;;  %v3623_v17 = vmin.u32 %v2356_v0, %v5222_v55 }
 0x624   : > { %v5263_v19 = vsub.s32 %v5206_v60, %v2559_v11  ;;  %vm2927_vm14 = vcmp.eq.s32.totalorder %v2925_v27, 0  ;;  %vm2930_vm13 = vcmp.eq.s32.totalorder %v2925_v27, 2  ;;  %vm2926_vm1 = vcmp.lt.s32.totalorder %v2925_v27, 2 }
 0x625   : > { %v3485_v31 = vsel %vm3481_vm8, %v2618_v48, %v3474_v40  ;;  %v2929_v62 = vsel %vm2927_vm14, %v4947_v7, %v2077_v45  ;;  %v2932_v20 = vsel %vm2930_vm13, %v2080_v18, %v4957_v13  ;;  %v2617_v61 = vmul.f32 %v3636_v47, %v1615_v30 }
 0x626   : > { %v3917_v57 = vpop.eup %3916  ;;  %3494 = vst.msk [vmem:[%s5199_s21 + $0x18] sm:$0xff] %vm3490_vm9, %v3485_v31  ;;  %v2933_v28 = vsel %vm2926_vm1, %v2929_v62, %v2932_v20  ;;  %vm2282_vm15 = vcmp.eq.s32.totalorder %v2280_v39, 0  ;;  %vm2285_vm3 = vcmp.eq.s32.totalorder %v2280_v39, 2  ;;  %vm2281_vm12 = vcmp.lt.s32.totalorder %v2280_v39, 2  ;;  %v1621_v52 = vpop.xlane.xlu0 %1620 }
 0x627   : > { %v2934_v60 = vsel %vm2073_vm11, nan, %v2933_v28  ;;  %v2284_v38 = vsel %vm2282_vm15, %v5246_v36, %v2283_v49  ;;  %v2287_v41 = vsel %vm2285_vm3, %v2286_v35, %v3915_v51  ;;  %v3132_v14 = vadd.s32 3, %v2276_v5 }
 0x628   : > { %v3676_v50 = vclamps-f32 %v2934_v60, 0.9999999  ;;  %v2288_v7 = vsel %vm2281_vm12, %v2284_v38, %v2287_v41  ;;  %v2482_v13 = vsel %vm5182_vm6, 0, %v2480_v43  ;;  %vm2279_vm2 = vweird.f32 %v4571_v34 }
 0x629   : > { %v2486_v59 = vand.u32 3, %v2482_v13  ;;  %v2289_v10 = vsel %vm2279_vm2, nan, %v2288_v7  ;;  %v3133_v21 = vand.u32 3, %v3132_v14  ;;  %v2489_v23 = vxor.u32 2147483648, %v3917_v57 }
 0x62a   : > { %v3473_v9 = vmul.f32 %v3676_v50, %v1615_v30  ;;  %v2358_v25 = vclz %v3623_v17  ;;  %v2562_v45 = vsub.s32 0, %v5263_v19  ;;  %v3638_v42 = vclamps-f32 %v2289_v10, 0.9999999  ;;  %v1627_v27 = vpop.xlane.xlu0 %1626 }
 0x62b   : > { %v3919_v29 = vpop.eup %3918  ;;  %vm3135_vm4 = vcmp.eq.s32.totalorder %v3133_v21, 0  ;;  %vm3138_vm6 = vcmp.eq.s32.totalorder %v3133_v21, 2  ;;  %vm2488_vm5 = vcmp.eq.s32.totalorder %v2486_v59, 0  ;;  %vm3134_vm0 = vcmp.lt.s32.totalorder %v3133_v21, 2 }
 0x62c   : > { %v3484_v18 = vsel %vm3481_vm8, %v2617_v61, %v3473_v9  ;;  %v3137_v5 = vsel %vm3135_vm4, %v5246_v36, %v2283_v49  ;;  %v3140_v44 = vsel %vm3138_vm6, %v2286_v35, %v3915_v51  ;;  %v2490_v0 = vsel %vm2488_vm5, %v3919_v29, %v2489_v23 }
 0x62d   : > { %3493 = vst.msk [vmem:[%s5199_s21 + $0x10] sm:$0xff] %vm3490_vm9, %v3484_v18  ;;  %v2492_v16 = vxor.u32 2147483648, %v3919_v29  ;;  %v3624_v6 = vadd.s32 4294967294, %v2358_v25  ;;  %v3141_v46 = vsel %vm3134_vm0, %v3137_v5, %v3140_v44  ;;  %vm2491_vm7 = vcmp.eq.s32.totalorder %v2486_v59, 2 }
 0x62e   : > { %v3340_v26 = vadd.s32 3, %v2482_v13  ;;  %v3631_v11 = vmin.u32 %v2562_v45, %v5263_v19  ;;  %v3142_v58 = vsel %vm2279_vm2, nan, %v3141_v46  ;;  %vm2487_vm10 = vcmp.lt.s32.totalorder %v2486_v59, 2 }
 0x62f   : > { %v2493_v4 = vsel %vm2491_vm7, %v2492_v16, %v3917_v57  ;;  %v3678_v53 = vclamps-f32 %v3142_v58, 0.9999999  ;;  %v2619_v36 = vmul.f32 %v3638_v42, %v1621_v52  ;;  %vm2485_vm11 = vweird.f32 %v4663_v1 }
 0x630   : > { %v2494_v63 = vsel %vm2487_vm10, %v2490_v0, %v2493_v4  ;;  %v3341_v33 = vand.u32 3, %v3340_v26  ;;  %vm3625_vm13 = vcmp.lt.s32.totalorder %v3624_v6, 0  ;;  %v2564_v48 = vclz %v3631_v11 }
 0x631   : > { %v3475_v51 = vmul.f32 %v3678_v53, %v1621_v52  ;;  %v2495_v22 = vsel %vm2485_vm11, nan, %v2494_v63  ;;  %v2361_v40 = vsel %vm3625_vm13, 0, %v3624_v6  ;;  %v2346_v60 = vadd.s32 %v5003_v37, %v5009_v24 }
 0x632   : > { %vm3343_vm14 = vcmp.eq.s32.totalorder %v3341_v33, 0  ;;  %vm3346_vm1 = vcmp.eq.s32.totalorder %v3341_v33, 2  ;;  %vm3342_vm15 = vcmp.lt.s32.totalorder %v3341_v33, 2  ;;  %v3640_v39 = vclamps-f32 %v2495_v22, 0.9999999 }
 0x633   : > { %v3345_v3 = vsel %vm3343_vm14, %v3919_v29, %v2489_v23  ;;  %v3486_v34 = vsel %vm3481_vm8, %v2619_v36, %v3475_v51  ;;  %v3348_v47 = vsel %vm3346_vm1, %v2492_v16, %v3917_v57  ;;  %v3632_v35 = vadd.s32 4294967294, %v2564_v48 }
 0x634   : > { %3495 = vst.msk [vmem:[%s5199_s21 + $0x20] sm:$0xff] %vm3490_vm9, %v3486_v34  ;;  %v3349_v43 = vsel %vm3342_vm15, %v3345_v3, %v3348_v47  ;;  %v2621_v31 = vmul.f32 %v3640_v39, %v1627_v27  ;;  %v2366_v62 = vsub.s32 4294967266, %v2361_v40  ;;  %v2362_v61 = vsub.s32 32, %v2361_v40 }
 0x635   : > { %v3350_v49 = vsel %vm2485_vm11, nan, %v3349_v43  ;;  %vm3633_vm3 = vcmp.lt.s32.totalorder %v3632_v35, 0  ;;  %v2363_v50 = vshll.u32 %v5222_v55, %v2361_v40  ;;  %v2552_v10 = vadd.s32 %v5112_v15, %v5124_v12 }
 0x636   : > { %v3680_v17 = vclamps-f32 %v3350_v49, 0.9999999  ;;  %v2367_v57 = vadd.s32 127, %v2366_v62  ;;  %v2567_v28 = vsel %vm3633_vm3, 0, %v3632_v35  ;;  %v2364_v41 = vshrl.u32 %v2346_v60, %v2362_v61 }
 0x637   : > { %v2572_v1 = vsub.s32 4294967266, %v2567_v28  ;;  %v2568_v59 = vsub.s32 32, %v2567_v28  ;;  %v2569_v45 = vshll.u32 %v5263_v19, %v2567_v28  ;;  %vm2292_vm12 = vcmp.lt.s32.totalorder %v4837_v2, 0 }
 0x638   : > { %v3477_v20 = vmul.f32 %v3680_v17, %v1627_v27  ;;  %v2368_v38 = vshll.u32 %v2367_v57, 23  ;;  %v2365_v13 = vor.u32 %v2364_v41, %v2363_v50  ;;  %v5374_v0 = vand.u32 2147483647, %v4837_v2 }
 0x639   : > { %v2573_v14 = vadd.s32 127, %v2572_v1  ;;  %v2570_v29 = vshrl.u32 %v2552_v10, %v2568_v59  ;;  %v2376_v16 = vsub.s32 4, %v5157_v56  ;;  %vm2498_vm4 = vcmp.lt.s32.totalorder %v4907_v32, 0 }
 0x63a   : > { %v3488_v30 = vsel %vm3481_vm8, %v2621_v31, %v3477_v20  ;;  %v2369_v7 = vor.u32 4788187, %v2368_v38  ;;  %v2372_v23 = vcvt.s32.f32 %v2365_v13  ;;  %vm2291_vm2 = vcmp.le.f32.partialorder %v5374_v0, 0.7853982 }
 0x63b   : > { %3497 = vst.msk [vmem:[%s5199_s21 + $0x30] sm:$0xff] %vm3490_vm9, %v3488_v30  ;;  %v2574_v21 = vshll.u32 %v2573_v14, 23  ;;  %v2571_v24 = vor.u32 %v2570_v29, %v2569_v45  ;;  %v2377_v6 = vsel %vm2292_vm12, %v2376_v16, %v5157_v56  ;;  %v5375_v46 = vand.u32 2147483647, %v4907_v32 }
 0x63c   : > { %v2370_v9 = vand.u32 2147483647, %v2369_v7  ;;  %v2379_v11 = vsel %vm2291_vm2, 0, %v2377_v6  ;;  %v2582_v58 = vsub.s32 4, %v5238_v8  ;;  %vm2382_vm13 = vweird.f32 %v4837_v2 }
 0x63d   : > { %v2575_v37 = vor.u32 4788187, %v2574_v21  ;;  %v2578_v5 = vcvt.s32.f32 %v2571_v24  ;;  %vm2497_vm6 = vcmp.le.f32.partialorder %v5375_v46, 0.7853982  ;;  %v3236_v4 = vadd.s32 3, %v2379_v11 }
 0x63e   : > { %v2373_v25 = vmul.f32 %v2372_v23, %v2370_v9  ;;  %v2583_v36 = vsel %vm2498_vm4, %v2582_v58, %v5238_v8  ;;  %v2383_v63 = vand.u32 3, %v2379_v11 }
 0x63f   : > { %v2576_v42 = vand.u32 2147483647, %v2575_v37  ;;  %v3237_v22 = vand.u32 3, %v3236_v4  ;;  %v2585_v56 = vsel %vm2497_vm6, 0, %v2583_v36 }
 0x640   : > { %v2374_v18 = vxor.u32 2147483648, %v2373_v25  ;;  %vm2385_vm5 = vcmp.eq.s32.totalorder %v2383_v63, 0  ;;  %vm2388_vm0 = vcmp.eq.s32.totalorder %v2383_v63, 2  ;;  %v3444_v48 = vadd.s32 3, %v2585_v56 }
 0x641   : > { %v2579_v44 = vmul.f32 %v2578_v5, %v2576_v42  ;;  %vm3239_vm7 = vcmp.eq.s32.totalorder %v3237_v22, 0  ;;  %vm3242_vm10 = vcmp.eq.s32.totalorder %v3237_v22, 2  ;;  %vm2384_vm11 = vcmp.lt.s32.totalorder %v2383_v63, 2 }
 0x642   : > { %v2375_v55 = vsel %vm2292_vm12, %v2374_v18, %v2373_v25  ;;  %v2589_v40 = vand.u32 3, %v2585_v56  ;;  %vm3238_vm14 = vcmp.lt.s32.totalorder %v3237_v22, 2  ;;  %v3445_v8 = vand.u32 3, %v3444_v48 }
 0x643   : > { %v2378_v15 = vsel %vm2291_vm2, %v4837_v2, %v2375_v55  ;;  %v2580_v12 = vxor.u32 2147483648, %v2579_v44 }
 0x644   : > { %3920 = vcosq.f32 %v2378_v15  ;;  %vm2591_vm1 = vcmp.eq.s32.totalorder %v2589_v40, 0  ;;  %vm2594_vm15 = vcmp.eq.s32.totalorder %v2589_v40, 2  ;;  %vm3447_vm3 = vcmp.eq.s32.totalorder %v3445_v8, 0 }
 0x645   : > { %3922 = vsinq.f32 %v2378_v15  ;;  %v2581_v19 = vsel %vm2498_vm4, %v2580_v12, %v2579_v44  ;;  %vm3450_vm12 = vcmp.eq.s32.totalorder %v3445_v8, 2  ;;  %vm2590_vm2 = vcmp.lt.s32.totalorder %v2589_v40, 2 }
 0x646   : > { %v2584_v26 = vsel %vm2497_vm6, %v4907_v32, %v2581_v19  ;;  %vm3446_vm4 = vcmp.lt.s32.totalorder %v3445_v8, 2  ;;  %vm2588_vm6 = vweird.f32 %v4907_v32 }
 0x647   : > { %3924 = vcosq.f32 %v2584_v26 }
 0x648   : > { %3926 = vsinq.f32 %v2584_v26 }
 0x64e   : > { %v3921_v52 = vpop.eup %3920 }
 0x64f   : > { %v3923_v53 = vpop.eup %3922  ;;  %v2389_v51 = vxor.u32 2147483648, %v3921_v52 }
 0x650   : > { %v2386_v33 = vxor.u32 2147483648, %v3923_v53 }
 0x651   : > { %v3925_v3 = vpop.eup %3924  ;;  %v2390_v47 = vsel %vm2388_vm0, %v2389_v51, %v3923_v53  ;;  %v3244_v43 = vsel %vm3242_vm10, %v2389_v51, %v3923_v53 }
 0x652   : > { %v2387_v34 = vsel %vm2385_vm5, %v3921_v52, %v2386_v33  ;;  %v3927_v27 = vpop.eup %3926  ;;  %v3241_v39 = vsel %vm3239_vm7, %v3921_v52, %v2386_v33  ;;  %v2595_v31 = vxor.u32 2147483648, %v3925_v3 }
 0x653   : > { %v2391_v49 = vsel %vm2384_vm11, %v2387_v34, %v2390_v47  ;;  %v3245_v35 = vsel %vm3238_vm14, %v3241_v39, %v3244_v43  ;;  %v2592_v17 = vxor.u32 2147483648, %v3927_v27 }
 0x654   : > { %v2392_v62 = vsel %vm2382_vm13, nan, %v2391_v49  ;;  %v3246_v20 = vsel %vm2382_vm13, nan, %v3245_v35  ;;  %v2596_v57 = vsel %vm2594_vm15, %v2595_v31, %v3927_v27  ;;  %v3452_v61 = vsel %vm3450_vm12, %v2595_v31, %v3927_v27 }
 0x655   : > { %v2593_v30 = vsel %vm2591_vm1, %v3925_v3, %v2592_v17  ;;  %v3449_v28 = vsel %vm3447_vm3, %v3925_v3, %v2592_v17  ;;  %v3639_v60 = vclamps-f32 %v2392_v62, 0.9999999  ;;  %v3679_v38 = vclamps-f32 %v3246_v20, 0.9999999 }
 0x656   : > { %v2597_v1 = vsel %vm2590_vm2, %v2593_v30, %v2596_v57  ;;  %v3453_v41 = vsel %vm3446_vm4, %v3449_v28, %v3452_v61 }
 0x657   : > { %v2598_v14 = vsel %vm2588_vm6, nan, %v2597_v1  ;;  %v3454_v13 = vsel %vm2588_vm6, nan, %v3453_v41 }
 0x658   : > { %v3641_v9 = vclamps-f32 %v2598_v14, 0.9999999  ;;  %v3681_v10 = vclamps-f32 %v3454_v13, 0.9999999 }
 0x678   : > { %v1624_v50 = vpop.xlane.xlu1 %1623 }
 0x679   : > { %v2620_v2 = vmul.f32 %v3639_v60, %v1624_v50  ;;  %v3476_v7 = vmul.f32 %v3679_v38, %v1624_v50 }
 0x67b   : > { %v3487_v59 = vsel %vm3481_vm8, %v2620_v2, %v3476_v7 }
 0x67c   : > { %3496 = vst.msk [vmem:[%s5199_s21 + $0x28] sm:$0xff] %vm3490_vm9, %v3487_v59 }
 0x67e   : > { %v1630_v21 = vpop.xlane.xlu1 %1629 }
 0x67f   : > { %v2622_v23 = vmul.f32 %v3641_v9, %v1630_v21  ;;  %v3478_v29 = vmul.f32 %v3681_v10, %v1630_v21 }
 0x681   : > { %v3489_v25 = vsel %vm3481_vm8, %v2622_v23, %v3478_v29 }
 0x682   : > { %3498 = vst.msk [vmem:[%s5199_s21 + $0x38] sm:$0xff] %vm3490_vm9, %v3489_v25 }
 0x683 PF: > { %p25_p9 = scmp.ge.s32.totalorder %s4058_s11, 4   ;;  %s5376_s17 = smov %s3947_s18 }
 0x684   : > { %s5377_s18 = smov %s4067_s22  ;;  %s5378_s19 = smov %s4058_s11 }
 0x685   :  { %27 = sbr.rel (!%p25_p9) target bundleno = 5 (0x5), region = 149 }

</bundles_post_ra>
